<compile_context>
chip_gen: v7x
topology: tpu7x:2x2x1
jax: 0.10.0
libtpu: 0.0.40
codegen_flags: <defaults>
</compile_context>

<pallas_src>
import functools

import numpy as np
import jax
import jax.numpy as jnp
from jax.experimental import pallas as pl
from jax.experimental.pallas import tpu as pltpu

LANES = 128
CFG = [8, "M", 16, "M", 32, "M", 79, "M"]      # pruned VGG features (16x16 input)
SPATIAL = [(16, 16), (8, 8), (4, 4), (2, 2)]   # per-conv-layer input (H, W)


# ----------------------------------------------------------------------------
# Fused whole-network kernel
# ----------------------------------------------------------------------------
def _vgg_kernel(x_ref, wc_ref, sh_ref, s1_ref, s2_ref, s3_ref, s4_ref,
                wl_ref, bl_ref, o_ref, *, nb):
    s_refs = (s1_ref, s2_ref, s3_ref, s4_ref)
    x = x_ref[0]                                      # (nb*18*18, 128) f32 slab
    for layer, (h, w) in enumerate(SPATIAL):
        wp = w + 2                                    # padded row length
        m = nb * (h + 2) * wp                         # rows in the padded slab
        p = wp + 1                                    # max |tap row offset|
        xb = x.astype(jnp.bfloat16)
        zpad = jnp.zeros((p, LANES), jnp.bfloat16)
        xbig = jnp.concatenate([zpad, xb, zpad], axis=0)
        # In-VMEM im2col: 9 shifted views -> one lane-dense (m, 9*128) slab.
        taps = []
        for kh in range(3):
            for kw in range(3):
                off = (kh - 1) * wp + (kw - 1)
                taps.append(xbig[p + off:p + off + m, :])
        cols = jnp.concatenate(taps, axis=1)          # (m, 1152) bf16
        acc = jnp.dot(cols, wc_ref[layer],
                      preferred_element_type=jnp.float32)
        y = jnp.maximum(acc + sh_ref[layer], 0.0)     # conv + folded BN + ReLU
        # Fused 2x2 max pool: max with right / below neighbours ...
        zr = jnp.zeros((1, LANES), jnp.float32)
        m1 = jnp.maximum(y, jnp.concatenate([y[1:, :], zr], axis=0))
        zd = jnp.zeros((wp, LANES), jnp.float32)
        m2 = jnp.maximum(m1, jnp.concatenate([m1[wp:, :], zd], axis=0))
        # ... then compact pooled rows (and rebuild the next layer's zero ring)
        # with a tiny 0/1 selection matmul.  Last layer maps to (nb, 128) feats.
        x = jnp.dot(s_refs[layer][...], m2, preferred_element_type=jnp.float32)
    # x: (nb, 128) — 79 pooled features in lanes 0..78, zeros elsewhere.
    logits = jnp.dot(x.astype(jnp.bfloat16), wl_ref[...],
                     preferred_element_type=jnp.float32) + bl_ref[...]
    o_ref[0] = logits.astype(o_ref.dtype)


# ----------------------------------------------------------------------------
# Static prep: pooling/compaction selection matrices and folded parameters
# ----------------------------------------------------------------------------
def _pool_select(nb, h, w, *, last):
    """0/1 matrix mapping the 2x2-max slab of an (h,w) layer to the next
    layer's zero-ring-padded slab (or to flat per-image features if last)."""
    wp, mp_src = w + 2, (h + 2) * (w + 2)
    ho, wo = h // 2, w // 2
    if last:
        s = np.zeros((nb, nb * mp_src), np.float32)
        for n in range(nb):
            s[n, n * mp_src + 1 * wp + 1] = 1.0       # pooled 1x1 top-left row
        return jnp.asarray(s)
    wpo, mp_dst = wo + 2, (ho + 2) * (wo + 2)
    s = np.zeros((nb * mp_dst, nb * mp_src), np.float32)
    for n in range(nb):
        for i in range(ho):
            for j in range(wo):
                dst = n * mp_dst + (i + 1) * wpo + (j + 1)
                src = n * mp_src + (2 * i + 1) * wp + (2 * j + 1)
                s[dst, src] = 1.0
    return jnp.asarray(s)


def fold_vgg_params(conv_params, lin_params):
    """Fold conv bias + eval BatchNorm into (bf16 weight matrix, f32 shift)."""
    eps = 1e-5
    wcs, shs = [], []
    for (w, b, gamma, beta, mean, var) in conv_params:     # w: (Cout, Cin, 3, 3)
        cout, cin = w.shape[0], w.shape[1]
        scale = gamma / jnp.sqrt(var + eps)                 # (Cout,)
        shift = (b - mean) * scale + beta                   # (Cout,)
        # tap-major (t = kh*3 + kw), then Cin rows, padded to 128x128 per tap.
        wt = jnp.transpose(w, (2, 3, 1, 0)).reshape(9, cin, cout)
        wt = wt * scale[None, None, :]
        wmat = jnp.zeros((9, LANES, LANES), jnp.float32).at[:, :cin, :cout].set(wt)
        wcs.append(wmat.reshape(9 * LANES, LANES).astype(jnp.bfloat16))
        shs.append(jnp.zeros((1, LANES), jnp.float32).at[0, :cout].set(shift))
    lw, lb = lin_params                                     # (10, 79), (10,)
    wl = jnp.zeros((LANES, LANES), jnp.float32).at[:lw.shape[1], :lw.shape[0]].set(lw.T)
    bl = jnp.zeros((1, LANES), jnp.float32).at[0, :lw.shape[0]].set(lb)
    return jnp.stack(wcs), jnp.stack(shs), wl.astype(jnp.bfloat16), bl


# ----------------------------------------------------------------------------
# Public forward (PyTorch-style NCHW input)
# ----------------------------------------------------------------------------
@functools.partial(jax.jit, static_argnames=("batch_tile",))
def vgg_forward(x_nchw, folded, *, batch_tile=1):
    n, c, h, w = x_nchw.shape
    assert (h, w) == (16, 16) and c == 3, "pruned VGG expects 3x16x16 inputs"
    nb = batch_tile
    assert n % nb == 0
    g = n // nb

    # Boundary layout prep (one-time XLA glue): NCHW -> zero-ring-padded,
    # channel-padded, flattened NHWC slab (g, nb*18*18, 128).
    x = jnp.transpose(x_nchw, (0, 2, 3, 1)).astype(jnp.float32)
    x = jnp.pad(x, ((0, 0), (1, 1), (1, 1), (0, LANES - c)))
    x = x.reshape(g, nb * 18 * 18, LANES)

    s_mats = [_pool_select(nb, hh, ww, last=(i == len(SPATIAL) - 1))
              for i, (hh, ww) in enumerate(SPATIAL)]
    wc, sh, wl, bl = folded

    kernel = functools.partial(_vgg_kernel, nb=nb)
    out = pl.pallas_call(
        kernel,
        out_shape=jax.ShapeDtypeStruct((g, nb, LANES), jnp.float32),
        grid_spec=pltpu.PrefetchScalarGridSpec(
            num_scalar_prefetch=0,
            grid=(g,),
            in_specs=[
                pl.BlockSpec((1, nb * 18 * 18, LANES), lambda i: (i, 0, 0)),
                pl.BlockSpec(wc.shape, lambda i: (0, 0, 0)),
                pl.BlockSpec(sh.shape, lambda i: (0, 0, 0)),
                pl.BlockSpec(s_mats[0].shape, lambda i: (0, 0)),
                pl.BlockSpec(s_mats[1].shape, lambda i: (0, 0)),
                pl.BlockSpec(s_mats[2].shape, lambda i: (0, 0)),
                pl.BlockSpec(s_mats[3].shape, lambda i: (0, 0)),
                pl.BlockSpec(wl.shape, lambda i: (0, 0)),
                pl.BlockSpec(bl.shape, lambda i: (0, 0)),
            ],
            out_specs=pl.BlockSpec((1, nb, LANES), lambda i: (i, 0, 0)),
        ),
        compiler_params=pltpu.CompilerParams(
            dimension_semantics=("parallel",),
            vmem_limit_bytes=32 * 1024 * 1024,
        ),
    )(x, wc, sh, *s_mats, wl, bl)

    return out.reshape(n, LANES)[:, :10]               # lane-padded -> (N, 10)


# ----------------------------------------------------------------------------
# Parameter init (matches the PyTorch module's _initialize_weights)
# ----------------------------------------------------------------------------
def init_vgg_params(key, cfg=CFG, in_channels=3):
    conv_params = []
    cin = in_channels
    for v in cfg:
        if v == "M":
            continue
        key, k1 = jax.random.split(key)
        fan_out = v * 9                      # kaiming_normal_(fan_out, relu)
        wstd = jnp.sqrt(2.0 / fan_out)
        wgt = jax.random.normal(k1, (v, cin, 3, 3), jnp.float32) * wstd
        conv_params.append((wgt,
                            jnp.zeros((v,), jnp.float32),   # conv bias
                            jnp.ones((v,), jnp.float32),    # BN gamma
                            jnp.zeros((v,), jnp.float32),   # BN beta
                            jnp.zeros((v,), jnp.float32),   # running mean
                            jnp.ones((v,), jnp.float32)))   # running var
        cin = v
    key, k2 = jax.random.split(key)
    lin_w = jax.random.normal(k2, (10, 79), jnp.float32) * 0.01
    lin_b = jnp.zeros((10,), jnp.float32)
    return conv_params, (lin_w, lin_b)


# ----------------------------------------------------------------------------
# Pure-JAX reference (for a correctness sanity check)
# ----------------------------------------------------------------------------
def vgg_reference(x_nchw, conv_params, lin_params):
    x = jnp.transpose(x_nchw, (0, 2, 3, 1)).astype(jnp.float32)
    for (w, b, gamma, beta, mean, var) in conv_params:
        wh = jnp.transpose(w, (2, 3, 1, 0))                   # HWIO
        y = jax.lax.conv_general_dilated(
            x, wh, window_strides=(1, 1), padding=((1, 1), (1, 1)),
            dimension_numbers=("NHWC", "HWIO", "NHWC"))
        scale = gamma / jnp.sqrt(var + 1e-5)
        y = jnp.maximum((y + b - mean) * scale + beta, 0.0)
        x = jax.lax.reduce_window(y, -jnp.inf, jax.lax.max,
                                  (1, 2, 2, 1), (1, 2, 2, 1), "VALID")
    feat = x.reshape(x.shape[0], -1)                          # (N, 79) at 1x1
    lw, lb = lin_params
    return feat @ lw.T + lb


if __name__ == "__main__":
    key = jax.random.PRNGKey(0)
    key, kx = jax.random.split(key)
    x = jax.random.normal(kx, (2, 3, 16, 16), jnp.float32)    # NCHW, like PyTorch
    conv_params, lin_params = init_vgg_params(key)
    folded = fold_vgg_params(conv_params, lin_params)

    out = vgg_forward(x, folded, batch_tile=1)
    out = jax.block_until_ready(out)
    assert out.shape == (2, 10), out.shape

    ref = jax.block_until_ready(vgg_reference(x, conv_params, lin_params))
    np.testing.assert_allclose(np.asarray(out), np.asarray(ref),
                               atol=5e-2, rtol=0.0)
    print("KERNEL_OK")
</pallas_src>

<mosaic_0001>
module attributes {stable_mosaic.version = 11 : i64} {
  func.func @_vgg_kernel(%arg0: i32, %arg1: memref<1x324x128xf32, #tpu.memory_space<vmem>>, %arg2: memref<4x1152x128xbf16, #tpu.memory_space<vmem>>, %arg3: memref<4x1x128xf32, #tpu.memory_space<vmem>>, %arg4: memref<100x324xf32, #tpu.memory_space<vmem>>, %arg5: memref<36x100xf32, #tpu.memory_space<vmem>>, %arg6: memref<16x36xf32, #tpu.memory_space<vmem>>, %arg7: memref<1x16xf32, #tpu.memory_space<vmem>>, %arg8: memref<128x128xbf16, #tpu.memory_space<vmem>>, %arg9: memref<1x128xf32, #tpu.memory_space<vmem>>, %arg10: memref<1x1x128xf32, #tpu.memory_space<vmem>>) attributes {dimension_semantics = [#tpu.dimension_semantics<parallel>], iteration_bounds = array<i64: 2>, scalar_prefetch = 0 : i64, scratch_operands = 0 : i64, tpu.core_type = #tpu.core_type<tc>, window_params = [{transform_indices = @transform_0, window_bounds = array<i64: 1, 324, 128>}, {pipeline_mode = #tpu.pipeline_mode<synchronous>, transform_indices = @transform_1, window_bounds = array<i64: 4, 1152, 128>}, {pipeline_mode = #tpu.pipeline_mode<synchronous>, transform_indices = @transform_2, window_bounds = array<i64: 4, 1, 128>}, {pipeline_mode = #tpu.pipeline_mode<synchronous>, transform_indices = @transform_3, window_bounds = array<i64: 100, 324>}, {pipeline_mode = #tpu.pipeline_mode<synchronous>, transform_indices = @transform_4, window_bounds = array<i64: 36, 100>}, {pipeline_mode = #tpu.pipeline_mode<synchronous>, transform_indices = @transform_5, window_bounds = array<i64: 16, 36>}, {pipeline_mode = #tpu.pipeline_mode<synchronous>, transform_indices = @transform_6, window_bounds = array<i64: 1, 16>}, {pipeline_mode = #tpu.pipeline_mode<synchronous>, transform_indices = @transform_7, window_bounds = array<i64: 128, 128>}, {pipeline_mode = #tpu.pipeline_mode<synchronous>, transform_indices = @transform_8, window_bounds = array<i64: 1, 128>}, {transform_indices = @transform_9, window_bounds = array<i64: 1, 1, 128>}]} {
    %c0 = arith.constant 0 : index
    %c0_0 = arith.constant 0 : index
    %c0_1 = arith.constant 0 : index
    %0 = vector.load %arg1[%c0, %c0_0, %c0_1] : memref<1x324x128xf32, #tpu.memory_space<vmem>>, vector<1x324x128xf32>
    %1 = vector.shape_cast %0 : vector<1x324x128xf32> to vector<324x128xf32>
    %2 = arith.truncf %1 : vector<324x128xf32> to vector<324x128xbf16>
    %cst = arith.constant 0.000000e+00 : bf16
    %3 = vector.broadcast %cst : bf16 to vector<19x128xbf16>
    %4 = tpu.concatenate %3, %2, %3 in 0 : vector<19x128xbf16>, vector<324x128xbf16>, vector<19x128xbf16> -> vector<362x128xbf16>
    %5 = vector.extract_strided_slice %4 {offsets = [0, 0], sizes = [324, 128], strides = [1, 1]} : vector<362x128xbf16> to vector<324x128xbf16>
    %6 = vector.extract_strided_slice %4 {offsets = [1, 0], sizes = [324, 128], strides = [1, 1]} : vector<362x128xbf16> to vector<324x128xbf16>
    %7 = vector.extract_strided_slice %4 {offsets = [2, 0], sizes = [324, 128], strides = [1, 1]} : vector<362x128xbf16> to vector<324x128xbf16>
    %8 = vector.extract_strided_slice %4 {offsets = [18, 0], sizes = [324, 128], strides = [1, 1]} : vector<362x128xbf16> to vector<324x128xbf16>
    %9 = vector.extract_strided_slice %4 {offsets = [19, 0], sizes = [324, 128], strides = [1, 1]} : vector<362x128xbf16> to vector<324x128xbf16>
    %10 = vector.extract_strided_slice %4 {offsets = [20, 0], sizes = [324, 128], strides = [1, 1]} : vector<362x128xbf16> to vector<324x128xbf16>
    %11 = vector.extract_strided_slice %4 {offsets = [36, 0], sizes = [324, 128], strides = [1, 1]} : vector<362x128xbf16> to vector<324x128xbf16>
    %12 = vector.extract_strided_slice %4 {offsets = [37, 0], sizes = [324, 128], strides = [1, 1]} : vector<362x128xbf16> to vector<324x128xbf16>
    %13 = vector.extract_strided_slice %4 {offsets = [38, 0], sizes = [324, 128], strides = [1, 1]} : vector<362x128xbf16> to vector<324x128xbf16>
    %14 = tpu.concatenate %5, %6, %7, %8, %9, %10, %11, %12, %13 in 1 : vector<324x128xbf16>, vector<324x128xbf16>, vector<324x128xbf16>, vector<324x128xbf16>, vector<324x128xbf16>, vector<324x128xbf16>, vector<324x128xbf16>, vector<324x128xbf16>, vector<324x128xbf16> -> vector<324x1152xbf16>
    %c0_2 = arith.constant 0 : index
    %c0_3 = arith.constant 0 : index
    %c0_4 = arith.constant 0 : index
    %15 = vector.load %arg2[%c0_2, %c0_3, %c0_4] : memref<4x1152x128xbf16, #tpu.memory_space<vmem>>, vector<1x1152x128xbf16>
    %16 = vector.shape_cast %15 : vector<1x1152x128xbf16> to vector<1152x128xbf16>
    %cst_5 = arith.constant dense<0.000000e+00> : vector<324x128xf32>
    %17 = tpu.matmul %14, %16, %cst_5 {dimension_numbers = #tpu.dot_dimension_numbers<[1], [0], [0], [1], [0, 0, 1, 1], [], []>} : vector<324x1152xbf16>, vector<1152x128xbf16>, vector<324x128xf32> -> vector<324x128xf32>
    %c0_6 = arith.constant 0 : index
    %c0_7 = arith.constant 0 : index
    %c0_8 = arith.constant 0 : index
    %18 = vector.load %arg3[%c0_6, %c0_7, %c0_8] : memref<4x1x128xf32, #tpu.memory_space<vmem>>, vector<1x1x128xf32>
    %19 = vector.shape_cast %18 : vector<1x1x128xf32> to vector<1x128xf32>
    %20 = vector.broadcast %19 : vector<1x128xf32> to vector<324x128xf32>
    %21 = arith.addf %17, %20 : vector<324x128xf32>
    %cst_9 = arith.constant 0.000000e+00 : f32
    %22 = vector.broadcast %cst_9 : f32 to vector<324x128xf32>
    %23 = arith.maximumf %21, %22 : vector<324x128xf32>
    %cst_10 = arith.constant 0.000000e+00 : f32
    %24 = vector.broadcast %cst_10 : f32 to vector<1x128xf32>
    %25 = vector.extract_strided_slice %23 {offsets = [1, 0], sizes = [323, 128], strides = [1, 1]} : vector<324x128xf32> to vector<323x128xf32>
    %26 = tpu.concatenate %25, %24 in 0 : vector<323x128xf32>, vector<1x128xf32> -> vector<324x128xf32>
    %27 = arith.maximumf %23, %26 : vector<324x128xf32>
    %cst_11 = arith.constant 0.000000e+00 : f32
    %28 = vector.broadcast %cst_11 : f32 to vector<18x128xf32>
    %29 = vector.extract_strided_slice %27 {offsets = [18, 0], sizes = [306, 128], strides = [1, 1]} : vector<324x128xf32> to vector<306x128xf32>
    %30 = tpu.concatenate %29, %28 in 0 : vector<306x128xf32>, vector<18x128xf32> -> vector<324x128xf32>
    %31 = arith.maximumf %27, %30 : vector<324x128xf32>
    %c0_12 = arith.constant 0 : index
    %c0_13 = arith.constant 0 : index
    %32 = vector.load %arg4[%c0_12, %c0_13] : memref<100x324xf32, #tpu.memory_space<vmem>>, vector<100x324xf32>
    %cst_14 = arith.constant dense<0.000000e+00> : vector<100x128xf32>
    %33 = tpu.matmul %32, %31, %cst_14 {dimension_numbers = #tpu.dot_dimension_numbers<[1], [0], [0], [1], [0, 0, 1, 1], [], []>} : vector<100x324xf32>, vector<324x128xf32>, vector<100x128xf32> -> vector<100x128xf32>
    %34 = arith.truncf %33 : vector<100x128xf32> to vector<100x128xbf16>
    %cst_15 = arith.constant 0.000000e+00 : bf16
    %35 = vector.broadcast %cst_15 : bf16 to vector<11x128xbf16>
    %36 = tpu.concatenate %35, %34, %35 in 0 : vector<11x128xbf16>, vector<100x128xbf16>, vector<11x128xbf16> -> vector<122x128xbf16>
    %37 = vector.extract_strided_slice %36 {offsets = [0, 0], sizes = [100, 128], strides = [1, 1]} : vector<122x128xbf16> to vector<100x128xbf16>
    %38 = vector.extract_strided_slice %36 {offsets = [1, 0], sizes = [100, 128], strides = [1, 1]} : vector<122x128xbf16> to vector<100x128xbf16>
    %39 = vector.extract_strided_slice %36 {offsets = [2, 0], sizes = [100, 128], strides = [1, 1]} : vector<122x128xbf16> to vector<100x128xbf16>
    %40 = vector.extract_strided_slice %36 {offsets = [10, 0], sizes = [100, 128], strides = [1, 1]} : vector<122x128xbf16> to vector<100x128xbf16>
    %41 = vector.extract_strided_slice %36 {offsets = [11, 0], sizes = [100, 128], strides = [1, 1]} : vector<122x128xbf16> to vector<100x128xbf16>
    %42 = vector.extract_strided_slice %36 {offsets = [12, 0], sizes = [100, 128], strides = [1, 1]} : vector<122x128xbf16> to vector<100x128xbf16>
    %43 = vector.extract_strided_slice %36 {offsets = [20, 0], sizes = [100, 128], strides = [1, 1]} : vector<122x128xbf16> to vector<100x128xbf16>
    %44 = vector.extract_strided_slice %36 {offsets = [21, 0], sizes = [100, 128], strides = [1, 1]} : vector<122x128xbf16> to vector<100x128xbf16>
    %45 = vector.extract_strided_slice %36 {offsets = [22, 0], sizes = [100, 128], strides = [1, 1]} : vector<122x128xbf16> to vector<100x128xbf16>
    %46 = tpu.concatenate %37, %38, %39, %40, %41, %42, %43, %44, %45 in 1 : vector<100x128xbf16>, vector<100x128xbf16>, vector<100x128xbf16>, vector<100x128xbf16>, vector<100x128xbf16>, vector<100x128xbf16>, vector<100x128xbf16>, vector<100x128xbf16>, vector<100x128xbf16> -> vector<100x1152xbf16>
    %c1 = arith.constant 1 : index
    %c0_16 = arith.constant 0 : index
    %c0_17 = arith.constant 0 : index
    %47 = vector.load %arg2[%c1, %c0_16, %c0_17] : memref<4x1152x128xbf16, #tpu.memory_space<vmem>>, vector<1x1152x128xbf16>
    %48 = vector.shape_cast %47 : vector<1x1152x128xbf16> to vector<1152x128xbf16>
    %cst_18 = arith.constant dense<0.000000e+00> : vector<100x128xf32>
    %49 = tpu.matmul %46, %48, %cst_18 {dimension_numbers = #tpu.dot_dimension_numbers<[1], [0], [0], [1], [0, 0, 1, 1], [], []>} : vector<100x1152xbf16>, vector<1152x128xbf16>, vector<100x128xf32> -> vector<100x128xf32>
    %c1_19 = arith.constant 1 : index
    %c0_20 = arith.constant 0 : index
    %c0_21 = arith.constant 0 : index
    %50 = vector.load %arg3[%c1_19, %c0_20, %c0_21] : memref<4x1x128xf32, #tpu.memory_space<vmem>>, vector<1x1x128xf32>
    %51 = vector.shape_cast %50 : vector<1x1x128xf32> to vector<1x128xf32>
    %52 = vector.broadcast %51 : vector<1x128xf32> to vector<100x128xf32>
    %53 = arith.addf %49, %52 : vector<100x128xf32>
    %cst_22 = arith.constant 0.000000e+00 : f32
    %54 = vector.broadcast %cst_22 : f32 to vector<100x128xf32>
    %55 = arith.maximumf %53, %54 : vector<100x128xf32>
    %cst_23 = arith.constant 0.000000e+00 : f32
    %56 = vector.broadcast %cst_23 : f32 to vector<1x128xf32>
    %57 = vector.extract_strided_slice %55 {offsets = [1, 0], sizes = [99, 128], strides = [1, 1]} : vector<100x128xf32> to vector<99x128xf32>
    %58 = tpu.concatenate %57, %56 in 0 : vector<99x128xf32>, vector<1x128xf32> -> vector<100x128xf32>
    %59 = arith.maximumf %55, %58 : vector<100x128xf32>
    %cst_24 = arith.constant 0.000000e+00 : f32
    %60 = vector.broadcast %cst_24 : f32 to vector<10x128xf32>
    %61 = vector.extract_strided_slice %59 {offsets = [10, 0], sizes = [90, 128], strides = [1, 1]} : vector<100x128xf32> to vector<90x128xf32>
    %62 = tpu.concatenate %61, %60 in 0 : vector<90x128xf32>, vector<10x128xf32> -> vector<100x128xf32>
    %63 = arith.maximumf %59, %62 : vector<100x128xf32>
    %c0_25 = arith.constant 0 : index
    %c0_26 = arith.constant 0 : index
    %64 = vector.load %arg5[%c0_25, %c0_26] : memref<36x100xf32, #tpu.memory_space<vmem>>, vector<36x100xf32>
    %cst_27 = arith.constant dense<0.000000e+00> : vector<36x128xf32>
    %65 = tpu.matmul %64, %63, %cst_27 {dimension_numbers = #tpu.dot_dimension_numbers<[1], [0], [0], [1], [0, 0, 1, 1], [], []>} : vector<36x100xf32>, vector<100x128xf32>, vector<36x128xf32> -> vector<36x128xf32>
    %66 = arith.truncf %65 : vector<36x128xf32> to vector<36x128xbf16>
    %cst_28 = arith.constant 0.000000e+00 : bf16
    %67 = vector.broadcast %cst_28 : bf16 to vector<7x128xbf16>
    %68 = tpu.concatenate %67, %66, %67 in 0 : vector<7x128xbf16>, vector<36x128xbf16>, vector<7x128xbf16> -> vector<50x128xbf16>
    %69 = vector.extract_strided_slice %68 {offsets = [0, 0], sizes = [36, 128], strides = [1, 1]} : vector<50x128xbf16> to vector<36x128xbf16>
    %70 = vector.extract_strided_slice %68 {offsets = [1, 0], sizes = [36, 128], strides = [1, 1]} : vector<50x128xbf16> to vector<36x128xbf16>
    %71 = vector.extract_strided_slice %68 {offsets = [2, 0], sizes = [36, 128], strides = [1, 1]} : vector<50x128xbf16> to vector<36x128xbf16>
    %72 = vector.extract_strided_slice %68 {offsets = [6, 0], sizes = [36, 128], strides = [1, 1]} : vector<50x128xbf16> to vector<36x128xbf16>
    %73 = vector.extract_strided_slice %68 {offsets = [7, 0], sizes = [36, 128], strides = [1, 1]} : vector<50x128xbf16> to vector<36x128xbf16>
    %74 = vector.extract_strided_slice %68 {offsets = [8, 0], sizes = [36, 128], strides = [1, 1]} : vector<50x128xbf16> to vector<36x128xbf16>
    %75 = vector.extract_strided_slice %68 {offsets = [12, 0], sizes = [36, 128], strides = [1, 1]} : vector<50x128xbf16> to vector<36x128xbf16>
    %76 = vector.extract_strided_slice %68 {offsets = [13, 0], sizes = [36, 128], strides = [1, 1]} : vector<50x128xbf16> to vector<36x128xbf16>
    %77 = vector.extract_strided_slice %68 {offsets = [14, 0], sizes = [36, 128], strides = [1, 1]} : vector<50x128xbf16> to vector<36x128xbf16>
    %78 = tpu.concatenate %69, %70, %71, %72, %73, %74, %75, %76, %77 in 1 : vector<36x128xbf16>, vector<36x128xbf16>, vector<36x128xbf16>, vector<36x128xbf16>, vector<36x128xbf16>, vector<36x128xbf16>, vector<36x128xbf16>, vector<36x128xbf16>, vector<36x128xbf16> -> vector<36x1152xbf16>
    %c2 = arith.constant 2 : index
    %c0_29 = arith.constant 0 : index
    %c0_30 = arith.constant 0 : index
    %79 = vector.load %arg2[%c2, %c0_29, %c0_30] : memref<4x1152x128xbf16, #tpu.memory_space<vmem>>, vector<1x1152x128xbf16>
    %80 = vector.shape_cast %79 : vector<1x1152x128xbf16> to vector<1152x128xbf16>
    %cst_31 = arith.constant dense<0.000000e+00> : vector<36x128xf32>
    %81 = tpu.matmul %78, %80, %cst_31 {dimension_numbers = #tpu.dot_dimension_numbers<[1], [0], [0], [1], [0, 0, 1, 1], [], []>} : vector<36x1152xbf16>, vector<1152x128xbf16>, vector<36x128xf32> -> vector<36x128xf32>
    %c2_32 = arith.constant 2 : index
    %c0_33 = arith.constant 0 : index
    %c0_34 = arith.constant 0 : index
    %82 = vector.load %arg3[%c2_32, %c0_33, %c0_34] : memref<4x1x128xf32, #tpu.memory_space<vmem>>, vector<1x1x128xf32>
    %83 = vector.shape_cast %82 : vector<1x1x128xf32> to vector<1x128xf32>
    %84 = vector.broadcast %83 : vector<1x128xf32> to vector<36x128xf32>
    %85 = arith.addf %81, %84 : vector<36x128xf32>
    %cst_35 = arith.constant 0.000000e+00 : f32
    %86 = vector.broadcast %cst_35 : f32 to vector<36x128xf32>
    %87 = arith.maximumf %85, %86 : vector<36x128xf32>
    %cst_36 = arith.constant 0.000000e+00 : f32
    %88 = vector.broadcast %cst_36 : f32 to vector<1x128xf32>
    %89 = vector.extract_strided_slice %87 {offsets = [1, 0], sizes = [35, 128], strides = [1, 1]} : vector<36x128xf32> to vector<35x128xf32>
    %90 = tpu.concatenate %89, %88 in 0 : vector<35x128xf32>, vector<1x128xf32> -> vector<36x128xf32>
    %91 = arith.maximumf %87, %90 : vector<36x128xf32>
    %cst_37 = arith.constant 0.000000e+00 : f32
    %92 = vector.broadcast %cst_37 : f32 to vector<6x128xf32>
    %93 = vector.extract_strided_slice %91 {offsets = [6, 0], sizes = [30, 128], strides = [1, 1]} : vector<36x128xf32> to vector<30x128xf32>
    %94 = tpu.concatenate %93, %92 in 0 : vector<30x128xf32>, vector<6x128xf32> -> vector<36x128xf32>
    %95 = arith.maximumf %91, %94 : vector<36x128xf32>
    %c0_38 = arith.constant 0 : index
    %c0_39 = arith.constant 0 : index
    %96 = vector.load %arg6[%c0_38, %c0_39] : memref<16x36xf32, #tpu.memory_space<vmem>>, vector<16x36xf32>
    %cst_40 = arith.constant dense<0.000000e+00> : vector<16x128xf32>
    %97 = tpu.matmul %96, %95, %cst_40 {dimension_numbers = #tpu.dot_dimension_numbers<[1], [0], [0], [1], [0, 0, 1, 1], [], []>} : vector<16x36xf32>, vector<36x128xf32>, vector<16x128xf32> -> vector<16x128xf32>
    %98 = arith.truncf %97 : vector<16x128xf32> to vector<16x128xbf16>
    %cst_41 = arith.constant 0.000000e+00 : bf16
    %99 = vector.broadcast %cst_41 : bf16 to vector<5x128xbf16>
    %100 = tpu.concatenate %99, %98, %99 in 0 : vector<5x128xbf16>, vector<16x128xbf16>, vector<5x128xbf16> -> vector<26x128xbf16>
    %101 = vector.extract_strided_slice %100 {offsets = [0, 0], sizes = [16, 128], strides = [1, 1]} : vector<26x128xbf16> to vector<16x128xbf16>
    %102 = vector.extract_strided_slice %100 {offsets = [1, 0], sizes = [16, 128], strides = [1, 1]} : vector<26x128xbf16> to vector<16x128xbf16>
    %103 = vector.extract_strided_slice %100 {offsets = [2, 0], sizes = [16, 128], strides = [1, 1]} : vector<26x128xbf16> to vector<16x128xbf16>
    %104 = vector.extract_strided_slice %100 {offsets = [4, 0], sizes = [16, 128], strides = [1, 1]} : vector<26x128xbf16> to vector<16x128xbf16>
    %105 = vector.extract_strided_slice %100 {offsets = [5, 0], sizes = [16, 128], strides = [1, 1]} : vector<26x128xbf16> to vector<16x128xbf16>
    %106 = vector.extract_strided_slice %100 {offsets = [6, 0], sizes = [16, 128], strides = [1, 1]} : vector<26x128xbf16> to vector<16x128xbf16>
    %107 = vector.extract_strided_slice %100 {offsets = [8, 0], sizes = [16, 128], strides = [1, 1]} : vector<26x128xbf16> to vector<16x128xbf16>
    %108 = vector.extract_strided_slice %100 {offsets = [9, 0], sizes = [16, 128], strides = [1, 1]} : vector<26x128xbf16> to vector<16x128xbf16>
    %109 = vector.extract_strided_slice %100 {offsets = [10, 0], sizes = [16, 128], strides = [1, 1]} : vector<26x128xbf16> to vector<16x128xbf16>
    %110 = tpu.concatenate %101, %102, %103, %104, %105, %106, %107, %108, %109 in 1 : vector<16x128xbf16>, vector<16x128xbf16>, vector<16x128xbf16>, vector<16x128xbf16>, vector<16x128xbf16>, vector<16x128xbf16>, vector<16x128xbf16>, vector<16x128xbf16>, vector<16x128xbf16> -> vector<16x1152xbf16>
    %c3 = arith.constant 3 : index
    %c0_42 = arith.constant 0 : index
    %c0_43 = arith.constant 0 : index
    %111 = vector.load %arg2[%c3, %c0_42, %c0_43] : memref<4x1152x128xbf16, #tpu.memory_space<vmem>>, vector<1x1152x128xbf16>
    %112 = vector.shape_cast %111 : vector<1x1152x128xbf16> to vector<1152x128xbf16>
    %cst_44 = arith.constant dense<0.000000e+00> : vector<16x128xf32>
    %113 = tpu.matmul %110, %112, %cst_44 {dimension_numbers = #tpu.dot_dimension_numbers<[1], [0], [0], [1], [0, 0, 1, 1], [], []>} : vector<16x1152xbf16>, vector<1152x128xbf16>, vector<16x128xf32> -> vector<16x128xf32>
    %c3_45 = arith.constant 3 : index
    %c0_46 = arith.constant 0 : index
    %c0_47 = arith.constant 0 : index
    %114 = vector.load %arg3[%c3_45, %c0_46, %c0_47] : memref<4x1x128xf32, #tpu.memory_space<vmem>>, vector<1x1x128xf32>
    %115 = vector.shape_cast %114 : vector<1x1x128xf32> to vector<1x128xf32>
    %116 = vector.broadcast %115 : vector<1x128xf32> to vector<16x128xf32>
    %117 = arith.addf %113, %116 : vector<16x128xf32>
    %cst_48 = arith.constant 0.000000e+00 : f32
    %118 = vector.broadcast %cst_48 : f32 to vector<16x128xf32>
    %119 = arith.maximumf %117, %118 : vector<16x128xf32>
    %cst_49 = arith.constant 0.000000e+00 : f32
    %120 = vector.broadcast %cst_49 : f32 to vector<1x128xf32>
    %121 = vector.extract_strided_slice %119 {offsets = [1, 0], sizes = [15, 128], strides = [1, 1]} : vector<16x128xf32> to vector<15x128xf32>
    %122 = tpu.concatenate %121, %120 in 0 : vector<15x128xf32>, vector<1x128xf32> -> vector<16x128xf32>
    %123 = arith.maximumf %119, %122 : vector<16x128xf32>
    %cst_50 = arith.constant 0.000000e+00 : f32
    %124 = vector.broadcast %cst_50 : f32 to vector<4x128xf32>
    %125 = vector.extract_strided_slice %123 {offsets = [4, 0], sizes = [12, 128], strides = [1, 1]} : vector<16x128xf32> to vector<12x128xf32>
    %126 = tpu.concatenate %125, %124 in 0 : vector<12x128xf32>, vector<4x128xf32> -> vector<16x128xf32>
    %127 = arith.maximumf %123, %126 : vector<16x128xf32>
    %c0_51 = arith.constant 0 : index
    %c0_52 = arith.constant 0 : index
    %128 = vector.load %arg7[%c0_51, %c0_52] : memref<1x16xf32, #tpu.memory_space<vmem>>, vector<1x16xf32>
    %cst_53 = arith.constant dense<0.000000e+00> : vector<1x128xf32>
    %129 = tpu.matmul %128, %127, %cst_53 {dimension_numbers = #tpu.dot_dimension_numbers<[1], [0], [0], [1], [0, 0, 1, 1], [], []>} : vector<1x16xf32>, vector<16x128xf32>, vector<1x128xf32> -> vector<1x128xf32>
    %130 = arith.truncf %129 : vector<1x128xf32> to vector<1x128xbf16>
    %c0_54 = arith.constant 0 : index
    %c0_55 = arith.constant 0 : index
    %131 = vector.load %arg8[%c0_54, %c0_55] : memref<128x128xbf16, #tpu.memory_space<vmem>>, vector<128x128xbf16>
    %cst_56 = arith.constant dense<0.000000e+00> : vector<1x128xf32>
    %132 = tpu.matmul %130, %131, %cst_56 {dimension_numbers = #tpu.dot_dimension_numbers<[1], [0], [0], [1], [0, 0, 1, 1], [], []>} : vector<1x128xbf16>, vector<128x128xbf16>, vector<1x128xf32> -> vector<1x128xf32>
    %c0_57 = arith.constant 0 : index
    %c0_58 = arith.constant 0 : index
    %133 = vector.load %arg9[%c0_57, %c0_58] : memref<1x128xf32, #tpu.memory_space<vmem>>, vector<1x128xf32>
    %134 = arith.addf %132, %133 : vector<1x128xf32>
    %c0_59 = arith.constant 0 : index
    %c0_60 = arith.constant 0 : index
    %c0_61 = arith.constant 0 : index
    %135 = vector.load %arg10[%c0_59, %c0_60, %c0_61] : memref<1x1x128xf32, #tpu.memory_space<vmem>>, vector<1x1x128xf32>
    %136 = vector.shape_cast %135 : vector<1x1x128xf32> to vector<1x128xf32>
    %137 = vector.shape_cast %134 : vector<1x128xf32> to vector<1x1x128xf32>
    tpu.vector_store %arg10[%c0_59, %c0_60, %c0_61], %137 {strides = array<i32>} : memref<1x1x128xf32, #tpu.memory_space<vmem>>, vector<1x1x128xf32>,
    return
  }
  func.func @transform_0(%arg0: i32) -> (i32, i32, i32) {
    %c0_i32 = arith.constant 0 : i32
    %c0_i32_0 = arith.constant 0 : i32
    %c0_i32_1 = arith.constant 0 : i32
    return %arg0, %c0_i32, %c0_i32_0 : i32, i32, i32
  }
  func.func @transform_1(%arg0: i32) -> (i32, i32, i32) {
    %c0_i32 = arith.constant 0 : i32
    %c0_i32_0 = arith.constant 0 : i32
    %c0_i32_1 = arith.constant 0 : i32
    %c0_i32_2 = arith.constant 0 : i32
    return %c0_i32, %c0_i32_0, %c0_i32_1 : i32, i32, i32
  }
  func.func @transform_2(%arg0: i32) -> (i32, i32, i32) {
    %c0_i32 = arith.constant 0 : i32
    %c0_i32_0 = arith.constant 0 : i32
    %c0_i32_1 = arith.constant 0 : i32
    %c0_i32_2 = arith.constant 0 : i32
    return %c0_i32, %c0_i32_0, %c0_i32_1 : i32, i32, i32
  }
  func.func @transform_3(%arg0: i32) -> (i32, i32) {
    %c0_i32 = arith.constant 0 : i32
    %c0_i32_0 = arith.constant 0 : i32
    %c0_i32_1 = arith.constant 0 : i32
    return %c0_i32, %c0_i32_0 : i32, i32
  }
  func.func @transform_4(%arg0: i32) -> (i32, i32) {
    %c0_i32 = arith.constant 0 : i32
    %c0_i32_0 = arith.constant 0 : i32
    %c0_i32_1 = arith.constant 0 : i32
    return %c0_i32, %c0_i32_0 : i32, i32
  }
  func.func @transform_5(%arg0: i32) -> (i32, i32) {
    %c0_i32 = arith.constant 0 : i32
    %c0_i32_0 = arith.constant 0 : i32
    %c0_i32_1 = arith.constant 0 : i32
    return %c0_i32, %c0_i32_0 : i32, i32
  }
  func.func @transform_6(%arg0: i32) -> (i32, i32) {
    %c0_i32 = arith.constant 0 : i32
    %c0_i32_0 = arith.constant 0 : i32
    %c0_i32_1 = arith.constant 0 : i32
    return %c0_i32, %c0_i32_0 : i32, i32
  }
  func.func @transform_7(%arg0: i32) -> (i32, i32) {
    %c0_i32 = arith.constant 0 : i32
    %c0_i32_0 = arith.constant 0 : i32
    %c0_i32_1 = arith.constant 0 : i32
    return %c0_i32, %c0_i32_0 : i32, i32
  }
  func.func @transform_8(%arg0: i32) -> (i32, i32) {
    %c0_i32 = arith.constant 0 : i32
    %c0_i32_0 = arith.constant 0 : i32
    %c0_i32_1 = arith.constant 0 : i32
    return %c0_i32, %c0_i32_0 : i32, i32
  }
  func.func @transform_9(%arg0: i32) -> (i32, i32, i32) {
    %c0_i32 = arith.constant 0 : i32
    %c0_i32_0 = arith.constant 0 : i32
    %c0_i32_1 = arith.constant 0 : i32
    return %arg0, %c0_i32, %c0_i32_0 : i32, i32, i32
  }
}

</mosaic_0001>

<bundles_post_ra>
// kernel: vgg_forward.1
= control target key start
LH: loop header
LB: loop body
LE: loop exit
PB: predicated region body
PF: predicated region fallthrough
CT: control target
= control target key end

     0   :  { %14 = vsyncpa [#allocation3], 0  ;;  %s13127_s0 = inlined_call_operand.vmem [shape: f32[2,324,128], index: 0, kind: input, shape index: {}]   ;;  %s13128_s1 = inlined_call_operand.vmem [shape: bf16[4,1152,128], index: 1, kind: input, shape index: {}]   ;;  %s13129_s2 = inlined_call_operand.vmem [shape: f32[4,1,128], index: 2, kind: input, shape index: {}]   ;;  %s13130_s3 = inlined_call_operand.vmem [shape: f32[100,324], index: 3, kind: input, shape index: {}]   ;;  %s13131_s4 = inlined_call_operand.vmem [shape: f32[36,100], index: 4, kind: input, shape index: {}]   ;;  %s13132_s5 = inlined_call_operand.vmem [shape: f32[16,36], index: 5, kind: input, shape index: {}]   ;;  %s13133_s6 = inlined_call_operand.vmem [shape: f32[1,16], index: 6, kind: input, shape index: {}]   ;;  %s13134_s7 = inlined_call_operand.vmem [shape: bf16[128,128], index: 7, kind: input, shape index: {}]   ;;  %s13135_s8 = inlined_call_operand.vmem [shape: f32[1,128], index: 8, kind: input, shape index: {}]   ;;  %s13136_s9 = inlined_call_operand.hbm [shape: f32[2,1,128], index: 9, kind: output, shape index: {}]  }
   0x1   :  { %16 = vsyncpa [#allocation3 + $0x1], 0  ;;  %s10101_s30 = smov 0   ;;  %s10103_s10 = smov 0  }
   0x2   :  { %s10105_s11 = smov 0   ;;  %s10107_s12 = smov 0  }
   0x3 LB: > { %s10122_s13 = sadd.s32 4294967295, %s10044_s12   ;;  %s7442_s14 = sadd.s32 4294967294, %s10044_s12   ;;  %s10044_s12 = sphi %s10107_s12, %s13323_s12   ;;  %s10040_s11 = sphi %s10105_s11, %s13322_s11   ;;  %s10036_s10 = sphi %s10103_s10, %s13321_s10   ;;  %s10032_s30 = sphi %s10101_s30, %s13320_s30  }
   0x4   : > { %s10126_s15 = sadd.s32 1, %s10044_s12   ;;  %s223_s16 = sadd.s32 1, %s10040_s11 }
   0x5   : > { %s220_s17 = ssub.s32 %s10044_s12, %s10126_s15  ;;  %p233_p0 = scmp.ne.s32.totalorder %s10040_s11, %s10036_s10 }
   0x6   : > { %p221_p1 = scmp.eq.s32.totalorder %s220_s17, 0  ;;  %p234_p2 = scmp.eq.s32.totalorder %s10122_s13, 1 }
   0x7   : > { %p239_p3 = scmp.ne.s32.totalorder %s10036_s10, %s10032_s30  ;;  %p240_p4 = scmp.eq.s32.totalorder %s7442_s14, 1 }
   0x8   : > { %s10137_s18 = scalar_select %p221_p1, %s10040_s11, %s223_s16  }
   0x9   : > { %p10139_p5 = por %p234_p2, %p233_p0  ;;  %p10143_p6 = por %p240_p4, %p239_p3 }
   0xa   : > { %p7445_p7 = scmp.ge.s32.totalorder %s10044_s12, 1  ;;  %p290_p8 = scmp.lt.s32.totalorder %s10044_s12, 3 }
   0xc   : > { %p291_p9 = pnand %p7445_p7, %p290_p8 }
   0xe   : > { %294 = sbr.rel (%p291_p9) target bundleno = 3569 (0xdf1), region = 56 }
  0x15   : > { %v9686_v0 = vld [vmem:[%s13128_s1] sm:$0xff]   ;;  %v13139_v1 = vmov 0   ;;  %p325_p10 = scmp.lt.s32.totalorder %s10122_s13, 1  ;;  %v9687_v2 = vld [vmem:[%s13128_s1 + $0x8] sm:$0xff]   ;;  %v9688_v3 = vld [vmem:[%s13128_s1 + $0x10] sm:$0xff]   ;;  %vm603_vm1 = vcmask 1041408  }
  0x16   : > { %1797 = vmatprep.subr.bf16.mxu0 %v13139_v1  ;;  %v9689_v4 = vld [vmem:[%s13128_s1 + $0x18] sm:$0xff]   ;;  %v9690_v5 = vld [vmem:[%s13128_s1 + $0x20] sm:$0xff]   ;;  %v9691_v9 = vld [vmem:[%s13128_s1 + $0x28] sm:$0xff]   ;;  %vm393_vm0 = vsmask.f32 1280  ;;  %v10196_v21 = vrot.slane %v13139_v1, 1 }
  0x17   : > { %1798 = vmatpush1.bf16.msra.mxu0 %v9686_v0  ;;  %s326_s25 = scalar_select %p325_p10, %s10122_s13, 1  ;;  %v9692_v14 = vld [vmem:[%s13128_s1 + $0x30] sm:$0xff]   ;;  %vm604_vm2 = vmand %vm603_vm1, %vm393_vm0  ;;  %v9693_v19 = vld [vmem:[%s13128_s1 + $0x38] sm:$0xff]   ;;  %vm610_vm3 = vsmask.f32 7424  ;;  %vm801_vm4 = vcmask 1046528  }
  0x18   : > { %1799 = vmatprep.subr.bf16.mxu0 %v13139_v1  ;;  %v9694_v26 = vld [vmem:[%s13128_s1 + $0x40] sm:$0xff]   ;;  %v9695_v33 = vld [vmem:[%s13128_s1 + $0x48] sm:$0xff]   ;;  %v9696_v41 = vld [vmem:[%s13128_s1 + $0x50] sm:$0xff]   ;;  %vm606_vm5 = vcmask 1043456   ;;  %vm607_vm6 = vsmask.f32 3328 }
  0x19   : > { %s9642_s28 = smul.u32 328, %s326_s25  ;;  %v9697_v50 = vld [vmem:[%s13128_s1 + $0x58] sm:$0xff]   ;;  %v9698_v58 = vld [vmem:[%s13128_s1 + $0x60] sm:$0xff]   ;;  %vm10783_vm7 = vmand %vm606_vm5, %vm607_vm6  ;;  %vm979_vm8 = vcmask 1045504   ;;  %vm869_vm9 = vsmask.f32 6400 }
  0x1a   : > { %vm1046_vm10 = vsmask.f32 5376  ;;  %vm1151_vm11 = vcmask 1044480   ;;  %vm10048_vm12 = vmmov 0   ;;  %vm3002_vm13 = vcmask 1042432   ;;  %s323_s16 = sand.u32 1, %s10036_s10  }
  0x1b   : > { %1800 = vmatpush1.bf16.msra.mxu0 %v9687_v2  ;;  %s10170_s21 = scalar_lea.vmem %s13127_s0, %s9642_s28  ;;  %vm3283_vm14 = vcmask 556032   ;;  %vm11752_vm15 = vmand %vm979_vm8, %vm1046_vm10  ;;  %s8206_s22 = sshll.u32 %s10122_s13, 4 }
  0x1c   : > { %1801 = vmatprep.subr.bf16.mxu0 %v13139_v1  ;;  %v331_v6 = vld [vmem:[%s10170_s21] sm:$0xff]  ;;  %v332_v7 = vld [vmem:[%s10170_s21 + $0x8] sm:$0xff]  ;;  %v333_v15 = vld [vmem:[%s10170_s21 + $0x10] sm:$0xff]  ;;  %s324_s23 = scalar_lea.vmem [#allocation2], %s323_s16  ;;  %s13085_s27 = scalar_lea.hbm %s13136_s9, %s8206_s22 }
  0x1d   : > { %v372_v8 = vpack.c.bf16 %v332_v7, %v331_v6  ;;  %v334_v16 = vld [vmem:[%s10170_s21 + $0x18] sm:$0xff]  ;;  %v335_v23 = vld [vmem:[%s10170_s21 + $0x20] sm:$0xff]  ;;  %v336_v24 = vld [vmem:[%s10170_s21 + $0x28] sm:$0xff]  ;;  %s7387_s24 = sshll.u32 %s324_s23, 4  ;;  %s7375_s28 = scalar_lea.sflag [#allocation3], %s323_s16  ;;  %s13087_s24 = int_to_ptr.vmem [resolvable:$true] %s7387_s24 }
  0x1e   : > { %v373_v20 = vpack.c.bf16 %v334_v16, %v333_v15  ;;  %v337_v27 = vld [vmem:[%s10170_s21 + $0x30] sm:$0xff]  ;;  %v338_v28 = vld [vmem:[%s10170_s21 + $0x38] sm:$0xff]  ;;  %v374_v32 = vpack.c.bf16 %v336_v24, %v335_v23  ;;  %v339_v39 = vld [vmem:[%s10170_s21 + $0x40] sm:$0xff]  ;;  %s9982_s13 = scalar_lea.vmem %s13087_s24, 16  ;;  %s10050_s29 = smov [#allocation2]  }
  0x1f   : > { %1802 = vmatpush1.bf16.msra.mxu0 %v9688_v3  ;;  %v395_v10 = vshrl.u32 %v372_v8, 16  ;;  %v398_v11 = vshll.u32 %v372_v8, 16  ;;  %v375_v34 = vpack.c.bf16 %v338_v28, %v337_v27  ;;  %v340_v40 = vld [vmem:[%s10170_s21 + $0x48] sm:$0xff]  ;;  %v341_v48 = vld [vmem:[%s10170_s21 + $0x50] sm:$0xff]  ;;  %v342_v49 = vld [vmem:[%s10170_s21 + $0x58] sm:$0xff]  ;;  %p9983_p11 = scmp.ne.s32.totalorder %s13087_s24, %s9982_s13  ;;  %s9986_s14 = sshll.u32 %s10050_s29, 4  ;;  %s9987_s14 = int_to_ptr.vmem [resolvable:$false] %s9986_s14 }
  0x20   : > { %1803 = vmatprep.subr.bf16.mxu0 %v13139_v1  ;;  %v403_v29 = vshrl.u32 %v373_v20, 16  ;;  %v406_v30 = vshll.u32 %v373_v20, 16  ;;  %v412_v37 = vshrl.u32 %v374_v32, 16  ;;  %v415_v38 = vshll.u32 %v374_v32, 16  ;;  %v343_v56 = vld [vmem:[%s10170_s21 + $0x60] sm:$0xff]  ;;  %v344_v57 = vld [vmem:[%s10170_s21 + $0x68] sm:$0xff]  ;;  %p9989_p0 = scmp.lt.s32.totalorder %s13087_s24, %s9987_s14 }
  0x21   : > { %v397_v12 = vrot.slane %v395_v10, 6  ;;  %v400_v13 = vrot.slane %v398_v11, 7  ;;  %v421_v45 = vshrl.u32 %v375_v34, 16  ;;  %v424_v46 = vshll.u32 %v375_v34, 16  ;;  %v345_v60 = vld [vmem:[%s10170_s21 + $0x70] sm:$0xff]  ;;  %v346_v63 = vld [vmem:[%s10170_s21 + $0x78] sm:$0xff]  ;;  %p9984_p12 = pnand %p9983_p11, %p10139_p5 }
  0x22   : > { %v405_v35 = vrot.slane %v403_v29, 6  ;;  %v408_v36 = vrot.slane %v406_v30, 7  ;;  %v414_v43 = vrot.slane %v412_v37, 6  ;;  %v417_v44 = vrot.slane %v415_v38, 7  ;;  %v347_v0 = vld [vmem:[%s10170_s21 + $0x80] sm:$0xff]  ;;  %v350_v10 = vld [vmem:[%s10170_s21 + $0x98] sm:$0xff] }
  0x23   : > { %1804 = vmatpush1.bf16.msra.mxu0 %v9689_v4  ;;  %v401_v17 = vor.u32 %v400_v13, %v397_v12  ;;  %v376_v47 = vpack.c.bf16 %v340_v40, %v339_v39  ;;  %v423_v53 = vrot.slane %v421_v45, 6  ;;  %v426_v54 = vrot.slane %v424_v46, 7  ;;  %v348_v4 = vld [vmem:[%s10170_s21 + $0x88] sm:$0xff]  ;;  %v354_v27 = vld [vmem:[%s10170_s21 + $0xb8] sm:$0xff]  ;;  %p9985_p13 = pneg %p9984_p12  ;;  %s9988_s17 = scalar_lea.vmem %s9987_s14, 32 }
  0x24   : > { %1805 = vmatprep.subr.bf16.mxu0 %v13139_v1  ;;  %v409_v42 = vor.u32 %v408_v36, %v405_v35  ;;  %v418_v52 = vor.u32 %v417_v44, %v414_v43  ;;  %v377_v59 = vpack.c.bf16 %v342_v49, %v341_v48  ;;  %v378_v8 = vpack.c.bf16 %v344_v57, %v343_v56  ;;  %v9699_v11 = vld [vmem:[%s13128_s1 + $0x68] sm:$0xff]   ;;  %v9700_v36 = vld [vmem:[%s13128_s1 + $0x70] sm:$0xff]   ;;  %v355_v44 = vld [vmem:[%s10170_s21 + $0xc0] sm:$0xff]  ;;  %p9990_p1 = scmp.lt.s32.totalorder %s9988_s17, %s9982_s13 }
  0x25   : > { %v10190_v18 = vsel %vm604_vm2, 0, %v401_v17  ;;  %v430_v55 = vshrl.u32 %v376_v47, 16  ;;  %v433_v62 = vshll.u32 %v376_v47, 16  ;;  %v10254_v6 = vor.u32 %v426_v54, %v423_v53  ;;  %v352_v20 = vld [vmem:[%s10170_s21 + $0xa8] sm:$0xff] }
  0x26   : > { %v13138_v22 = vshll.u32 %v10190_v18, 16  ;;  %v10231_v51 = vsel %vm393_vm0, %v401_v17, %v409_v42  ;;  %v13137_v2 = vshrl.u32 %v10190_v18, 16  ;;  %v10247_v3 = vsel %vm393_vm0, %v409_v42, %v418_v52  ;;  %v356_v45 = vld [vmem:[%s10170_s21 + $0xc8] sm:$0xff]  ;;  %p9991_p2 = por %p9990_p1, %p9989_p0 }
  0x27   : > { %1806 = vmatpush1.bf16.msra.mxu0 %v9690_v5  ;;  %13205 = vst [vmem:[#allocation5_spill] sm:$0xff] %v10231_v51  ;;  %v10241_v61 = vshll.u32 %v10231_v51, 16  ;;  %13206 = vst [vmem:[#allocation6_spill] sm:$0xff] %v10247_v3  ;;  %v10252_v5 = vshrl.u32 %v10231_v51, 16  ;;  %v432_v7 = vrot.slane %v430_v55, 6  ;;  %v439_v12 = vshrl.u32 %v377_v59, 16 }
  0x28   : > { %1807 = vmatprep.subr.bf16.mxu0 %v13139_v1  ;;  %v10204_v25 = vrot.slane %v13138_v22, 1  ;;  %v442_v13 = vshll.u32 %v377_v59, 16  ;;  %v10263_v16 = vshll.u32 %v10247_v3, 16  ;;  %v380_v17 = vpack.c.bf16 %v348_v4, %v347_v0  ;;  %v357_v59 = vld [vmem:[%s10170_s21 + $0xd0] sm:$0xff]  ;;  %p9992_p3 = pnand %p9991_p2, %p9985_p13 }
  0x29   : > { %v629_v15 = vrot.slane %v10241_v61, 1  ;;  %v10268_v23 = vshrl.u32 %v10247_v3, 16  ;;  %v435_v24 = vrot.slane %v433_v62, 7  ;;  %v10275_v28 = vsel %vm393_vm0, %v418_v52, %v10254_v6 }
  0x2a   : > { %v622_v31 = vsel %vm610_vm3, %v10196_v21, %v10204_v25  ;;  %13207 = vst [vmem:[#allocation7_spill] sm:$0xff] %v10275_v28  ;;  %v448_v29 = vshrl.u32 %v378_v8, 16  ;;  %v451_v30 = vshll.u32 %v378_v8, 16  ;;  %v441_v32 = vrot.slane %v439_v12, 6 }
  0x2b   : > { %1808 = vmatpush1.bf16.msra.mxu0 %v9691_v9  ;;  %1829 = vmatprep.mubr.bf16.mxu0 %v622_v31  ;;  %v349_v9 = vld [vmem:[%s10170_s21 + $0x90] sm:$0xff]  ;;  %v637_v37 = vrot.slane %v10263_v16, 1  ;;  %v466_v38 = vshrl.u32 %v380_v17, 16  ;;  %v469_v39 = vshll.u32 %v380_v17, 16  ;;  %v10285_v42 = vshll.u32 %v10275_v28, 16 }
  0x2c   : > { %1809 = vmatprep.subr.bf16.mxu0 %v13139_v1  ;;  %v381_v31 = vpack.c.bf16 %v350_v10, %v349_v9  ;;  %v450_v46 = vrot.slane %v448_v29, 6  ;;  %v453_v47 = vrot.slane %v451_v30, 7  ;;  %v436_v52 = vor.u32 %v435_v24, %v432_v7 }
  0x2d   : > { %v468_v55 = vrot.slane %v466_v38, 6  ;;  %v471_v56 = vrot.slane %v469_v39, 7  ;;  %v384_v9 = vpack.c.bf16 %v356_v45, %v355_v44  ;;  %v645_v10 = vrot.slane %v10285_v42, 1 }
  0x2e   : > { %v475_v48 = vshrl.u32 %v381_v31, 16  ;;  %v478_v49 = vshll.u32 %v381_v31, 16  ;;  %v454_v0 = vor.u32 %v453_v47, %v450_v46  ;;  %v359_v46 = vld [vmem:[%s10170_s21 + $0xe0] sm:$0xff]  ;;  %v360_v47 = vld [vmem:[%s10170_s21 + $0xe8] sm:$0xff]  ;;  %vm3773_vm2 = vsmask.f32 2304 }
  0x2f   : > { %1810 = vmatpush1.bf16.msra.mxu0 %v9692_v14  ;;  %v379_v14 = vpack.c.bf16 %v346_v63, %v345_v60  ;;  %v358_v60 = vld [vmem:[%s10170_s21 + $0xd8] sm:$0xff] }
  0x30   : > { %1811 = vmatprep.subr.bf16.mxu0 %v13139_v1  ;;  %v477_v4 = vrot.slane %v475_v48, 6  ;;  %v480_v8 = vrot.slane %v478_v49, 7  ;;  %v385_v12 = vpack.c.bf16 %v358_v60, %v357_v59 }
  0x31   : > { %v457_v34 = vshrl.u32 %v379_v14, 16  ;;  %v460_v35 = vshll.u32 %v379_v14, 16  ;;  %v10308_v14 = vsel %vm393_vm0, %v10254_v6, %v436_v52  ;;  %v633_v6 = vor.u32 %v10252_v5, %v629_v15 }
  0x32   : > { %13208 = vst [vmem:[#allocation8_spill] sm:$0xff] %v10308_v14  ;;  %v481_v31 = vor.u32 %v480_v8, %v477_v4  ;;  %v10325_v38 = vshll.u32 %v10308_v14, 16  ;;  %v10328_v39 = vshrl.u32 %v10308_v14, 16  ;;  %v386_v8 = vpack.c.bf16 %v360_v47, %v359_v46 }
  0x33   : > { %1812 = vmatpush1.bf16.msra.mxu0 %v9693_v19  ;;  %v351_v19 = vld [vmem:[%s10170_s21 + $0xa0] sm:$0xff]  ;;  %v459_v53 = vrot.slane %v457_v34, 6  ;;  %v462_v54 = vrot.slane %v460_v35, 7  ;;  %v511_v34 = vshrl.u32 %v385_v12, 16  ;;  %v514_v35 = vshll.u32 %v385_v12, 16 }
  0x34   : > { %1813 = vmatprep.subr.bf16.mxu0 %v13139_v1  ;;  %v382_v40 = vpack.c.bf16 %v352_v20, %v351_v19 }
  0x35   : > { %v463_v24 = vor.u32 %v462_v54, %v459_v53  ;;  %v653_v53 = vrot.slane %v10325_v38, 1  ;;  %v9704_v54 = vld [vmem:[%s13128_s1 + $0x90] sm:$0xff]  }
  0x36   : > { %v484_v57 = vshrl.u32 %v382_v40, 16 }
  0x37   : > { %1814 = vmatpush1.bf16.msra.mxu0 %v9694_v26  ;;  %v353_v26 = vld [vmem:[%s10170_s21 + $0xb0] sm:$0xff] }
  0x38   : > { %1815 = vmatprep.subr.bf16.mxu0 %v13139_v1  ;;  %v383_v43 = vpack.c.bf16 %v354_v27, %v353_v26  ;;  %v486_v19 = vrot.slane %v484_v57, 6  ;;  %v472_v26 = vor.u32 %v471_v56, %v468_v55 }
  0x3a   : > { %v493_v62 = vshrl.u32 %v383_v43, 16  ;;  %v496_v63 = vshll.u32 %v383_v43, 16  ;;  %v10337_v43 = vsel %vm393_vm0, %v454_v0, %v463_v24  ;;  %v10340_v44 = vsel %vm393_vm0, %v463_v24, %v472_v26 }
  0x3b   : > { %1816 = vmatpush1.bf16.msra.mxu0 %v9695_v33  ;;  %v444_v33 = vrot.slane %v442_v13, 7  ;;  %v9702_v13 = vld [vmem:[%s13128_s1 + $0x80] sm:$0xff]   ;;  %13211 = vst [vmem:[#allocation11_spill] sm:$0xff] %v10337_v43  ;;  %13212 = vst [vmem:[#allocation12_spill] sm:$0xff] %v10340_v44  ;;  %v10346_v48 = vsel %vm393_vm0, %v472_v26, %v481_v31  ;;  %v10353_v55 = vshll.u32 %v10337_v43, 16  ;;  %v10356_v56 = vshll.u32 %v10340_v44, 16 }
  0x3c   : > { %1817 = vmatprep.subr.bf16.mxu0 %v13139_v1  ;;  %v495_v27 = vrot.slane %v493_v62, 6  ;;  %v498_v29 = vrot.slane %v496_v63, 7  ;;  %13213 = vst [vmem:[#allocation13_spill] sm:$0xff] %v10346_v48  ;;  %v10368_v60 = vshll.u32 %v10346_v48, 16  ;;  %v10394_v26 = vshrl.u32 %v10340_v44, 16 }
  0x3e   : > { %v499_v45 = vor.u32 %v498_v29, %v495_v27  ;;  %13215 = vst [vmem:[#allocation15_spill] sm:$0xff] %v10368_v60  ;;  %v641_v29 = vor.u32 %v10268_v23, %v637_v37 }
  0x3f   : > { %1818 = vmatpush1.bf16.msra.mxu0 %v9696_v41  ;;  %v625_v41 = vor.u32 %v13137_v2, %v10204_v25  ;;  %v445_v25 = vor.u32 %v444_v33, %v441_v32  ;;  %v502_v32 = vshrl.u32 %v384_v9, 16  ;;  %v505_v33 = vshll.u32 %v384_v9, 16  ;;  %v363_v2 = vld [vmem:[%s10170_s21 + $0x100] sm:$0xff] }
  0x40   : > { %1819 = vmatprep.subr.bf16.mxu0 %v13139_v1  ;;  %v10380_v9 = vshrl.u32 %v10337_v43, 16 }
  0x41   : > { %v630_v7 = vsel %vm610_vm3, %v625_v41, %v629_v15  ;;  %v10311_v17 = vsel %vm393_vm0, %v436_v52, %v445_v25  ;;  %v10315_v30 = vsel %vm393_vm0, %v445_v25, %v454_v0  ;;  %v504_v49 = vrot.slane %v502_v32, 6 }
  0x42   : > { %13209 = vst [vmem:[#allocation9_spill] sm:$0xff] %v10311_v17  ;;  %13210 = vst [vmem:[#allocation10_spill] sm:$0xff] %v10315_v30  ;;  %v10334_v15 = vshll.u32 %v10315_v30, 16  ;;  %v513_v52 = vrot.slane %v511_v34, 6  ;;  %v516_v25 = vrot.slane %v514_v35, 7  ;;  %v10365_v59 = vshrl.u32 %v10311_v17, 16 }
  0x43   : > { %1820 = vmatpush1.bf16.msra.mxu0 %v9697_v50  ;;  %v9701_v50 = vld [vmem:[%s13128_s1 + $0x78] sm:$0xff]   ;;  %v10377_v4 = vshrl.u32 %v10315_v30, 16  ;;  %v10404_v32 = vshrl.u32 %v10346_v48, 16  ;;  %v361_v34 = vld [vmem:[%s10170_s21 + $0xf0] sm:$0xff] }
  0x44   : > { %1821 = vmatprep.subr.bf16.mxu0 %v13139_v1  ;;  %v669_v0 = vrot.slane %v10334_v15, 1  ;;  %v362_v35 = vld [vmem:[%s10170_s21 + $0xf8] sm:$0xff] }
  0x45   : > { %13218 = vst [vmem:[#allocation18_spill] sm:$0xff] %v10404_v32 }
  0x47   : > { %1822 = vmatpush1.bf16.msra.mxu0 %v9698_v58  ;;  %v487_v58 = vshll.u32 %v382_v40, 16  ;;  %v10331_v40 = vshll.u32 %v10311_v17, 16 }
  0x48   : > { %1823 = vmatprep.subr.bf16.mxu0 %v13139_v1 }
  0x49   : > { %v489_v20 = vrot.slane %v487_v58, 7  ;;  %v638_v58 = vsel %vm610_vm3, %v633_v6, %v637_v37  ;;  %v661_v63 = vrot.slane %v10331_v40, 1  ;;  %v520_v6 = vshrl.u32 %v386_v8, 16 }
  0x4b   : > { %1824 = vmatpush1.bf16.msra.mxu0 %v9699_v11  ;;  %v10301_v11 = vshrl.u32 %v10275_v28, 16  ;;  %v490_v41 = vor.u32 %v489_v20, %v486_v19  ;;  %v9705_v19 = vld [vmem:[%s13128_s1 + $0x98] sm:$0xff]   ;;  %v677_v20 = vrot.slane %v10353_v55, 1 }
  0x4c   : > { %1825 = vmatprep.subr.bf16.mxu0 %v13139_v1 }
  0x4d   : > { %v10359_v57 = vsel %vm393_vm0, %v481_v31, %v490_v41  ;;  %v10371_v62 = vsel %vm393_vm0, %v490_v41, %v499_v45 }
  0x4e   : > { %13214 = vst [vmem:[#allocation14_spill] sm:$0xff] %v10359_v57  ;;  %13216 = vst [vmem:[#allocation16_spill] sm:$0xff] %v10371_v62  ;;  %v10397_v27 = vshll.u32 %v10371_v62, 16  ;;  %v10420_v46 = vshrl.u32 %v10371_v62, 16 }
  0x4f   : > { %1826 = vmatpush1.bf16.msra.mxu0 %v9700_v36  ;;  %v9703_v36 = vld [vmem:[%s13128_s1 + $0x88] sm:$0xff]  }
  0x50   : > { %1827 = vmatprep.subr.bf16.mxu0 %v13139_v1 }
  0x53   : > { %1828 = vmatpush1.bf16.msra.mxu0 %v9701_v50  ;;  %v507_v50 = vrot.slane %v505_v33, 7  ;;  %v10408_v33 = vshrl.u32 %v10359_v57, 16 }
  0x54   : > { %1997 = vmatprep.subr.bf16.mxu0 %v13139_v1 }
  0x55   : > { %v508_v12 = vor.u32 %v507_v50, %v504_v49  ;;  %13219 = vst [vmem:[#allocation19_spill] sm:$0xff] %v10408_v33  ;;  %v523_v50 = vshll.u32 %v386_v8, 16  ;;  %v9707_v8 = vld [vmem:[%s13128_s1 + $0xa8] sm:$0xff]   ;;  %v649_v49 = vor.u32 %v10301_v11, %v645_v10 }
  0x56   : > { %1830 = vmatmul.mubr.bf16.vlgmr.msra.gmra.mrb[0].mxu0 %v13139_v1 }
  0x57   : > { %1837 = vmatprep.mubr.bf16.mxu0 %v630_v7  ;;  %1998 = vmatpush1.bf16.msra.mxu0 %v9702_v13  ;;  %v10383_v7 = vshll.u32 %v10359_v57, 16  ;;  %v10385_v13 = vor.u32 %v516_v25, %v513_v52  ;;  %v10417_v41 = vsel %vm393_vm0, %v499_v45, %v508_v12  ;;  %v646_v52 = vsel %vm610_vm3, %v641_v29, %v645_v10  ;;  %v364_v29 = vld [vmem:[%s10170_s21 + $0x108] sm:$0xff]  ;;  %v9709_v10 = vld [vmem:[%s13128_s1 + $0xb8] sm:$0xff]  }
  0x58   : > { %1999 = vmatprep.subr.bf16.mxu0 %v13139_v1  ;;  %13220 = vst [vmem:[#allocation20_spill] sm:$0xff] %v10417_v41  ;;  %v10432_v45 = vshll.u32 %v10417_v41, 16  ;;  %v10435_v25 = vshrl.u32 %v10417_v41, 16  ;;  %v388_v37 = vpack.c.bf16 %v364_v29, %v363_v2 }
  0x59   : > { %13217 = vst [vmem:[#allocation17_spill] sm:$0xff] %v10383_v7  ;;  %v10424_v47 = vsel %vm393_vm0, %v508_v12, %v10385_v13  ;;  %v387_v12 = vpack.c.bf16 %v362_v35, %v361_v34  ;;  %v665_v34 = vor.u32 %v10365_v59, %v661_v63 }
  0x5a   : > { %13221 = vst [vmem:[#allocation21_spill] sm:$0xff] %v10424_v47  ;;  %v10447_v22 = vshrl.u32 %v10424_v47, 16  ;;  %v541_v2 = vshll.u32 %v388_v37, 16 }
  0x5b   : > { %2000 = vmatpush1.bf16.msra.mxu0 %v9703_v36  ;;  %v9706_v36 = vld [vmem:[%s13128_s1 + $0xa0] sm:$0xff]   ;;  %v529_v35 = vshrl.u32 %v387_v12, 16  ;;  %v532_v31 = vshll.u32 %v387_v12, 16 }
  0x5c   : > { %2001 = vmatprep.subr.bf16.mxu0 %v13139_v1  ;;  %v9710_v12 = vld [vmem:[%s13128_s1 + $0xc0] sm:$0xff]  }
  0x5e   : > { %1838 = vmatmul.mubr.bf16.gmra.mrb[4].mxu0 %v10190_v18 }
  0x5f   : > { %1845 = vmatprep.mubr.bf16.mxu0 %v638_v58  ;;  %2002 = vmatpush1.bf16.msra.mxu0 %v9704_v54  ;;  %v10438_v54 = vshll.u32 %v10424_v47, 16  ;;  %v522_v58 = vrot.slane %v520_v6, 6  ;;  %v9708_v6 = vld [vmem:[%s13128_s1 + $0xb0] sm:$0xff]  }
  0x60   : > { %2003 = vmatprep.subr.bf16.mxu0 %v13139_v1 }
  0x63   : > { %2004 = vmatpush1.bf16.msra.mxu0 %v9705_v19  ;;  %v525_v19 = vrot.slane %v523_v50, 7 }
  0x64   : > { %2005 = vmatprep.subr.bf16.mxu0 %v13139_v1 }
  0x66   : > { %1846 = vmatmul.mubr.bf16.gmra.mrb[8].mxu0 %v10231_v51 }
  0x67   : > { %1853 = vmatprep.mubr.bf16.mxu0 %v646_v52  ;;  %2006 = vmatpush1.bf16.msra.mxu0 %v9706_v36  ;;  %v654_v36 = vsel %vm610_vm3, %v649_v49, %v653_v53  ;;  %v538_v52 = vshrl.u32 %v388_v37, 16  ;;  %v657_v49 = vor.u32 %v10328_v39, %v653_v53  ;;  %v9711_v53 = vld [vmem:[%s13128_s1 + $0xc8] sm:$0xff]  }
  0x68   : > { %2007 = vmatprep.subr.bf16.mxu0 %v13139_v1 }
  0x69   : > { %v662_v37 = vsel %vm610_vm3, %v657_v49, %v661_v63  ;;  %v540_v50 = vrot.slane %v538_v52, 6  ;;  %v543_v49 = vrot.slane %v541_v2, 7  ;;  %v670_v52 = vsel %vm610_vm3, %v665_v34, %v669_v0  ;;  %v9713_v63 = vld [vmem:[%s13128_s1 + $0xd8] sm:$0xff]   ;;  %v9714_v34 = vld [vmem:[%s13128_s1 + $0xe0] sm:$0xff]  }
  0x6b   : > { %2008 = vmatpush1.bf16.msra.mxu0 %v9707_v8  ;;  %v10466_v8 = vor.u32 %v525_v19, %v522_v58  ;;  %v531_v58 = vrot.slane %v529_v35, 6  ;;  %v534_v19 = vrot.slane %v532_v31, 7  ;;  %v9712_v31 = vld [vmem:[%s13128_s1 + $0xd0] sm:$0xff]  }
  0x6c   : > { %2009 = vmatprep.subr.bf16.mxu0 %v13139_v1 }
  0x6d   : > { %v10478_v29 = vsel %vm393_vm0, %v10385_v13, %v10466_v8 }
  0x6e   : > { %1854 = vmatmul.mubr.bf16.gmra.mrb[12].mxu0 %v10247_v3  ;;  %13222 = vst [vmem:[#allocation22_spill] sm:$0xff] %v10478_v29  ;;  %v10494_v13 = vshrl.u32 %v10478_v29, 16 }
  0x6f   : > { %1861 = vmatprep.mubr.bf16.mxu0 %v654_v36  ;;  %2010 = vmatpush1.bf16.msra.mxu0 %v9708_v6  ;;  %v365_v6 = vld [vmem:[%s10170_s21 + $0x110] sm:$0xff]  ;;  %v366_v36 = vld [vmem:[%s10170_s21 + $0x118] sm:$0xff] }
  0x70   : > { %2011 = vmatprep.subr.bf16.mxu0 %v13139_v1  ;;  %13224 = vst [vmem:[#allocation24_spill] sm:$0xff] %v10494_v13  ;;  %v389_v35 = vpack.c.bf16 %v366_v36, %v365_v6  ;;  %v367_v6 = vld [vmem:[%s10170_s21 + $0x120] sm:$0xff]  ;;  %v368_v36 = vld [vmem:[%s10170_s21 + $0x128] sm:$0xff] }
  0x71   : > { %v390_v24 = vpack.c.bf16 %v368_v36, %v367_v6 }
  0x72   : > { %v547_v2 = vshrl.u32 %v389_v35, 16 }
  0x73   : > { %2012 = vmatpush1.bf16.msra.mxu0 %v9709_v10  ;;  %v10491_v10 = vshll.u32 %v10478_v29, 16 }
  0x74   : > { %2013 = vmatprep.subr.bf16.mxu0 %v13139_v1 }
  0x75   : > { %13223 = vst [vmem:[#allocation23_spill] sm:$0xff] %v10491_v10 }
  0x76   : > { %1862 = vmatmul.mubr.bf16.gmra.mrb[16].mxu0 %v10275_v28 }
  0x77   : > { %1869 = vmatprep.mubr.bf16.mxu0 %v662_v37  ;;  %2014 = vmatpush1.bf16.msra.mxu0 %v9710_v12  ;;  %v550_v12 = vshll.u32 %v389_v35, 16  ;;  %v673_v37 = vor.u32 %v10377_v4, %v669_v0  ;;  %v549_v0 = vrot.slane %v547_v2, 6  ;;  %v13225_v2 = vrot.slane %v10356_v56, 1 }
  0x78   : > { %2015 = vmatprep.subr.bf16.mxu0 %v13139_v1 }
  0x79   : > { %v552_v35 = vrot.slane %v550_v12, 7 }
  0x7b   : > { %2016 = vmatpush1.bf16.msra.mxu0 %v9711_v53  ;;  %v678_v53 = vsel %vm610_vm3, %v673_v37, %v677_v20  ;;  %v9716_v37 = vld [vmem:[%s13128_s1 + $0xf0] sm:$0xff]  }
  0x7c   : > { %2017 = vmatprep.subr.bf16.mxu0 %v13139_v1 }
  0x7e   : > { %1870 = vmatmul.mubr.bf16.gmra.mrb[20].mxu0 %v10308_v14 }
  0x7f   : > { %1877 = vmatprep.mubr.bf16.mxu0 %v670_v52  ;;  %2018 = vmatpush1.bf16.msra.mxu0 %v9712_v31  ;;  %v9715_v52 = vld [vmem:[%s13128_s1 + $0xe8] sm:$0xff]   ;;  %v13226_v31 = vmov %v13225_v2 }
  0x80   : > { %2019 = vmatprep.subr.bf16.mxu0 %v13139_v1  ;;  %v689_v6 = vor.u32 %v10394_v26, %v13226_v31  ;;  %v544_v31 = vor.u32 %v543_v49, %v540_v50 }
  0x83   : > { %2020 = vmatpush1.bf16.msra.mxu0 %v9713_v63  ;;  %v681_v63 = vor.u32 %v10380_v9, %v677_v20  ;;  %v9717_v20 = vld [vmem:[%s13128_s1 + $0xf8] sm:$0xff]  }
  0x84   : > { %2021 = vmatprep.subr.bf16.mxu0 %v13139_v1 }
  0x85   : > { %v686_v12 = vsel %vm610_vm3, %v681_v63, %v13225_v2 }
  0x86   : > { %1878 = vmatmul.mubr.bf16.gmra.mrb[24].mxu0 %v10311_v17 }
  0x87   : > { %1885 = vmatprep.mubr.bf16.mxu0 %v678_v53  ;;  %2022 = vmatpush1.bf16.msra.mxu0 %v9714_v34  ;;  %v556_v34 = vshrl.u32 %v390_v24, 16  ;;  %v535_v53 = vor.u32 %v534_v19, %v531_v58 }
  0x88   : > { %2023 = vmatprep.subr.bf16.mxu0 %v13139_v1 }
  0x89   : > { %v10550_v36 = vsel %vm393_vm0, %v10466_v8, %v535_v53  ;;  %v10567_v2 = vsel %vm393_vm0, %v535_v53, %v544_v31 }
  0x8a   : > { %13227 = vst [vmem:[#allocation25_spill] sm:$0xff] %v10550_v36  ;;  %v10558_v58 = vshll.u32 %v10550_v36, 16  ;;  %v10561_v19 = vshrl.u32 %v10550_v36, 16  ;;  %v10577_v50 = vshrl.u32 %v10567_v2, 16 }
  0x8b   : > { %2024 = vmatpush1.bf16.msra.mxu0 %v9715_v52  ;;  %v13228_v52 = vrot.slane %v10368_v60, 1  ;;  %v559_v60 = vshll.u32 %v390_v24, 16 }
  0x8c   : > { %2025 = vmatprep.subr.bf16.mxu0 %v13139_v1  ;;  %13229 = vst [vmem:[#allocation26_spill] sm:$0xff] %v10558_v58  ;;  %13230 = vst [vmem:[#allocation27_spill] sm:$0xff] %v10561_v19 }
  0x8d   : > { %v694_v63 = vsel %vm610_vm3, %v689_v6, %v13228_v52  ;;  %v13231_v8 = vmov %v13228_v52  ;;  %v10574_v6 = vshll.u32 %v10567_v2, 16  ;;  %13234 = vst [vmem:[#allocation29_spill] sm:$0xff] %v10577_v50  ;;  %v13236_v52 = vrot.slane %v10397_v27, 1 }
  0x8e   : > { %1886 = vmatmul.mubr.bf16.gmra.mrb[28].mxu0 %v10315_v30 }
  0x8f   : > { %1893 = vmatprep.mubr.bf16.mxu0 %v686_v12  ;;  %2026 = vmatpush1.bf16.msra.mxu0 %v9716_v37  ;;  %v697_v37 = vor.u32 %v10404_v32, %v13231_v8  ;;  %v13232_v12 = vrot.slane %v10383_v7, 1  ;;  %13233 = vst [vmem:[#allocation28_spill] sm:$0xff] %v10574_v6  ;;  %v741_v8 = vrot.slane %v10558_v58, 1  ;;  %v370_v32 = vld [vmem:[%s10170_s21 + $0x138] sm:$0xff] }
  0x90   : > { %2027 = vmatprep.subr.bf16.mxu0 %v13139_v1 }
  0x91   : > { %v13235_v49 = vmov %v13232_v12 }
  0x92   : > { %v705_v53 = vor.u32 %v10408_v33, %v13235_v49  ;;  %v13238_v33 = vrot.slane %v10432_v45, 1 }
  0x93   : > { %2028 = vmatpush1.bf16.msra.mxu0 %v9717_v20  ;;  %v702_v20 = vsel %vm610_vm3, %v697_v37, %v13232_v12  ;;  %v558_v37 = vrot.slane %v556_v34, 6  ;;  %v749_v12 = vrot.slane %v10574_v6, 1 }
  0x94   : > { %2197 = vmatprep.subr.bf16.mxu0 %v13139_v1  ;;  %v553_v1 = vor.u32 %v552_v35, %v549_v0  ;;  %v561_v0 = vrot.slane %v559_v60, 7  ;;  %v13240_v24 = vmov %v13238_v33 }
  0x95   : > { %v721_v35 = vor.u32 %v10435_v25, %v13240_v24 }
  0x96   : > { %1894 = vmatmul.mubr.bf16.gmra.mrb[32].mxu0 %v10337_v43  ;;  %v10592_v49 = vsel %vm393_vm0, %v544_v31, %v553_v1  ;;  %v13241_v31 = vrot.slane %v10438_v54, 1  ;;  %v562_v6 = vor.u32 %v561_v0, %v558_v37 }
  0x97   : > { %1901 = vmatprep.mubr.bf16.mxu0 %v694_v63  ;;  %v710_v63 = vsel %vm610_vm3, %v705_v53, %v13236_v52  ;;  %v10601_v34 = vshll.u32 %v10592_v49, 16 }
  0x98   : > { %v13243_v60 = vmov %v13241_v31  ;;  %v10617_v58 = vsel %vm393_vm0, %v553_v1, %v562_v6 }
  0x99   : > { %13239 = vst [vmem:[#allocation30_spill] sm:$0xff] %v10601_v34  ;;  %v10624_v24 = vshll.u32 %v10617_v58, 16 }
  0x9b   : > { %13245 = vst [vmem:[#allocation32_spill] sm:$0xff] %v10624_v24 }
  0x9e   : > { %1902 = vmatmul.mubr.bf16.gmra.mrb[36].mxu0 %v10340_v44 }
  0x9f   : > { %1909 = vmatprep.mubr.bf16.mxu0 %v702_v20  ;;  %v13237_v20 = vmov %v13236_v52  ;;  %v369_v52 = vld [vmem:[%s10170_s21 + $0x130] sm:$0xff] }
  0xa0   : > { %v713_v7 = vor.u32 %v10420_v46, %v13237_v20  ;;  %v726_v20 = vsel %vm610_vm3, %v721_v35, %v13241_v31 }
  0xa2   : > { %v718_v53 = vsel %vm610_vm3, %v713_v7, %v13238_v33  ;;  %v10611_v7 = vshrl.u32 %v10592_v49, 16 }
  0xa4   : > { %13242 = vst [vmem:[#allocation31_spill] sm:$0xff] %v10611_v7 }
  0xa6   : > { %1910 = vmatmul.mubr.bf16.gmra.mrb[40].mxu0 %v10346_v48 }
  0xa7   : > { %1917 = vmatprep.mubr.bf16.mxu0 %v710_v63  ;;  %v391_v63 = vpack.c.bf16 %v370_v32, %v369_v52  ;;  %v13244_v32 = vrot.slane %v10491_v10, 1 }
  0xa9   : > { %v565_v33 = vshrl.u32 %v391_v63, 16  ;;  %v568_v35 = vshll.u32 %v391_v63, 16  ;;  %v13246_v37 = vmov %v13244_v32  ;;  %v757_v63 = vrot.slane %v10601_v34, 1 }
  0xaa   : > { %v737_v0 = vor.u32 %v10494_v13, %v13246_v37  ;;  %v753_v37 = vor.u32 %v10577_v50, %v749_v12 }
  0xab   : > { %v567_v1 = vrot.slane %v565_v33, 6 }
  0xac   : > { %v742_v31 = vsel %vm610_vm3, %v737_v0, %v741_v8 }
  0xae   : > { %1918 = vmatmul.mubr.bf16.gmra.mrb[44].mxu0 %v10359_v57 }
  0xaf   : > { %1925 = vmatprep.mubr.bf16.mxu0 %v718_v53  ;;  %v729_v53 = vor.u32 %v10447_v22, %v13243_v60  ;;  %v745_v60 = vor.u32 %v10561_v19, %v741_v8  ;;  %v10646_v8 = vshrl.u32 %v10617_v58, 16 }
  0xb1   : > { %v734_v52 = vsel %vm610_vm3, %v729_v53, %v13244_v32  ;;  %v750_v53 = vsel %vm610_vm3, %v745_v60, %v749_v12  ;;  %v765_v32 = vrot.slane %v10624_v24, 1  ;;  %13247 = vst [vmem:[#allocation33_spill] sm:$0xff] %v10646_v8 }
  0xb3   : > { %v769_v12 = vor.u32 %v10646_v8, %v765_v32 }
  0xb6   : > { %1926 = vmatmul.mubr.bf16.gmra.mrb[48].mxu0 %v10371_v62 }
  0xb7   : > { %1933 = vmatprep.mubr.bf16.mxu0 %v726_v20  ;;  %v570_v20 = vrot.slane %v568_v35, 7  ;;  %v758_v35 = vsel %vm610_vm3, %v753_v37, %v757_v63  ;;  %v805_v37 = vrot.slane %v10231_v51, 1 }
  0xbe   : > { %1934 = vmatmul.mubr.bf16.gmra.mrb[52].mxu0 %v10417_v41 }
  0xbf   : > { %1941 = vmatprep.mubr.bf16.mxu0 %v734_v52  ;;  %v10636_v52 = vor.u32 %v570_v20, %v567_v1 }
  0xc1   : > { %v10641_v33 = vsel %vm393_vm0, %v562_v6, %v10636_v52 }
  0xc2   : > { %v10649_v0 = vshll.u32 %v10641_v33, 16  ;;  %v10659_v60 = vshrl.u32 %v10641_v33, 16 }
  0xc4   : > { %13248 = vst [vmem:[#allocation34_spill] sm:$0xff] %v10649_v0  ;;  %v773_v6 = vrot.slane %v10649_v0, 1  ;;  %13249 = vst [vmem:[#allocation35_spill] sm:$0xff] %v10659_v60  ;;  %v9720_v0 = vld [vmem:[%s13128_s1 + $0x110] sm:$0xff]  }
  0xc6   : > { %1942 = vmatmul.mubr.bf16.gmra.mrb[56].mxu0 %v10424_v47  ;;  %v774_v20 = vsel %vm610_vm3, %v769_v12, %v773_v6  ;;  %v809_v12 = vrot.slane %v10275_v28, 1 }
  0xc7   : > { %1949 = vmatprep.mubr.bf16.mxu0 %v742_v31  ;;  %v761_v31 = vor.u32 %v10611_v7, %v757_v63  ;;  %v803_v63 = vrot.slane %v10190_v18, 1 }
  0xc9   : > { %v766_v1 = vsel %vm610_vm3, %v761_v31, %v765_v32  ;;  %v806_v32 = vsel %vm801_vm4, %v803_v63, %v805_v37  ;;  %v9718_v31 = vld [vmem:[%s13128_s1 + $0x100] sm:$0xff]  }
  0xce   : > { %1950 = vmatmul.mubr.bf16.gmra.mrb[60].mxu0 %v10478_v29 }
  0xcf   : > { %1957 = vmatprep.mubr.bf16.mxu0 %v750_v53  ;;  %v777_v53 = vor.u32 %v10659_v60, %v773_v6 }
  0xd6   : > { %1958 = vmatmul.mubr.bf16.gmra.mrb[64].mxu0 %v10550_v36 }
  0xd7   : > { %1965 = vmatprep.mubr.bf16.mxu0 %v758_v35  ;;  %v807_v35 = vrot.slane %v10247_v3, 1 }
  0xd9   : > { %v808_v6 = vsel %vm801_vm4, %v805_v37, %v807_v35  ;;  %v9721_v37 = vld [vmem:[%s13128_s1 + $0x118] sm:$0xff]  }
  0xde   : > { %1966 = vmatmul.mubr.bf16.gmra.mrb[68].mxu0 %v10567_v2 }
  0xdf   : > { %1973 = vmatprep.mubr.bf16.mxu0 %v766_v1  ;;  %v804_v1 = vsel %vm801_vm4, %v10196_v21, %v803_v63  ;;  %v810_v21 = vsel %vm801_vm4, %v807_v35, %v809_v12  ;;  %v811_v63 = vrot.slane %v10308_v14, 1 }
  0xe1   : > { %v812_v35 = vsel %vm801_vm4, %v809_v12, %v811_v63 }
  0xe6   : > { %1974 = vmatmul.mubr.bf16.gmra.mrb[72].mxu0 %v10592_v49 }
  0xe7   : > { %1981 = vmatprep.mubr.bf16.mxu0 %v774_v20  ;;  %v9719_v20 = vld [vmem:[%s13128_s1 + $0x108] sm:$0xff]  }
  0xee   : > { %1982 = vmatmul.mubr.bf16.gmra.mrb[76].mxu0 %v10617_v58 }
  0xef   : > { %1989 = vmatprep.mubr.bf16.mxu0 %v777_v53  ;;  %v13250_v53 = vmov 0  }
  0xf6   : > { %1990 = vmatmul.mubr.bf16.gmra.mrb[80].mxu0 %v10641_v33 }
  0xf7   : > { %2029 = vmatprep.mubr.bf16.mxu0 %v806_v32 }
  0xfe   : > { %2030 = vmatmul.mubr.bf16.vlgmr.msra.gmra.mrb[0].mxu0 %v804_v1  ;;  %v9724_v1 = vld [vmem:[%s13128_s1 + $0x130] sm:$0xff]  }
  0xff   : > { %2037 = vmatprep.mubr.bf16.mxu0 %v808_v6  ;;  %2198 = vmatpush1.bf16.msra.mxu0 %v9718_v31  ;;  %v9722_v31 = vld [vmem:[%s13128_s1 + $0x120] sm:$0xff]  }
 0x100   : > { %2199 = vmatprep.subr.bf16.mxu0 %v13250_v53 }
 0x103   : > { %2200 = vmatpush1.bf16.msra.mxu0 %v9719_v20  ;;  %v815_v20 = vrot.slane %v10315_v30, 1 }
 0x104   : > { %2201 = vmatprep.subr.bf16.mxu0 %v13250_v53 }
 0x106   : > { %2038 = vmatmul.mubr.bf16.gmra.mrb[4].mxu0 %v806_v32  ;;  %v813_v32 = vrot.slane %v10311_v17, 1 }
 0x107   : > { %2045 = vmatprep.mubr.bf16.mxu0 %v810_v21  ;;  %2202 = vmatpush1.bf16.msra.mxu0 %v9720_v0  ;;  %v9723_v0 = vld [vmem:[%s13128_s1 + $0x128] sm:$0xff]  }
 0x108   : > { %2203 = vmatprep.subr.bf16.mxu0 %v13250_v53  ;;  %v814_v12 = vsel %vm801_vm4, %v811_v63, %v813_v32 }
 0x10b   : > { %2204 = vmatpush1.bf16.msra.mxu0 %v9721_v37  ;;  %v13251_v37 = vshll.u32 %v10190_v18, 16 }
 0x10c   : > { %2205 = vmatprep.subr.bf16.mxu0 %v13250_v53 }
 0x10e   : > { %2046 = vmatmul.mubr.bf16.gmra.mrb[8].mxu0 %v808_v6  ;;  %v9725_v6 = vld [vmem:[%s13128_s1 + $0x138] sm:$0xff]  }
 0x10f   : > { %2053 = vmatprep.mubr.bf16.mxu0 %v812_v35  ;;  %2206 = vmatpush1.bf16.msra.mxu0 %v9722_v31  ;;  %v10711_v31 = vrot.slane %v13251_v37, 2  ;;  %v9727_v37 = vld [vmem:[%s13128_s1 + $0x148] sm:$0xff]  }
 0x110   : > { %2207 = vmatprep.subr.bf16.mxu0 %v13250_v53 }
 0x113   : > { %2208 = vmatpush1.bf16.msra.mxu0 %v9723_v0  ;;  %v13252_v0 = vshrl.u32 %v10190_v18, 16 }
 0x114   : > { %2209 = vmatprep.subr.bf16.mxu0 %v13250_v53 }
 0x115   : > { %v10715_v63 = vrot.slane %v13252_v0, 1  ;;  %v819_v0 = vrot.slane %v10340_v44, 1 }
 0x116   : > { %2054 = vmatmul.mubr.bf16.gmra.mrb[12].mxu0 %v810_v21  ;;  %v9726_v21 = vld [vmem:[%s13128_s1 + $0x140] sm:$0xff]  }
 0x117   : > { %2061 = vmatprep.mubr.bf16.mxu0 %v814_v12  ;;  %2210 = vmatpush1.bf16.msra.mxu0 %v9724_v1  ;;  %v816_v1 = vsel %vm801_vm4, %v813_v32, %v815_v20  ;;  %v9728_v32 = vld [vmem:[%s13128_s1 + $0x150] sm:$0xff]  }
 0x118   : > { %2211 = vmatprep.subr.bf16.mxu0 %v13250_v53 }
 0x11b   : > { %2212 = vmatpush1.bf16.msra.mxu0 %v9725_v6  ;;  %v817_v6 = vrot.slane %v10337_v43, 1 }
 0x11c   : > { %2213 = vmatprep.subr.bf16.mxu0 %v13250_v53 }
 0x11e   : > { %2062 = vmatmul.mubr.bf16.gmra.mrb[16].mxu0 %v812_v35  ;;  %v818_v35 = vsel %vm801_vm4, %v815_v20, %v817_v6  ;;  %v820_v20 = vsel %vm801_vm4, %v817_v6, %v819_v0 }
 0x11f   : > { %2069 = vmatprep.mubr.bf16.mxu0 %v816_v1  ;;  %2214 = vmatpush1.bf16.msra.mxu0 %v9726_v21  ;;  %v9729_v21 = vld [vmem:[%s13128_s1 + $0x158] sm:$0xff]  }
 0x120   : > { %2215 = vmatprep.subr.bf16.mxu0 %v13250_v53 }
 0x123   : > { %2216 = vmatpush1.bf16.msra.mxu0 %v9727_v37  ;;  %v9730_v37 = vld [vmem:[%s13128_s1 + $0x160] sm:$0xff]  }
 0x124   : > { %2217 = vmatprep.subr.bf16.mxu0 %v13250_v53 }
 0x126   : > { %2070 = vmatmul.mubr.bf16.gmra.mrb[20].mxu0 %v814_v12  ;;  %v9731_v12 = vld [vmem:[%s13128_s1 + $0x168] sm:$0xff]  }
 0x127   : > { %2077 = vmatprep.mubr.bf16.mxu0 %v818_v35  ;;  %2218 = vmatpush1.bf16.msra.mxu0 %v9728_v32  ;;  %v821_v32 = vrot.slane %v10346_v48, 1 }
 0x128   : > { %2219 = vmatprep.subr.bf16.mxu0 %v13250_v53 }
 0x129   : > { %v822_v6 = vsel %vm801_vm4, %v819_v0, %v821_v32  ;;  %v825_v0 = vrot.slane %v10371_v62, 1 }
 0x12b   : > { %2220 = vmatpush1.bf16.msra.mxu0 %v9729_v21  ;;  %v9732_v21 = vld [vmem:[%s13128_s1 + $0x170] sm:$0xff]  }
 0x12c   : > { %2221 = vmatprep.subr.bf16.mxu0 %v13250_v53 }
 0x12e   : > { %2078 = vmatmul.mubr.bf16.gmra.mrb[24].mxu0 %v816_v1  ;;  %v9733_v1 = vld [vmem:[%s13128_s1 + $0x178] sm:$0xff]  }
 0x12f   : > { %2085 = vmatprep.mubr.bf16.mxu0 %v820_v20  ;;  %2222 = vmatpush1.bf16.msra.mxu0 %v9730_v37  ;;  %v823_v37 = vrot.slane %v10359_v57, 1 }
 0x130   : > { %2223 = vmatprep.subr.bf16.mxu0 %v13250_v53 }
 0x133   : > { %2224 = vmatpush1.bf16.msra.mxu0 %v9731_v12  ;;  %v824_v12 = vsel %vm801_vm4, %v821_v32, %v823_v37 }
 0x134   : > { %2225 = vmatprep.subr.bf16.mxu0 %v13250_v53 }
 0x136   : > { %2086 = vmatmul.mubr.bf16.gmra.mrb[28].mxu0 %v818_v35  ;;  %v826_v35 = vsel %vm801_vm4, %v823_v37, %v825_v0 }
 0x137   : > { %2093 = vmatprep.mubr.bf16.mxu0 %v822_v6  ;;  %2226 = vmatpush1.bf16.msra.mxu0 %v9732_v21  ;;  %v827_v21 = vrot.slane %v10417_v41, 1 }
 0x138   : > { %2227 = vmatprep.subr.bf16.mxu0 %v13250_v53 }
 0x139   : > { %v828_v60 = vsel %vm801_vm4, %v825_v0, %v827_v21 }
 0x13b   : > { %2228 = vmatpush1.bf16.msra.mxu0 %v9733_v1  ;;  %v829_v1 = vrot.slane %v10424_v47, 1 }
 0x13c   : > { %2397 = vmatprep.subr.bf16.mxu0 %v13250_v53 }
 0x13d   : > { %v830_v32 = vsel %vm801_vm4, %v827_v21, %v829_v1  ;;  %v837_v21 = vrot.slane %v10592_v49, 1 }
 0x13e   : > { %2094 = vmatmul.mubr.bf16.gmra.mrb[32].mxu0 %v820_v20  ;;  %v831_v20 = vrot.slane %v10478_v29, 1 }
 0x13f   : > { %2101 = vmatprep.mubr.bf16.mxu0 %v824_v12 }
 0x140   : > { %v832_v24 = vsel %vm801_vm4, %v829_v1, %v831_v20 }
 0x146   : > { %2102 = vmatmul.mubr.bf16.gmra.mrb[36].mxu0 %v822_v6  ;;  %v833_v6 = vrot.slane %v10550_v36, 1 }
 0x147   : > { %2109 = vmatprep.mubr.bf16.mxu0 %v826_v35 }
 0x148   : > { %v834_v37 = vsel %vm801_vm4, %v831_v20, %v833_v6  ;;  %v839_v20 = vrot.slane %v10617_v58, 1 }
 0x14a   : > { %v840_v50 = vsel %vm801_vm4, %v837_v21, %v839_v20 }
 0x14e   : > { %2110 = vmatmul.mubr.bf16.gmra.mrb[40].mxu0 %v824_v12  ;;  %v835_v12 = vrot.slane %v10567_v2, 1 }
 0x14f   : > { %2117 = vmatprep.mubr.bf16.mxu0 %v828_v60 }
 0x150   : > { %v836_v0 = vsel %vm801_vm4, %v833_v6, %v835_v12  ;;  %v838_v1 = vsel %vm801_vm4, %v835_v12, %v837_v21  ;;  %v873_v21 = vrot.slane %v10252_v5, 1 }
 0x156   : > { %2118 = vmatmul.mubr.bf16.gmra.mrb[44].mxu0 %v826_v35  ;;  %v371_v35 = vld [vmem:[%s10170_s21 + $0x140] sm:$0xf] }
 0x157   : > { %2125 = vmatprep.mubr.bf16.mxu0 %v830_v32  ;;  %v392_v8 = vpack.c.bf16 %v371_v35, %v371_v35  ;;  %v981_v35 = vrot.slane %v10231_v51, 2 }
 0x159   : > { %v577_v34 = vshll.u32 %v392_v8, 16 }
 0x15b   : > { %v579_v7 = vrot.slane %v577_v34, 7 }
 0x15e   : > { %2126 = vmatmul.mubr.bf16.gmra.mrb[48].mxu0 %v828_v60  ;;  %v574_v60 = vshrl.u32 %v392_v8, 16  ;;  %v13253_v8 = vmov 0 }
 0x15f   : > { %2133 = vmatprep.mubr.bf16.mxu0 %v832_v24  ;;  %v13254_v8 = vsel %vm10783_vm7, 4294967295, %v13253_v8 }
 0x160   : > { %13255 = vst [vmem:[#allocation36_spill] sm:$0xff] %v13254_v8  ;;  %v902_v8 = vrot.slane %v10356_v56, 2 }
 0x166   : > { %2134 = vmatmul.mubr.bf16.gmra.mrb[52].mxu0 %v830_v32  ;;  %v576_v32 = vrot.slane %v574_v60, 6  ;;  %v874_v60 = vrot.slane %v10241_v61, 2 }
 0x167   : > { %2141 = vmatprep.mubr.bf16.mxu0 %v834_v37 }
 0x168   : > { %v580_v6 = vor.u32 %v579_v7, %v576_v32  ;;  %v13256_v32 = vor.u32 %v10711_v31, %v10715_v63  ;;  %v9735_v31 = vld [vmem:[%s13128_s1 + $0x188] sm:$0xff]   ;;  %v985_v63 = vrot.slane %v10275_v28, 2 }
 0x16a   : > { %v581_v12 = vsel %vm393_vm0, %v10636_v52, %v580_v6  ;;  %v980_v52 = vrot.slane %v10190_v18, 2  ;;  %v877_v6 = vrot.slane %v10268_v23, 1 }
 0x16e   : > { %2142 = vmatmul.mubr.bf16.gmra.mrb[56].mxu0 %v832_v24  ;;  %v841_v24 = vrot.slane %v10641_v33, 1 }
 0x16f   : > { %2149 = vmatprep.mubr.bf16.mxu0 %v836_v0 }
 0x170   : > { %v842_v34 = vsel %vm801_vm4, %v839_v20, %v841_v24  ;;  %v875_v20 = vor.u32 %v874_v60, %v873_v21  ;;  %v9736_v21 = vld [vmem:[%s13128_s1 + $0x190] sm:$0xff]  }
 0x172   : > { %v876_v18 = vsel %vm869_vm9, %v13256_v32, %v875_v20  ;;  %v987_v32 = vrot.slane %v10308_v14, 2  ;;  %v13260_v14 = vld [vmem:[#allocation17_spill] sm:$0xff] }
 0x173   : > { %v910_v28 = vrot.slane %v13260_v14, 2 }
 0x176   : > { %2150 = vmatmul.mubr.bf16.gmra.mrb[60].mxu0 %v834_v37  ;;  %v10790_v37 = vsel %vm10783_vm7, %v581_v12, 0  ;;  %v878_v12 = vrot.slane %v10263_v16, 2 }
 0x177   : > { %2157 = vmatprep.mubr.bf16.mxu0 %v838_v1  ;;  %v865_v7 = vrot.slane %v10790_v37, 1 }
 0x17e   : > { %2158 = vmatmul.mubr.bf16.gmra.mrb[64].mxu0 %v836_v0  ;;  %v866_v0 = vsel %vm801_vm4, %v841_v24, %v865_v7 }
 0x17f   : > { %2165 = vmatprep.mubr.bf16.mxu0 %v840_v50 }
 0x186   : > { %2166 = vmatmul.mubr.bf16.gmra.mrb[68].mxu0 %v838_v1  ;;  %v982_v1 = vsel %vm979_vm8, %v980_v52, %v981_v35  ;;  %v881_v52 = vrot.slane %v10301_v11, 1 }
 0x187   : > { %2173 = vmatprep.mubr.bf16.mxu0 %v842_v34 }
 0x18e   : > { %2174 = vmatmul.mubr.bf16.gmra.mrb[72].mxu0 %v840_v50  ;;  %v983_v50 = vrot.slane %v10247_v3, 2  ;;  %v914_v3 = vrot.slane %v10397_v27, 2 }
 0x18f   : > { %2181 = vmatprep.mubr.bf16.mxu0 %v866_v0 }
 0x190   : > { %v10825_v60 = vsel %vm979_vm8, %v983_v50, %v985_v63 }
 0x196   : > { %2182 = vmatmul.mubr.bf16.gmra.mrb[76].mxu0 %v842_v34  ;;  %v9734_v34 = vld [vmem:[%s13128_s1 + $0x180] sm:$0xff]  }
 0x197   : > { %2189 = vmatprep.mubr.bf16.mxu0 %v865_v7  ;;  %v879_v7 = vor.u32 %v878_v12, %v877_v6  ;;  %v886_v6 = vrot.slane %v10325_v38, 2  ;;  %v9738_v12 = vld [vmem:[%s13128_s1 + $0x1a0] sm:$0xff]  }
 0x199   : > { %v880_v0 = vsel %vm869_vm9, %v875_v20, %v879_v7  ;;  %v9737_v20 = vld [vmem:[%s13128_s1 + $0x198] sm:$0xff]  }
 0x19e   : > { %2190 = vmatmul.mubr.bf16.gmra.mrb[80].mxu0 %v841_v24  ;;  %v10810_v24 = vsel %vm979_vm8, %v981_v35, %v983_v50  ;;  %v882_v35 = vrot.slane %v10285_v42, 2  ;;  %v885_v50 = vrot.slane %v10328_v39, 1 }
 0x19f   : > { %2229 = vmatprep.mubr.bf16.mxu0 %v982_v1 }
 0x1a0   : > { %v883_v1 = vor.u32 %v882_v35, %v881_v52  ;;  %v890_v35 = vrot.slane %v10331_v40, 2 }
 0x1a6   : > { %2230 = vmatmul.mubr.bf16.vlgmr.msra.gmra.mrb[0].mxu0 %v876_v18  ;;  %v884_v18 = vsel %vm869_vm9, %v879_v7, %v883_v1  ;;  %v9739_v7 = vld [vmem:[%s13128_s1 + $0x1a8] sm:$0xff]  }
 0x1a7   : > { %2237 = vmatprep.mubr.bf16.mxu0 %v10810_v24  ;;  %2398 = vmatpush1.bf16.msra.mxu0 %v9734_v34  ;;  %v10841_v34 = vsel %vm979_vm8, %v985_v63, %v987_v32  ;;  %v889_v63 = vrot.slane %v10365_v59, 1 }
 0x1a8   : > { %2399 = vmatprep.subr.bf16.mxu0 %v13250_v53 }
 0x1ab   : > { %2400 = vmatpush1.bf16.msra.mxu0 %v9735_v31  ;;  %v887_v31 = vor.u32 %v886_v6, %v885_v50  ;;  %v991_v50 = vrot.slane %v10315_v30, 2 }
 0x1ac   : > { %2401 = vmatprep.subr.bf16.mxu0 %v13250_v53 }
 0x1ad   : > { %v888_v52 = vsel %vm869_vm9, %v883_v1, %v887_v31  ;;  %v9741_v1 = vld [vmem:[%s13128_s1 + $0x1b8] sm:$0xff]  }
 0x1ae   : > { %2238 = vmatmul.mubr.bf16.gmra.mrb[4].mxu0 %v880_v0  ;;  %v989_v0 = vrot.slane %v10311_v17, 2  ;;  %v13259_v17 = vld [vmem:[#allocation19_spill] sm:$0xff] }
 0x1af   : > { %2245 = vmatprep.mubr.bf16.mxu0 %v10825_v60  ;;  %2402 = vmatpush1.bf16.msra.mxu0 %v9736_v21  ;;  %v9740_v21 = vld [vmem:[%s13128_s1 + $0x1b0] sm:$0xff]  }
 0x1b0   : > { %2403 = vmatprep.subr.bf16.mxu0 %v13250_v53 }
 0x1b3   : > { %2404 = vmatpush1.bf16.msra.mxu0 %v9737_v20  ;;  %v10857_v20 = vsel %vm979_vm8, %v987_v32, %v989_v0  ;;  %v893_v32 = vrot.slane %v10377_v4, 1 }
 0x1b4   : > { %2405 = vmatprep.subr.bf16.mxu0 %v13250_v53 }
 0x1b6   : > { %2246 = vmatmul.mubr.bf16.gmra.mrb[8].mxu0 %v884_v18  ;;  %v891_v18 = vor.u32 %v890_v35, %v889_v63  ;;  %v993_v35 = vrot.slane %v10337_v43, 2 }
 0x1b7   : > { %2253 = vmatprep.mubr.bf16.mxu0 %v10841_v34  ;;  %2406 = vmatpush1.bf16.msra.mxu0 %v9738_v12  ;;  %v894_v12 = vrot.slane %v10334_v15, 2 }
 0x1b8   : > { %2407 = vmatprep.subr.bf16.mxu0 %v13250_v53  ;;  %v892_v6 = vsel %vm869_vm9, %v887_v31, %v891_v18  ;;  %v9743_v31 = vld [vmem:[%s13128_s1 + $0x1c8] sm:$0xff]  }
 0x1b9   : > { %v895_v63 = vor.u32 %v894_v12, %v893_v32  ;;  %v10889_v32 = vsel %vm979_vm8, %v991_v50, %v993_v35 }
 0x1bb   : > { %2408 = vmatpush1.bf16.msra.mxu0 %v9739_v7  ;;  %v9742_v7 = vld [vmem:[%s13128_s1 + $0x1c0] sm:$0xff]  }
 0x1bc   : > { %2409 = vmatprep.subr.bf16.mxu0 %v13250_v53 }
 0x1be   : > { %2254 = vmatmul.mubr.bf16.gmra.mrb[12].mxu0 %v888_v52  ;;  %v10873_v52 = vsel %vm979_vm8, %v989_v0, %v991_v50  ;;  %v897_v0 = vrot.slane %v10380_v9, 1  ;;  %v901_v50 = vrot.slane %v10394_v26, 1 }
 0x1bf   : > { %2261 = vmatprep.mubr.bf16.mxu0 %v10857_v20  ;;  %2410 = vmatpush1.bf16.msra.mxu0 %v9740_v21  ;;  %v896_v21 = vsel %vm869_vm9, %v891_v18, %v895_v63  ;;  %v9745_v18 = vld [vmem:[%s13128_s1 + $0x1d8] sm:$0xff]  }
 0x1c0   : > { %2411 = vmatprep.subr.bf16.mxu0 %v13250_v53 }
 0x1c3   : > { %2412 = vmatpush1.bf16.msra.mxu0 %v9741_v1  ;;  %v898_v1 = vrot.slane %v10353_v55, 2 }
 0x1c4   : > { %2413 = vmatprep.subr.bf16.mxu0 %v13250_v53 }
 0x1c5   : > { %v899_v12 = vor.u32 %v898_v1, %v897_v0  ;;  %v903_v1 = vor.u32 %v902_v8, %v901_v50 }
 0x1c6   : > { %2262 = vmatmul.mubr.bf16.gmra.mrb[16].mxu0 %v892_v6  ;;  %v9744_v6 = vld [vmem:[%s13128_s1 + $0x1d0] sm:$0xff]  }
 0x1c7   : > { %2269 = vmatprep.mubr.bf16.mxu0 %v10873_v52  ;;  %2414 = vmatpush1.bf16.msra.mxu0 %v9742_v7  ;;  %v995_v7 = vrot.slane %v10340_v44, 2  ;;  %v904_v8 = vsel %vm869_vm9, %v899_v12, %v903_v1 }
 0x1c8   : > { %2415 = vmatprep.subr.bf16.mxu0 %v13250_v53 }
 0x1c9   : > { %v10905_v0 = vsel %vm979_vm8, %v993_v35, %v995_v7  ;;  %v13171_v35 = vmov 0.0  }
 0x1ca   : > { %9262 = vmatprep.subr.bf16.mxu1 %v13171_v35 }
 0x1cb   : > { %2416 = vmatpush1.bf16.msra.mxu0 %v9743_v31  ;;  %v900_v31 = vsel %vm869_vm9, %v895_v63, %v899_v12  ;;  %v9747_v63 = vld [vmem:[%s13128_s1 + $0x1e8] sm:$0xff]   ;;  %v9749_v12 = vld [vmem:[%s13128_s1 + $0x1f8] sm:$0xff]  }
 0x1cc   : > { %2417 = vmatprep.subr.bf16.mxu0 %v13250_v53 }
 0x1ce   : > { %2270 = vmatmul.mubr.bf16.gmra.mrb[20].mxu0 %v896_v21  ;;  %v9746_v21 = vld [vmem:[%s13128_s1 + $0x1e0] sm:$0xff]  }
 0x1cf   : > { %2277 = vmatprep.mubr.bf16.mxu0 %v10889_v32  ;;  %2418 = vmatpush1.bf16.msra.mxu0 %v9744_v6  ;;  %v10915_v6 = vld [vmem:[%s13128_s1 + $0x200] sm:$0xff]  }
 0x1d0   : > { %2419 = vmatprep.subr.bf16.mxu0 %v13250_v53  ;;  %9270 = vmatpush3.bf16.msra.mxu1 %v10915_v6 }
 0x1d1   : > { %9263 = vmatprep.subr.bf16.mxu1 %v13171_v35 }
 0x1d3   : > { %2420 = vmatpush1.bf16.msra.mxu0 %v9745_v18  ;;  %v997_v18 = vrot.slane %v10346_v48, 2  ;;  %v9748_v48 = vld [vmem:[%s13128_s1 + $0x1f0] sm:$0xff]  }
 0x1d4   : > { %2421 = vmatprep.subr.bf16.mxu0 %v13250_v53 }
 0x1d5   : > { %v10929_v43 = vsel %vm979_vm8, %v995_v7, %v997_v18  ;;  %v909_v7 = vrot.slane %v13259_v17, 1 }
 0x1d6   : > { %2278 = vmatmul.mubr.bf16.gmra.mrb[24].mxu0 %v900_v31  ;;  %v13257_v31 = vld [vmem:[#allocation18_spill] sm:$0xff] }
 0x1d7   : > { %2285 = vmatprep.mubr.bf16.mxu0 %v10905_v0  ;;  %2422 = vmatpush1.bf16.msra.mxu0 %v9746_v21  ;;  %v905_v50 = vrot.slane %v13257_v31, 1  ;;  %v13258_v21 = vld [vmem:[#allocation15_spill] sm:$0xff] }
 0x1d8   : > { %2423 = vmatprep.subr.bf16.mxu0 %v13250_v53  ;;  %v906_v44 = vrot.slane %v13258_v21, 2 }
 0x1da   : > { %v907_v35 = vor.u32 %v906_v44, %v905_v50  ;;  %v13261_v44 = vmov 0.0   ;;  %v1001_v50 = vrot.slane %v10371_v62, 2  ;;  %v922_v62 = vrot.slane %v10438_v54, 2 }
 0x1db   : > { %2424 = vmatpush1.bf16.msra.mxu0 %v9747_v63  ;;  %v999_v63 = vrot.slane %v10359_v57, 2  ;;  %8935 = vmatprep.mubr.msk.bf16.mxu1 %vm10048_vm12, %v13261_v44 }
 0x1dc   : > { %2425 = vmatprep.subr.bf16.mxu0 %v13250_v53  ;;  %v908_v30 = vsel %vm869_vm9, %v903_v1, %v907_v35  ;;  %v913_v1 = vrot.slane %v10420_v46, 1 }
 0x1dd   : > { %v10951_v51 = vsel %vm979_vm8, %v999_v63, %v1001_v50 }
 0x1de   : > { %2286 = vmatmul.mubr.bf16.gmra.mrb[28].mxu0 %v904_v8  ;;  %v10942_v8 = vsel %vm979_vm8, %v997_v18, %v999_v63  ;;  %v10956_v18 = vld [vmem:[%s13128_s1 + $0x208] sm:$0xff]  }
 0x1df   : > { %2293 = vmatprep.mubr.bf16.mxu0 %v10929_v43  ;;  %2426 = vmatpush1.bf16.msra.mxu0 %v9748_v48  ;;  %v911_v48 = vor.u32 %v910_v28, %v909_v7  ;;  %v915_v28 = vor.u32 %v914_v3, %v913_v1  ;;  %v1005_v3 = vrot.slane %v10424_v47, 2 }
 0x1e0   : > { %2427 = vmatprep.subr.bf16.mxu0 %v13250_v53  ;;  %9271 = vmatpush3.bf16.msra.mxu1 %v10956_v18 }
 0x1e1   : > { %v912_v57 = vsel %vm869_vm9, %v907_v35, %v911_v48  ;;  %9264 = vmatprep.subr.bf16.mxu1 %v13261_v44  ;;  %v916_v35 = vsel %vm869_vm9, %v911_v48, %v915_v28 }
 0x1e3   : > { %2428 = vmatpush1.bf16.msra.mxu0 %v9749_v12  ;;  %v917_v12 = vrot.slane %v10435_v25, 1 }
 0x1e4   : > { %8859 = vmatprep.subr.bf16.mxu0 %v13261_v44 }
 0x1e6   : > { %2294 = vmatmul.mubr.bf16.gmra.mrb[32].mxu0 %v908_v30  ;;  %v1003_v30 = vrot.slane %v10417_v41, 2  ;;  %v921_v41 = vrot.slane %v10447_v22, 1 }
 0x1e7   : > { %2301 = vmatprep.mubr.bf16.mxu0 %v10942_v8 }
 0x1e8   : > { %v10966_v63 = vsel %vm979_vm8, %v1001_v50, %v1003_v30  ;;  %v10974_v48 = vsel %vm979_vm8, %v1003_v30, %v1005_v3  ;;  %v923_v50 = vor.u32 %v922_v62, %v921_v41  ;;  %v10987_v30 = vld [vmem:[%s13128_s1 + $0x210] sm:$0xff]   ;;  %v1009_v41 = vrot.slane %v10550_v36, 2  ;;  %v13267_v36 = vld [vmem:[#allocation29_spill] sm:$0xff] }
 0x1e9   : > { %13262 = vst [vmem:[#allocation18_spill] sm:$0xff] %v10966_v63  ;;  %13263 = vst [vmem:[#allocation15_spill] sm:$0xff] %v10974_v48  ;;  %9272 = vmatpush3.bf16.msra.mxu1 %v10987_v30 }
 0x1ea   : > { %9265 = vmatprep.subr.bf16.mxu1 %v13261_v44 }
 0x1ee   : > { %2302 = vmatmul.mubr.bf16.gmra.mrb[36].mxu0 %v912_v57  ;;  %v918_v57 = vrot.slane %v10432_v45, 2 }
 0x1ef   : > { %2309 = vmatprep.mubr.bf16.mxu0 %v10951_v51 }
 0x1f0   : > { %v919_v7 = vor.u32 %v918_v57, %v917_v12  ;;  %v925_v12 = vrot.slane %v10494_v13, 1  ;;  %v926_v57 = vrot.slane %v10491_v10, 2 }
 0x1f2   : > { %v920_v1 = vsel %vm869_vm9, %v915_v28, %v919_v7  ;;  %v927_v62 = vor.u32 %v926_v57, %v925_v12  ;;  %v1011_v12 = vrot.slane %v10567_v2, 2 }
 0x1f6   : > { %2310 = vmatmul.mubr.bf16.gmra.mrb[40].mxu0 %v916_v35  ;;  %v1007_v35 = vrot.slane %v10478_v29, 2 }
 0x1f7   : > { %2317 = vmatprep.mubr.bf16.mxu0 %v10966_v63  ;;  %v924_v63 = vsel %vm869_vm9, %v919_v7, %v923_v50  ;;  %v928_v7 = vsel %vm869_vm9, %v923_v50, %v927_v62  ;;  %v11005_v50 = vsel %vm979_vm8, %v1009_v41, %v1011_v12 }
 0x1f8   : > { %v10982_v28 = vsel %vm979_vm8, %v1005_v3, %v1007_v35  ;;  %v929_v3 = vrot.slane %v10561_v19, 1  ;;  %v10997_v29 = vsel %vm979_vm8, %v1007_v35, %v1009_v41  ;;  %13269 = vst [vmem:[#allocation37_spill] sm:$0xff] %v11005_v50  ;;  %v11010_v35 = vld [vmem:[%s13128_s1 + $0x218] sm:$0xff]  }
 0x1f9   : > { %13264 = vst [vmem:[#allocation19_spill] sm:$0xff] %v10982_v28  ;;  %13266 = vst [vmem:[#allocation17_spill] sm:$0xff] %v10997_v29  ;;  %9273 = vmatpush3.bf16.msra.mxu1 %v11010_v35  ;;  %v13274_v19 = vld [vmem:[#allocation32_spill] sm:$0xff] }
 0x1fa   : > { %9266 = vmatprep.subr.bf16.mxu1 %v13261_v44  ;;  %v942_v13 = vrot.slane %v13274_v19, 2 }
 0x1fe   : > { %2318 = vmatmul.mubr.bf16.gmra.mrb[44].mxu0 %v920_v1  ;;  %v13265_v1 = vld [vmem:[#allocation26_spill] sm:$0xff] }
 0x1ff   : > { %2325 = vmatprep.mubr.bf16.mxu0 %v10974_v48  ;;  %v13268_v48 = vld [vmem:[#allocation28_spill] sm:$0xff] }
 0x200   : > { %v934_v10 = vrot.slane %v13268_v48, 2 }
 0x206   : > { %2326 = vmatmul.mubr.bf16.gmra.mrb[48].mxu0 %v924_v63  ;;  %v930_v63 = vrot.slane %v13265_v1, 2 }
 0x207   : > { %2333 = vmatprep.mubr.bf16.mxu0 %v10982_v28  ;;  %v933_v28 = vrot.slane %v13267_v36, 1  ;;  %v13273_v36 = vld [vmem:[#allocation33_spill] sm:$0xff] }
 0x208   : > { %v931_v47 = vor.u32 %v930_v63, %v929_v3  ;;  %v1013_v3 = vrot.slane %v10592_v49, 2  ;;  %v13270_v63 = vld [vmem:[#allocation31_spill] sm:$0xff]  ;;  %v941_v1 = vrot.slane %v13273_v36, 1 }
 0x209   : > { %v937_v41 = vrot.slane %v13270_v63, 1 }
 0x20a   : > { %v932_v57 = vsel %vm869_vm9, %v927_v62, %v931_v47  ;;  %v11020_v48 = vsel %vm979_vm8, %v1011_v12, %v1013_v3  ;;  %v943_v12 = vor.u32 %v942_v13, %v941_v1  ;;  %v13197_v1 = vshrl.u32 %v10790_v37, 16 }
 0x20b   : > { %13272 = vst [vmem:[#allocation38_spill] sm:$0xff] %v11020_v48 }
 0x20e   : > { %2334 = vmatmul.mubr.bf16.gmra.mrb[52].mxu0 %v928_v7  ;;  %v935_v7 = vor.u32 %v934_v10, %v933_v28  ;;  %v1015_v10 = vrot.slane %v10617_v58, 2 }
 0x20f   : > { %2341 = vmatprep.mubr.bf16.mxu0 %v10997_v29  ;;  %v13271_v29 = vld [vmem:[#allocation30_spill] sm:$0xff] }
 0x210   : > { %v936_v62 = vsel %vm869_vm9, %v931_v47, %v935_v7  ;;  %v11028_v47 = vsel %vm979_vm8, %v1013_v3, %v1015_v10  ;;  %v11041_v3 = vld [vmem:[%s13128_s1 + $0x220] sm:$0xff]  }
 0x211   : > { %13275 = vst [vmem:[#allocation33_spill] sm:$0xff] %v11028_v47  ;;  %9274 = vmatpush3.bf16.msra.mxu1 %v11041_v3 }
 0x212   : > { %9267 = vmatprep.subr.bf16.mxu1 %v13261_v44 }
 0x216   : > { %2342 = vmatmul.mubr.bf16.gmra.mrb[56].mxu0 %v932_v57  ;;  %v938_v57 = vrot.slane %v13271_v29, 2  ;;  %v13277_v29 = vld [vmem:[#allocation34_spill] sm:$0xff] }
 0x217   : > { %2349 = vmatprep.mubr.bf16.mxu0 %v11005_v50  ;;  %v946_v63 = vrot.slane %v13277_v29, 2 }
 0x218   : > { %v939_v50 = vor.u32 %v938_v57, %v937_v41  ;;  %v13276_v41 = vld [vmem:[#allocation35_spill] sm:$0xff] }
 0x219   : > { %v945_v57 = vrot.slane %v13276_v41, 1 }
 0x21a   : > { %v940_v28 = vsel %vm869_vm9, %v935_v7, %v939_v50 }
 0x21b   : > { %v947_v13 = vor.u32 %v946_v63, %v945_v57 }
 0x21e   : > { %2350 = vmatmul.mubr.bf16.gmra.mrb[60].mxu0 %v936_v62  ;;  %v1017_v62 = vrot.slane %v10641_v33, 2 }
 0x21f   : > { %2357 = vmatprep.mubr.bf16.mxu0 %v11020_v48  ;;  %v944_v48 = vsel %vm869_vm9, %v939_v50, %v943_v12  ;;  %v13196_v50 = vshll.u32 %v10790_v37, 16 }
 0x220   : > { %v11036_v7 = vsel %vm979_vm8, %v1015_v10, %v1017_v62  ;;  %v952_v10 = vrot.slane %v13197_v1, 1  ;;  %v1051_v1 = vrot.slane %v10263_v16, 3  ;;  %v1054_v16 = vrot.slane %v10301_v11, 2 }
 0x221   : > { %13278 = vst [vmem:[#allocation32_spill] sm:$0xff] %v11036_v7 }
 0x226   : > { %2358 = vmatmul.mubr.bf16.gmra.mrb[64].mxu0 %v940_v28  ;;  %v11047_v28 = vrot.slane %v10790_v37, 2 }
 0x227   : > { %2365 = vmatprep.mubr.bf16.mxu0 %v11028_v47  ;;  %v11064_v47 = vld [vmem:[%s13128_s1 + $0x228] sm:$0xff]  }
 0x228   : > { %v11058_v63 = vsel %vm979_vm8, %v1017_v62, %v11047_v28  ;;  %9275 = vmatpush3.bf16.msra.mxu1 %v11064_v47  ;;  %v1048_v62 = vrot.slane %v10241_v61, 3  ;;  %v11083_v61 = vld [vmem:[%s13128_s1 + $0x238] sm:$0xff]  }
 0x229   : > { %13279 = vst [vmem:[#allocation35_spill] sm:$0xff] %v11058_v63  ;;  %9268 = vmatprep.subr.bf16.mxu1 %v13261_v44 }
 0x22e   : > { %2366 = vmatmul.mubr.bf16.gmra.mrb[68].mxu0 %v944_v48  ;;  %v948_v48 = vsel %vm869_vm9, %v943_v12, %v947_v13 }
 0x22f   : > { %2373 = vmatprep.mubr.bf16.mxu0 %v11036_v7  ;;  %v955_v7 = vrot.slane %v13196_v50, 2  ;;  %v1047_v50 = vrot.slane %v10252_v5, 2 }
 0x231   : > { %v956_v57 = vor.u32 %v955_v7, %v952_v10  ;;  %v11076_v7 = vld [vmem:[%s13128_s1 + $0x230] sm:$0xff]   ;;  %v1049_v10 = vor.u32 %v1048_v62, %v1047_v50 }
 0x232   : > { %9276 = vmatpush3.bf16.msra.mxu1 %v11076_v7 }
 0x233   : > { %v957_v12 = vsel %vm869_vm9, %v947_v13, %v956_v57  ;;  %9269 = vmatprep.subr.bf16.mxu1 %v13261_v44  ;;  %v1181_v13 = vrot.slane %v10567_v2, 3  ;;  %vm3665_vm9 = vcmask 1047552  }
 0x236   : > { %2374 = vmatmul.mubr.bf16.gmra.mrb[72].mxu0 %v948_v48  ;;  %v1050_v48 = vrot.slane %v10268_v23, 2  ;;  %v1055_v23 = vrot.slane %v10285_v42, 3  ;;  %9277 = vmatpush3.bf16.msra.mxu1 %v11083_v61 }
 0x237   : > { %2381 = vmatprep.mubr.bf16.mxu0 %v11058_v63 }
 0x238   : > { %v1052_v63 = vor.u32 %v1051_v1, %v1050_v48  ;;  %v1183_v1 = vrot.slane %v10592_v49, 3  ;;  %v1056_v11 = vor.u32 %v1055_v23, %v1054_v16  ;;  %v1058_v49 = vrot.slane %v10328_v39, 2 }
 0x239   : > { %v1062_v39 = vrot.slane %v10365_v59, 2  ;;  %v1066_v59 = vrot.slane %v10377_v4, 2  ;;  %v1070_v4 = vrot.slane %v10380_v9, 2  ;;  %v1074_v9 = vrot.slane %v10394_v26, 2 }
 0x23a   : > { %v1053_v5 = vsel %vm1046_vm10, %v1049_v10, %v1052_v63  ;;  %v1184_v50 = vsel %vm1151_vm11, %v1181_v13, %v1183_v1  ;;  %v1057_v42 = vsel %vm1046_vm10, %v1052_v63, %v1056_v11  ;;  %v1079_v16 = vrot.slane %v13258_v21, 3 }
 0x23b   : > { %8936 = vmatmul.mubr.bf16.vlgmr.msra.gmra.mrb[0].mxu1 %v1184_v50  ;;  %v1087_v21 = vrot.slane %v10397_v27, 3  ;;  %v1095_v27 = vrot.slane %v10438_v54, 3 }
 0x23c   : > { %8939 = vmatprep.mubr.msk.bf16.mxu1 %vm10048_vm12, %v13261_v44 }
 0x23e   : > { %2382 = vmatmul.mubr.bf16.gmra.mrb[76].mxu0 %v957_v12  ;;  %v1185_v12 = vrot.slane %v10617_v58, 3  ;;  %v1063_v58 = vrot.slane %v10331_v40, 3 }
 0x23f   : > { %2389 = vmatprep.mubr.bf16.mxu0 %v11047_v28 }
 0x240   : > { %v1186_v62 = vsel %vm1151_vm11, %v1183_v1, %v1185_v12  ;;  %v1064_v63 = vor.u32 %v1063_v58, %v1062_v39  ;;  %v13285_v39 = vld [vmem:[#allocation15_spill] sm:$0xff] }
 0x243   : > { %8940 = vmatmul.mubr.bf16.gmra.mrb[4].mxu1 %v1186_v62 }
 0x244   : > { %8943 = vmatprep.mubr.msk.bf16.mxu1 %vm10048_vm12, %v13261_v44 }
 0x246   : > { %2390 = vmatmul.mubr.bf16.gmra.mrb[80].mxu0 %v956_v57  ;;  %v1059_v57 = vrot.slane %v10325_v38, 3 }
 0x247   : > { %2429 = vmatprep.mubr.bf16.mxu0 %v1053_v5  ;;  %v1078_v5 = vrot.slane %v13257_v31, 2  ;;  %v1086_v31 = vrot.slane %v10420_v46, 2  ;;  %v1094_v46 = vrot.slane %v10447_v22, 2 }
 0x248   : > { %v1060_v48 = vor.u32 %v1059_v57, %v1058_v49  ;;  %v13280_v49 = vld [vmem:[#allocation24_spill] sm:$0xff]  ;;  %v13281_v57 = vld [vmem:[#allocation23_spill] sm:$0xff] }
 0x24a   : > { %v1061_v38 = vsel %vm1046_vm10, %v1056_v11, %v1060_v48  ;;  %v1065_v40 = vsel %vm1046_vm10, %v1060_v48, %v1064_v63  ;;  %v13283_v48 = vld [vmem:[#allocation27_spill] sm:$0xff] }
 0x24b   : > { %v1102_v22 = vrot.slane %v13283_v48, 2 }
 0x24e   : > { %2430 = vmatmul.mubr.bf16.vlgmr.msra.gmra.mrb[0].mxu0 %v10810_v24  ;;  %v1187_v24 = vrot.slane %v10641_v33, 3  ;;  %v1067_v33 = vrot.slane %v10334_v15, 3 }
 0x24f   : > { %2437 = vmatprep.mubr.bf16.mxu0 %v1057_v42  ;;  %8860 = vmatpush3.bf16.msra.mxu0 %v10915_v6 }
 0x250   : > { %8861 = vmatprep.subr.bf16.mxu0 %v13261_v44  ;;  %v1188_v6 = vsel %vm1151_vm11, %v1185_v12, %v1187_v24  ;;  %v13282_v12 = vld [vmem:[#allocation18_spill] sm:$0xff] }
 0x251   : > { %8944 = vmatmul.mubr.bf16.gmra.mrb[8].mxu1 %v1188_v6 }
 0x252   : > { %8947 = vmatprep.mubr.msk.bf16.mxu1 %vm10048_vm12, %v13261_v44 }
 0x253   : > { %8862 = vmatpush3.bf16.msra.mxu0 %v10956_v18 }
 0x254   : > { %8863 = vmatprep.subr.bf16.mxu0 %v13261_v44 }
 0x256   : > { %2438 = vmatmul.mubr.bf16.gmra.mrb[4].mxu0 %v10825_v60  ;;  %v1189_v60 = vrot.slane %v10790_v37, 3 }
 0x257   : > { %2445 = vmatprep.mubr.bf16.mxu0 %v1061_v38  ;;  %8864 = vmatpush3.bf16.msra.mxu0 %v10987_v30  ;;  %v1068_v30 = vor.u32 %v1067_v33, %v1066_v59  ;;  %v13284_v38 = vld [vmem:[#allocation26_spill] sm:$0xff]  ;;  %v13288_v59 = vld [vmem:[#allocation19_spill] sm:$0xff] }
 0x258   : > { %8865 = vmatprep.subr.bf16.mxu0 %v13261_v44  ;;  %v1190_v18 = vsel %vm1151_vm11, %v1187_v24, %v1189_v60  ;;  %v1103_v54 = vrot.slane %v13284_v38, 3  ;;  %v13286_v24 = vld [vmem:[#allocation29_spill] sm:$0xff]  ;;  %v13305_v38 = vld [vmem:[#allocation11_spill] sm:$0xff] }
 0x259   : > { %8948 = vmatmul.mubr.bf16.gmra.mrb[12].mxu1 %v1190_v18  ;;  %v1069_v15 = vsel %vm1046_vm10, %v1064_v63, %v1068_v30  ;;  %v1106_v6 = vrot.slane %v13286_v24, 2  ;;  %v13287_v63 = vld [vmem:[#allocation28_spill] sm:$0xff]  ;;  %v13289_v18 = vld [vmem:[#allocation31_spill] sm:$0xff] }
 0x25a   : > { %8951 = vmatprep.mubr.msk.bf16.mxu1 %vm10048_vm12, %v13261_v44 }
 0x25b   : > { %8866 = vmatpush3.bf16.msra.mxu0 %v11010_v35  ;;  %v11139_v35 = vrot.slane %v13250_v53, 3 }
 0x25c   : > { %8867 = vmatprep.subr.bf16.mxu0 %v13261_v44 }
 0x25e   : > { %2446 = vmatmul.mubr.bf16.gmra.mrb[8].mxu0 %v10841_v34  ;;  %v1071_v34 = vrot.slane %v10353_v55, 3 }
 0x25f   : > { %2453 = vmatprep.mubr.bf16.mxu0 %v1065_v40  ;;  %8868 = vmatpush3.bf16.msra.mxu0 %v11041_v3  ;;  %v1192_v3 = vsel %vm1151_vm11, %v1189_v60, %v11139_v35  ;;  %v1107_v40 = vrot.slane %v13287_v63, 3  ;;  %v13306_v63 = vld [vmem:[#allocation12_spill] sm:$0xff] }
 0x260   : > { %8869 = vmatprep.subr.bf16.mxu0 %v13261_v44 }
 0x261   : > { %8952 = vmatmul.mubr.bf16.gmra.mrb[16].mxu1 %v1192_v3  ;;  %v1108_v33 = vor.u32 %v1107_v40, %v1106_v6  ;;  %v1165_v40 = vrot.slane %v13306_v63, 3 }
 0x262   : > { %8955 = vmatprep.mubr.msk.bf16.mxu1 %vm10048_vm12, %v13261_v44 }
 0x263   : > { %8870 = vmatpush3.bf16.msra.mxu0 %v11064_v47  ;;  %v1072_v47 = vor.u32 %v1071_v34, %v1070_v4  ;;  %v13291_v34 = vld [vmem:[#allocation17_spill] sm:$0xff] }
 0x264   : > { %8871 = vmatprep.subr.bf16.mxu0 %v13261_v44 }
 0x265   : > { %v1073_v55 = vsel %vm1046_vm10, %v1068_v30, %v1072_v47  ;;  %v1110_v30 = vrot.slane %v13289_v18, 2 }
 0x266   : > { %2454 = vmatmul.mubr.bf16.gmra.mrb[12].mxu0 %v10857_v20  ;;  %v1075_v20 = vrot.slane %v10356_v56, 3  ;;  %v1082_v56 = vrot.slane %v13259_v17, 2  ;;  %v1090_v17 = vrot.slane %v10435_v25, 2  ;;  %v1098_v25 = vrot.slane %v13280_v49, 2  ;;  %v13302_v49 = vld [vmem:[#allocation8_spill] sm:$0xff] }
 0x267   : > { %2461 = vmatprep.mubr.bf16.mxu0 %v1069_v15  ;;  %8872 = vmatpush3.bf16.msra.mxu0 %v11076_v7  ;;  %v13290_v15 = vld [vmem:[#allocation30_spill] sm:$0xff] }
 0x268   : > { %8873 = vmatprep.subr.bf16.mxu0 %v13261_v44  ;;  %v1076_v10 = vor.u32 %v1075_v20, %v1074_v9  ;;  %v1111_v4 = vrot.slane %v13290_v15, 3  ;;  %v1115_v9 = vrot.slane %v13274_v19, 3  ;;  %v13292_v20 = vld [vmem:[#allocation37_spill] sm:$0xff]  ;;  %v13295_v19 = vshll.u32 %v10790_v37, 16 }
 0x269   : > { %8956 = vmatmul.mubr.bf16.gmra.mrb[20].mxu1 %v11139_v35  ;;  %v13307_v15 = vld [vmem:[#allocation13_spill] sm:$0xff] }
 0x26a   : > { %v1077_v7 = vsel %vm1046_vm10, %v1072_v47, %v1076_v10  ;;  %v1112_v3 = vor.u32 %v1111_v4, %v1110_v30  ;;  %v1167_v4 = vrot.slane %v13307_v15, 3 }
 0x26b   : > { %8874 = vmatpush3.bf16.msra.mxu0 %v11083_v61  ;;  %v1080_v61 = vor.u32 %v1079_v16, %v1078_v5  ;;  %v1118_v5 = vrot.slane %v13276_v41, 2  ;;  %v1119_v16 = vrot.slane %v13277_v29, 3  ;;  %v11206_v29 = vrot.slane %v13250_v53, 2 }
 0x26c   : > { %v1113_v47 = vsel %vm1046_vm10, %v1108_v33, %v1112_v3 }
 0x26d   : > { %v1081_v26 = vsel %vm1046_vm10, %v1076_v10, %v1080_v61 }
 0x26e   : > { %2462 = vmatmul.mubr.bf16.gmra.mrb[16].mxu0 %v10873_v52  ;;  %v1083_v52 = vrot.slane %v13260_v14, 3  ;;  %v1091_v14 = vrot.slane %v10432_v45, 3  ;;  %v1099_v45 = vrot.slane %v13281_v57, 3 }
 0x26f   : > { %2469 = vmatprep.mubr.bf16.mxu0 %v1073_v55  ;;  %v1114_v55 = vrot.slane %v13273_v36, 2  ;;  %v13294_v36 = vshrl.u32 %v10790_v37, 16 }
 0x270   : > { %v1084_v23 = vor.u32 %v1083_v52, %v1082_v56 }
 0x271   : > { %v1116_v10 = vor.u32 %v1115_v9, %v1114_v55  ;;  %v1122_v52 = vrot.slane %v13294_v36, 2 }
 0x272   : > { %v1085_v1 = vsel %vm1046_vm10, %v1080_v61, %v1084_v23  ;;  %v13293_v61 = vld [vmem:[#allocation38_spill] sm:$0xff] }
 0x276   : > { %2470 = vmatmul.mubr.bf16.gmra.mrb[20].mxu0 %v10889_v32  ;;  %v1088_v32 = vor.u32 %v1087_v21, %v1086_v31  ;;  %v13297_v21 = vld [vmem:[#allocation32_spill] sm:$0xff] }
 0x277   : > { %2477 = vmatprep.mubr.bf16.mxu0 %v1077_v7  ;;  %v1117_v7 = vsel %vm1046_vm10, %v1112_v3, %v1116_v10 }
 0x278   : > { %v1089_v50 = vsel %vm1046_vm10, %v1084_v23, %v1088_v32  ;;  %v1123_v23 = vrot.slane %v13295_v19, 3 }
 0x27a   : > { %v1124_v31 = vor.u32 %v1123_v23, %v1122_v52 }
 0x27e   : > { %2478 = vmatmul.mubr.bf16.gmra.mrb[24].mxu0 %v10905_v0  ;;  %v1092_v0 = vor.u32 %v1091_v14, %v1090_v17  ;;  %v1043_v17 = vsel %vm979_vm8, %v11047_v28, %v11206_v29  ;;  %v13299_v14 = vld [vmem:[#allocation5_spill] sm:$0xff] }
 0x27f   : > { %2485 = vmatprep.mubr.bf16.mxu0 %v1081_v26  ;;  %v1120_v26 = vor.u32 %v1119_v16, %v1118_v5 }
 0x280   : > { %v1093_v11 = vsel %vm1046_vm10, %v1088_v32, %v1092_v0  ;;  %v11211_v32 = vor.u32 %v11139_v35, %v11206_v29 }
 0x281   : > { %v1121_v56 = vsel %vm1046_vm10, %v1116_v10, %v1120_v26  ;;  %v1125_v41 = vsel %vm1046_vm10, %v1120_v26, %v1124_v31 }
 0x282   : > { %v1129_v37 = vsel %vm1046_vm10, %v1124_v31, %v11211_v32 }
 0x286   : > { %2486 = vmatmul.mubr.bf16.gmra.mrb[28].mxu0 %v10929_v43  ;;  %v1096_v43 = vor.u32 %v1095_v27, %v1094_v46 }
 0x287   : > { %2493 = vmatprep.mubr.bf16.mxu0 %v1085_v1  ;;  %v13296_v1 = vld [vmem:[#allocation33_spill] sm:$0xff] }
 0x288   : > { %v1097_v42 = vsel %vm1046_vm10, %v1092_v0, %v1096_v43  ;;  %v1152_v0 = vrot.slane %v13299_v14, 3 }
 0x28e   : > { %2494 = vmatmul.mubr.bf16.gmra.mrb[32].mxu0 %v10942_v8  ;;  %v1100_v8 = vor.u32 %v1099_v45, %v1098_v25  ;;  %v1157_v25 = vrot.slane %v13302_v49, 3  ;;  %v13303_v45 = vld [vmem:[#allocation9_spill] sm:$0xff] }
 0x28f   : > { %2501 = vmatprep.mubr.bf16.mxu0 %v1089_v50  ;;  %v13298_v50 = vld [vmem:[#allocation35_spill] sm:$0xff]  ;;  %v13313_v49 = vld [vmem:[#allocation25_spill] sm:$0xff] }
 0x290   : > { %v1101_v62 = vsel %vm1046_vm10, %v1096_v43, %v1100_v8  ;;  %v13301_v43 = vld [vmem:[#allocation7_spill] sm:$0xff] }
 0x291   : > { %v1155_v28 = vrot.slane %v13301_v43, 3  ;;  %v13312_v43 = vld [vmem:[#allocation22_spill] sm:$0xff] }
 0x293   : > { %v1158_v57 = vsel %vm1151_vm11, %v1155_v28, %v1157_v25 }
 0x296   : > { %2502 = vmatmul.mubr.bf16.gmra.mrb[36].mxu0 %v10951_v51  ;;  %v1104_v51 = vor.u32 %v1103_v54, %v1102_v22  ;;  %v1163_v54 = vrot.slane %v13305_v38, 3 }
 0x297   : > { %2509 = vmatprep.mubr.bf16.mxu0 %v1093_v11  ;;  %v13300_v11 = vld [vmem:[#allocation6_spill] sm:$0xff] }
 0x298   : > { %v1105_v58 = vsel %vm1046_vm10, %v1100_v8, %v1104_v51  ;;  %v1109_v60 = vsel %vm1046_vm10, %v1104_v51, %v1108_v33  ;;  %v1153_v46 = vrot.slane %v13300_v11, 3  ;;  %v13311_v11 = vld [vmem:[#allocation21_spill] sm:$0xff] }
 0x29a   : > { %v1154_v27 = vsel %vm1151_vm11, %v1152_v0, %v1153_v46 }
 0x29e   : > { %2510 = vmatmul.mubr.bf16.gmra.mrb[40].mxu0 %v13282_v12  ;;  %v1159_v12 = vrot.slane %v13303_v45, 3 }
 0x29f   : > { %2517 = vmatprep.mubr.bf16.mxu0 %v1097_v42  ;;  %v1156_v42 = vsel %vm1151_vm11, %v1153_v46, %v1155_v28  ;;  %v1175_v46 = vrot.slane %v13311_v11, 3  ;;  %v1177_v28 = vrot.slane %v13312_v43, 3 }
 0x2a0   : > { %v1160_v8 = vsel %vm1151_vm11, %v1157_v25, %v1159_v12  ;;  %v1179_v25 = vrot.slane %v13313_v49, 3 }
 0x2a2   : > { %v1182_v45 = vsel %vm1151_vm11, %v1179_v25, %v1181_v13 }
 0x2a6   : > { %2518 = vmatmul.mubr.bf16.gmra.mrb[44].mxu0 %v13285_v39 }
 0x2a7   : > { %2525 = vmatprep.mubr.bf16.mxu0 %v1101_v62  ;;  %v13304_v62 = vld [vmem:[#allocation10_spill] sm:$0xff] }
 0x2a8   : > { %v1161_v48 = vrot.slane %v13304_v62, 3 }
 0x2aa   : > { %v1162_v22 = vsel %vm1151_vm11, %v1159_v12, %v1161_v48  ;;  %v1164_v39 = vsel %vm1151_vm11, %v1161_v48, %v1163_v54  ;;  %v11308_v12 = vld [vmem:[%s13129_s2] ss:$0 sm:$0xff] }
 0x2ae   : > { %2526 = vmatmul.mubr.bf16.gmra.mrb[48].mxu0 %v13288_v59  ;;  %v1166_v59 = vsel %vm1151_vm11, %v1163_v54, %v1165_v40 }
 0x2af   : > { %2533 = vmatprep.mubr.bf16.mxu0 %v1105_v58 }
 0x2b6   : > { %2534 = vmatmul.mubr.bf16.gmra.mrb[52].mxu0 %v13291_v34  ;;  %v1168_v34 = vsel %vm1151_vm11, %v1165_v40, %v1167_v4 }
 0x2b7   : > { %2541 = vmatprep.mubr.bf16.mxu0 %v1109_v60 }
 0x2be   : > { %2542 = vmatmul.mubr.bf16.gmra.mrb[56].mxu0 %v13292_v20  ;;  %v13308_v20 = vld [vmem:[#allocation14_spill] sm:$0xff] }
 0x2bf   : > { %2549 = vmatprep.mubr.bf16.mxu0 %v1113_v47  ;;  %v1169_v10 = vrot.slane %v13308_v20, 3 }
 0x2c6   : > { %2550 = vmatmul.mubr.bf16.gmra.mrb[60].mxu0 %v13293_v61 }
 0x2c7   : > { %2557 = vmatprep.mubr.bf16.mxu0 %v1117_v7  ;;  %v1170_v7 = vsel %vm1151_vm11, %v1167_v4, %v1169_v10 }
 0x2ce   : > { %2558 = vmatmul.mubr.bf16.gmra.mrb[64].mxu0 %v13296_v1 }
 0x2cf   : > { %2565 = vmatprep.mubr.bf16.mxu0 %v1121_v56  ;;  %v13309_v56 = vld [vmem:[#allocation16_spill] sm:$0xff] }
 0x2d0   : > { %v1171_v36 = vrot.slane %v13309_v56, 3 }
 0x2d2   : > { %v1172_v52 = vsel %vm1151_vm11, %v1169_v10, %v1171_v36 }
 0x2d6   : > { %2566 = vmatmul.mubr.bf16.gmra.mrb[68].mxu0 %v13297_v21 }
 0x2d7   : > { %2573 = vmatprep.mubr.bf16.mxu0 %v1125_v41  ;;  %v13310_v41 = vld [vmem:[#allocation20_spill] sm:$0xff] }
 0x2d8   : > { %v1173_v21 = vrot.slane %v13310_v41, 3 }
 0x2de   : > { %2574 = vmatmul.mubr.bf16.gmra.mrb[72].mxu0 %v13298_v50 }
 0x2df   : > { %2581 = vmatprep.mubr.bf16.mxu0 %v1129_v37  ;;  %v1174_v37 = vsel %vm1151_vm11, %v1171_v36, %v1173_v21 }
 0x2e6   : > { %2582 = vmatmul.mubr.bf16.gmra.mrb[76].mxu0 %v1043_v17 }
 0x2e7   : > { %2589 = vmatprep.mubr.bf16.mxu0 %v11211_v32 }
 0x2ee   : > { %2590 = vmatmul.mubr.bf16.gmra.mrb[80].mxu0 %v11206_v29 }
 0x2ef   : > { %8875 = vmatprep.mubr.msk.bf16.mxu0 %vm10048_vm12, %v13261_v44 }
 0x2f6   : > { %8876 = vmatmul.mubr.bf16.vlgmr.msra.gmra.mrb[0].mxu0 %v1154_v27  ;;  %v1176_v27 = vsel %vm1151_vm11, %v1173_v21, %v1175_v46 }
 0x2f7   : > { %8879 = vmatprep.mubr.msk.bf16.mxu0 %vm10048_vm12, %v13261_v44 }
 0x2fe   : > { %8880 = vmatmul.mubr.bf16.gmra.mrb[4].mxu0 %v1156_v42  ;;  %v1178_v42 = vsel %vm1151_vm11, %v1175_v46, %v1177_v28 }
 0x2ff   : > { %8883 = vmatprep.mubr.msk.bf16.mxu0 %vm10048_vm12, %v13261_v44 }
 0x306   : > { %8884 = vmatmul.mubr.bf16.gmra.mrb[8].mxu0 %v1158_v57  ;;  %v1180_v57 = vsel %vm1151_vm11, %v1177_v28, %v1179_v25 }
 0x307   : > { %8887 = vmatprep.mubr.msk.bf16.mxu0 %vm10048_vm12, %v13261_v44 }
 0x30e   : > { %8888 = vmatmul.mubr.bf16.gmra.mrb[12].mxu0 %v1160_v8  ;;  %v11246_v51 = vpop.f32.mrb[0].mxu1 }
 0x30f   : > { %8891 = vmatprep.mubr.msk.bf16.mxu0 %vm10048_vm12, %v13261_v44  ;;  %v8937_v58 = vpop.f32.mrb[1].mxu1 }
 0x310   : > { %v11248_v24 = vpop.f32.mrb[2].mxu1 }
 0x311   : > { %v8938_v6 = vpop.f32.mrb[3].mxu1 }
 0x316   : > { %8892 = vmatmul.mubr.bf16.gmra.mrb[16].mxu0 %v1162_v22  ;;  %v11254_v33 = vpop.f32.mrb[4].mxu1 }
 0x317   : > { %8895 = vmatprep.mubr.msk.bf16.mxu0 %vm10048_vm12, %v13261_v44  ;;  %v8941_v60 = vpop.f32.mrb[5].mxu1 }
 0x318   : > { %v11256_v18 = vpop.f32.mrb[6].mxu1 }
 0x319   : > { %v8942_v30 = vpop.f32.mrb[7].mxu1 }
 0x31e   : > { %8896 = vmatmul.mubr.bf16.gmra.mrb[20].mxu0 %v1164_v39 }
 0x31f   : > { %8899 = vmatprep.mubr.msk.bf16.mxu0 %vm10048_vm12, %v13261_v44 }
 0x324   : > { %v11262_v3 = vpop.f32.mrb[8].mxu1 }
 0x325   : > { %v8945_v47 = vpop.f32.mrb[9].mxu1 }
 0x326   : > { %8900 = vmatmul.mubr.bf16.gmra.mrb[24].mxu0 %v1166_v59  ;;  %v11264_v55 = vpop.f32.mrb[10].mxu1 }
 0x327   : > { %8903 = vmatprep.mubr.msk.bf16.mxu0 %vm10048_vm12, %v13261_v44  ;;  %v8946_v9 = vpop.f32.mrb[11].mxu1 }
 0x32c   : > { %v11270_v5 = vpop.f32.mrb[12].mxu1 }
 0x32d   : > { %v8949_v16 = vpop.f32.mrb[13].mxu1 }
 0x32e   : > { %8904 = vmatmul.mubr.bf16.gmra.mrb[28].mxu0 %v1168_v34  ;;  %v11272_v61 = vpop.f32.mrb[14].mxu1 }
 0x32f   : > { %8907 = vmatprep.mubr.msk.bf16.mxu0 %vm10048_vm12, %v13261_v44  ;;  %v8950_v26 = vpop.f32.mrb[15].mxu1 }
 0x334   : > { %v11278_v19 = vpop.f32.mrb[16].mxu1 }
 0x335   : > { %v8953_v23 = vpop.f32.mrb[17].mxu1 }
 0x336   : > { %8908 = vmatmul.mubr.bf16.gmra.mrb[32].mxu0 %v1170_v7  ;;  %v11280_v1 = vpop.f32.mrb[18].mxu1 }
 0x337   : > { %8911 = vmatprep.mubr.msk.bf16.mxu0 %vm10048_vm12, %v13261_v44  ;;  %v8954_v31 = vpop.f32.mrb[19].mxu1 }
 0x33c   : > { %v11286_v50 = vpop.f32.mrb[20].mxu1 }
 0x33d   : > { %v8957_v17 = vpop.f32.mrb[21].mxu1 }
 0x33e   : > { %8912 = vmatmul.mubr.bf16.gmra.mrb[36].mxu0 %v1172_v52  ;;  %v2794_v14 = vpop.f32.mrb[22].mxu1 }
 0x33f   : > { %8915 = vmatprep.mubr.msk.bf16.mxu0 %vm10048_vm12, %v13261_v44  ;;  %v8958_v0 = vpop.f32.mrb[23].mxu1 }
 0x346   : > { %8916 = vmatmul.mubr.bf16.gmra.mrb[40].mxu0 %v1174_v37 }
 0x347   : > { %8919 = vmatprep.mubr.msk.bf16.mxu0 %vm10048_vm12, %v13261_v44 }
 0x34e   : > { %8920 = vmatmul.mubr.bf16.gmra.mrb[44].mxu0 %v1176_v27 }
 0x34f   : > { %8923 = vmatprep.mubr.msk.bf16.mxu0 %vm10048_vm12, %v13261_v44 }
 0x356   : > { %8924 = vmatmul.mubr.bf16.gmra.mrb[48].mxu0 %v1178_v42 }
 0x357   : > { %8927 = vmatprep.mubr.msk.bf16.mxu0 %vm10048_vm12, %v13261_v44 }
 0x35e   : > { %8928 = vmatmul.mubr.bf16.gmra.mrb[52].mxu0 %v1180_v57 }
 0x35f   : > { %8931 = vmatprep.mubr.msk.bf16.mxu0 %vm10048_vm12, %v13261_v44 }
 0x366   : > { %8932 = vmatmul.mubr.bf16.gmra.mrb[56].mxu0 %v1182_v45 }
 0x399   : > { %v2551_v8 = vpop.f32.mrb[60].mxu0 }
 0x39a   : > { %v9308_v62 = vadd.f32 %v11308_v12, %v2551_v8  ;;  %v2553_v48 = vpop.f32.mrb[61].mxu0 }
 0x39b   : > { %v2554_v22 = vpop.f32.mrb[62].mxu0 }
 0x39c   : > { %v9310_v38 = vadd.f32 %v11308_v12, %v2554_v22  ;;  %v9309_v54 = vadd.f32 %v9308_v62, %v11246_v51  ;;  %v2556_v39 = vpop.f32.mrb[63].mxu0 }
 0x39e   : > { %v2827_v58 = vmax.f32 %v9309_v54, 0.0  ;;  %v9311_v2 = vadd.f32 %v9310_v38, %v11248_v24 }
 0x3a0   : > { %v2828_v13 = vmax.f32 %v9311_v2, 0.0  ;;  %v11314_v63 = vrot.slane %v2827_v58, 1 }
 0x3a1   : > { %v2559_v6 = vpop.f32.mrb[64].mxu0 }
 0x3a2   : > { %v2941_v40 = vrot.slane %v2828_v13, 1  ;;  %v9312_v59 = vadd.f32 %v11308_v12, %v2559_v6  ;;  %v2561_v60 = vpop.f32.mrb[65].mxu0 }
 0x3a3   : > { %v2562_v30 = vpop.f32.mrb[66].mxu0 }
 0x3a4   : > { %v2942_v15 = vsel %vm801_vm4, %v11314_v63, %v2941_v40  ;;  %v9314_v4 = vadd.f32 %v11308_v12, %v2562_v30  ;;  %v9313_v51 = vadd.f32 %v9312_v59, %v11254_v33  ;;  %v2564_v34 = vpop.f32.mrb[67].mxu0 }
 0x3a5   : > { %v11321_v47 = vmax.f32 %v2827_v58, %v2942_v15 }
 0x3a6   : > { %v2829_v24 = vmax.f32 %v9313_v51, 0.0  ;;  %v9315_v9 = vadd.f32 %v9314_v4, %v11256_v18 }
 0x3a7   : > { %v3140_v17 = vrot.slane %v11321_v47, 2 }
 0x3a8   : > { %v2943_v20 = vrot.slane %v2829_v24, 1  ;;  %v2830_v10 = vmax.f32 %v9315_v9, 0.0 }
 0x3a9   : > { %v2567_v7 = vpop.f32.mrb[68].mxu0 }
 0x3aa   : > { %v2944_v16 = vsel %vm801_vm4, %v2941_v40, %v2943_v20  ;;  %v2945_v26 = vrot.slane %v2830_v10, 1  ;;  %v9316_v56 = vadd.f32 %v11308_v12, %v2567_v7  ;;  %v2569_v36 = vpop.f32.mrb[69].mxu0 }
 0x3ab   : > { %v3035_v52 = vmax.f32 %v2828_v13, %v2944_v16  ;;  %v2570_v23 = vpop.f32.mrb[70].mxu0 }
 0x3ac   : > { %v2946_v31 = vsel %vm801_vm4, %v2943_v20, %v2945_v26  ;;  %v9318_v33 = vadd.f32 %v11308_v12, %v2570_v23  ;;  %v9317_v41 = vadd.f32 %v9316_v56, %v11262_v3  ;;  %v2572_v21 = vpop.f32.mrb[71].mxu0 }
 0x3ad   : > { %v11329_v37 = vmax.f32 %v2829_v24, %v2946_v31  ;;  %v3142_v18 = vrot.slane %v3035_v52, 2 }
 0x3ae   : > { %v2831_v14 = vmax.f32 %v9317_v41, 0.0  ;;  %v9319_v0 = vadd.f32 %v9318_v33, %v11264_v55 }
 0x3af   : > { %v3144_v11 = vrot.slane %v11329_v37, 2  ;;  %v11337_v46 = vsel %vm979_vm8, %v3140_v17, %v3142_v18 }
 0x3b0   : > { %v2947_v27 = vrot.slane %v2831_v14, 1  ;;  %v2832_v43 = vmax.f32 %v9319_v0, 0.0 }
 0x3b1   : > { %v2575_v28 = vpop.f32.mrb[72].mxu0  ;;  %v11340_v3 = vsel %vm979_vm8, %v3142_v18, %v3144_v11 }
 0x3b2   : > { %v2948_v42 = vsel %vm801_vm4, %v2945_v26, %v2947_v27  ;;  %v2949_v49 = vrot.slane %v2832_v43, 1  ;;  %v9320_v25 = vadd.f32 %v11308_v12, %v2575_v28  ;;  %v2577_v57 = vpop.f32.mrb[73].mxu0 }
 0x3b3   : > { %v3037_v55 = vmax.f32 %v2830_v10, %v2948_v42  ;;  %v2578_v45 = vpop.f32.mrb[74].mxu0 }
 0x3b4   : > { %v2950_v8 = vsel %vm801_vm4, %v2947_v27, %v2949_v49  ;;  %v9322_v62 = vadd.f32 %v11308_v12, %v2578_v45  ;;  %v9321_v48 = vadd.f32 %v9320_v25, %v11270_v5  ;;  %v2580_v22 = vpop.f32.mrb[75].mxu0 }
 0x3b5   : > { %v11347_v38 = vmax.f32 %v2831_v14, %v2950_v8  ;;  %v3146_v54 = vrot.slane %v3037_v55, 2 }
 0x3b6   : > { %v2833_v39 = vmax.f32 %v9321_v48, 0.0  ;;  %v9323_v58 = vadd.f32 %v9322_v62, %v11272_v61 }
 0x3b7   : > { %v3147_v2 = vsel %vm979_vm8, %v3144_v11, %v3146_v54  ;;  %v3148_v13 = vrot.slane %v11347_v38, 2 }
 0x3b8   : > { %v2951_v6 = vrot.slane %v2833_v39, 1  ;;  %v2834_v40 = vmax.f32 %v9323_v58, 0.0  ;;  %v3233_v59 = vmax.f32 %v11321_v47, %v3147_v2  ;;  %v3244_v47 = vld [vmem:[%s13130_s3] sm:$0xff] }
 0x3b9   : > { %v2583_v60 = vpop.f32.mrb[76].mxu0  ;;  %v3149_v30 = vsel %vm979_vm8, %v3146_v54, %v3148_v13 }
 0x3ba   : > { %v2952_v5 = vsel %vm801_vm4, %v2949_v49, %v2951_v6  ;;  %v2953_v15 = vrot.slane %v2834_v40, 1  ;;  %v9324_v4 = vadd.f32 %v11308_v12, %v2583_v60  ;;  %v2585_v51 = vpop.f32.mrb[77].mxu0  ;;  %v3234_v34 = vmax.f32 %v3035_v52, %v3149_v30 }
 0x3bb   : > { %v3039_v24 = vmax.f32 %v2832_v43, %v2952_v5  ;;  %v2586_v61 = vpop.f32.mrb[78].mxu0 }
 0x3bc   : > { %v2954_v9 = vsel %vm801_vm4, %v2951_v6, %v2953_v15  ;;  %v9326_v20 = vadd.f32 %v11308_v12, %v2586_v61  ;;  %v9325_v10 = vadd.f32 %v9324_v4, %v11278_v19  ;;  %v2588_v7 = vpop.f32.mrb[79].mxu0  ;;  %v11359_v16 = vpack.c.bf16 %v3234_v34, %v3233_v59 }
 0x3bd   : > { %v3150_v26 = vrot.slane %v3039_v24, 2  ;;  %v3040_v56 = vmax.f32 %v2833_v39, %v2954_v9 }
 0x3be   : > { %v2835_v36 = vmax.f32 %v9325_v10, 0.0  ;;  %v9327_v23 = vadd.f32 %v9326_v20, %v11280_v1 }
 0x3bf   : > { %v3152_v31 = vrot.slane %v3040_v56, 2  ;;  %v3151_v33 = vsel %vm979_vm8, %v3148_v13, %v3150_v26 }
 0x3c0   : > { %v2955_v52 = vrot.slane %v2835_v36, 1  ;;  %v2836_v41 = vmax.f32 %v9327_v23, 0.0  ;;  %v3235_v21 = vmax.f32 %v11329_v37, %v3151_v33 }
 0x3c1   : > { %v2591_v18 = vpop.f32.mrb[80].mxu0  ;;  %v3153_v14 = vsel %vm979_vm8, %v3150_v26, %v3152_v31 }
 0x3c2   : > { %v2956_v19 = vsel %vm801_vm4, %v2953_v15, %v2955_v52  ;;  %v2957_v0 = vrot.slane %v2836_v41, 1  ;;  %v9328_v11 = vadd.f32 %v11308_v12, %v2591_v18  ;;  %v2593_v27 = vpop.f32.mrb[81].mxu0  ;;  %v3236_v43 = vmax.f32 %v3037_v55, %v3153_v14 }
 0x3c3   : > { %v3041_v28 = vmax.f32 %v2834_v40, %v2956_v19  ;;  %v2594_v42 = vpop.f32.mrb[82].mxu0 }
 0x3c4   : > { %v2958_v1 = vsel %vm801_vm4, %v2955_v52, %v2957_v0  ;;  %v9329_v49 = vadd.f32 %v9328_v11, %v11286_v50  ;;  %v2595_v25 = vpop.f32.mrb[83].mxu0  ;;  %v11369_v57 = vpack.c.bf16 %v3236_v43, %v3235_v21 }
 0x3c5   : > { %v3154_v37 = vrot.slane %v3041_v28, 2  ;;  %v3042_v45 = vmax.f32 %v2835_v36, %v2958_v1  ;;  %v3245_v25 = vld [vmem:[%s13130_s3 + $0x8] sm:$0xff] }
 0x3c6   : > { %v2837_v8 = vmax.f32 %v9329_v49, 0.0  ;;  %3391 = vmatprep.mubr.f32.mxu1 %v3245_v25 }
 0x3c7   : > { %v3156_v62 = vrot.slane %v3042_v45, 2  ;;  %v3155_v48 = vsel %vm979_vm8, %v3152_v31, %v3154_v37 }
 0x3c8   : > { %v2959_v22 = vrot.slane %v2837_v8, 1  ;;  %v3237_v54 = vmax.f32 %v11347_v38, %v3155_v48 }
 0x3c9   : > { %v2631_v55 = vpop.f32.mrb[0].mxu0  ;;  %v3157_v39 = vsel %vm979_vm8, %v3154_v37, %v3156_v62 }
 0x3ca   : > { %v2960_v58 = vsel %vm801_vm4, %v2957_v0, %v2959_v22  ;;  %v3003_v50 = vsel %vm3002_vm13, %v2959_v22, 0.0  ;;  %v9278_v2 = vadd.f32 %v11308_v12, %v2631_v55  ;;  %v8877_v13 = vpop.f32.mrb[1].mxu0  ;;  %v3238_v6 = vmax.f32 %v3039_v24, %v3157_v39 }
 0x3cb   : > { %v3043_v40 = vmax.f32 %v2836_v41, %v2960_v58  ;;  %v11377_v59 = vmax.f32 %v2837_v8, %v3003_v50  ;;  %v2634_v60 = vpop.f32.mrb[2].mxu0 }
 0x3cc   : > { %v2797_v30 = vmax.f32 %v9278_v2, 0.0  ;;  %v9279_v5 = vadd.f32 %v11308_v12, %v2634_v60  ;;  %v8878_v15 = vpop.f32.mrb[3].mxu0  ;;  %v11380_v38 = vpack.c.bf16 %v3238_v6, %v3237_v54 }
 0x3cd   : > { %v3158_v4 = vrot.slane %v3043_v40, 2  ;;  %v3160_v51 = vrot.slane %v11377_v59, 2  ;;  %v3242_v61 = vmax.f32 %v3043_v40, 0.0 }
 0x3ce   : > { %v2798_v34 = vmax.f32 %v9279_v5, 0.0  ;;  %v2880_v20 = vrot.slane %v2797_v30, 1 }
 0x3cf   : > { %v3202_v9 = vsel %vm603_vm1, %v3160_v51, 0.0  ;;  %v3159_v24 = vsel %vm979_vm8, %v3156_v62, %v3158_v4  ;;  %v3161_v10 = vsel %vm979_vm8, %v3158_v4, %v3160_v51 }
 0x3d0   : > { %v2881_v7 = vrot.slane %v2798_v34, 1  ;;  %v3239_v26 = vmax.f32 %v3040_v56, %v3159_v24  ;;  %v3240_v36 = vmax.f32 %v3041_v28, %v3161_v10  ;;  %v3241_v23 = vmax.f32 %v3042_v45, %v3202_v9 }
 0x3d1   : > { %v2639_v31 = vpop.f32.mrb[4].mxu0 }
 0x3d2   : > { %v2882_v33 = vsel %vm801_vm4, %v2880_v20, %v2881_v7  ;;  %v9280_v52 = vadd.f32 %v11308_v12, %v2639_v31  ;;  %v8881_v41 = vpop.f32.mrb[5].mxu0  ;;  %v11388_v21 = vpack.c.bf16 %v3240_v36, %v3239_v26  ;;  %v11390_v18 = vpack.c.bf16 %v3242_v61, %v3241_v23 }
 0x3d3   : > { %v3004_v14 = vmax.f32 %v2797_v30, %v2882_v33  ;;  %v2642_v19 = vpop.f32.mrb[6].mxu0 }
 0x3d4   : > { %v2799_v0 = vmax.f32 %v9280_v52, 0.0  ;;  %v9281_v11 = vadd.f32 %v11308_v12, %v2642_v19  ;;  %v8882_v27 = vpop.f32.mrb[7].mxu0 }
 0x3d6   : > { %v2883_v43 = vrot.slane %v2799_v0, 1  ;;  %v2800_v56 = vmax.f32 %v9281_v11, 0.0 }
 0x3d8   : > { %v2884_v28 = vsel %vm801_vm4, %v2881_v7, %v2883_v43  ;;  %v2885_v42 = vrot.slane %v2800_v56, 1 }
 0x3d9   : > { %v3005_v1 = vmax.f32 %v2798_v34, %v2884_v28  ;;  %v2647_v49 = vpop.f32.mrb[8].mxu0 }
 0x3da   : > { %v2886_v37 = vsel %vm801_vm4, %v2883_v43, %v2885_v42  ;;  %v9282_v45 = vadd.f32 %v11308_v12, %v2647_v49  ;;  %v8885_v8 = vpop.f32.mrb[9].mxu0 }
 0x3db   : > { %v3006_v62 = vmax.f32 %v2799_v0, %v2886_v37  ;;  %v2650_v48 = vpop.f32.mrb[10].mxu0 }
 0x3dc   : > { %v2801_v22 = vmax.f32 %v9282_v45, 0.0  ;;  %v9283_v54 = vadd.f32 %v11308_v12, %v2650_v48  ;;  %v8886_v55 = vpop.f32.mrb[11].mxu0 }
 0x3dd   : > { %v3085_v5 = vrot.slane %v3006_v62, 2 }
 0x3de   : > { %v2887_v39 = vrot.slane %v2801_v22, 1  ;;  %v2802_v58 = vmax.f32 %v9283_v54, 0.0 }
 0x3e0   : > { %v2888_v50 = vsel %vm801_vm4, %v2885_v42, %v2887_v39  ;;  %v2889_v2 = vrot.slane %v2802_v58, 1 }
 0x3e1   : > { %v3007_v13 = vmax.f32 %v2800_v56, %v2888_v50  ;;  %v2655_v6 = vpop.f32.mrb[12].mxu0 }
 0x3e2   : > { %v2890_v40 = vsel %vm801_vm4, %v2887_v39, %v2889_v2  ;;  %v9284_v60 = vadd.f32 %v11308_v12, %v2655_v6  ;;  %v8889_v30 = vpop.f32.mrb[13].mxu0 }
 0x3e3   : > { %v3086_v15 = vrot.slane %v3007_v13, 2  ;;  %v3008_v4 = vmax.f32 %v2801_v22, %v2890_v40  ;;  %v2658_v51 = vpop.f32.mrb[14].mxu0 }
 0x3e4   : > { %v2803_v34 = vmax.f32 %v9284_v60, 0.0  ;;  %v9285_v61 = vadd.f32 %v11308_v12, %v2658_v51  ;;  %v8890_v9 = vpop.f32.mrb[15].mxu0 }
 0x3e5   : > { %v3088_v20 = vrot.slane %v3008_v4, 2  ;;  %v3087_v24 = vsel %vm979_vm8, %v3085_v5, %v3086_v15 }
 0x3e6   : > { %v2891_v10 = vrot.slane %v2803_v34, 1  ;;  %v2804_v7 = vmax.f32 %v9285_v61, 0.0  ;;  %v3203_v26 = vmax.f32 %v3004_v14, %v3087_v24 }
 0x3e7   : > { %v3089_v36 = vsel %vm979_vm8, %v3086_v15, %v3088_v20 }
 0x3e8   : > { %v2892_v23 = vsel %vm801_vm4, %v2889_v2, %v2891_v10  ;;  %v2893_v31 = vrot.slane %v2804_v7, 1  ;;  %v3204_v33 = vmax.f32 %v3005_v1, %v3089_v36 }
 0x3e9   : > { %v3009_v52 = vmax.f32 %v2802_v58, %v2892_v23  ;;  %v2663_v41 = vpop.f32.mrb[16].mxu0 }
 0x3ea   : > { %v2894_v19 = vsel %vm801_vm4, %v2891_v10, %v2893_v31  ;;  %v9286_v0 = vadd.f32 %v11308_v12, %v2663_v41  ;;  %v8893_v11 = vpop.f32.mrb[17].mxu0  ;;  %v11409_v27 = vpack.c.bf16 %v3204_v33, %v3203_v26 }
 0x3eb   : > { %v3090_v43 = vrot.slane %v3009_v52, 2  ;;  %v3010_v56 = vmax.f32 %v2803_v34, %v2894_v19  ;;  %v2666_v28 = vpop.f32.mrb[18].mxu0 }
 0x3ec   : > { %v2805_v42 = vmax.f32 %v9286_v0, 0.0  ;;  %v9287_v14 = vadd.f32 %v11308_v12, %v2666_v28  ;;  %v8894_v49 = vpop.f32.mrb[19].mxu0 }
 0x3ed   : > { %v3092_v25 = vrot.slane %v3010_v56, 2  ;;  %v3091_v37 = vsel %vm979_vm8, %v3088_v20, %v3090_v43 }
 0x3ee   : > { %v2895_v1 = vrot.slane %v2805_v42, 1  ;;  %v2806_v45 = vmax.f32 %v9287_v14, 0.0  ;;  %v3205_v8 = vmax.f32 %v3006_v62, %v3091_v37 }
 0x3ef   : > { %v3093_v48 = vsel %vm979_vm8, %v3090_v43, %v3092_v25 }
 0x3f0   : > { %v2896_v22 = vsel %vm801_vm4, %v2893_v31, %v2895_v1  ;;  %v2897_v54 = vrot.slane %v2806_v45, 1  ;;  %v3206_v55 = vmax.f32 %v3007_v13, %v3093_v48 }
 0x3f1   : > { %v3011_v39 = vmax.f32 %v2804_v7, %v2896_v22  ;;  %v2671_v58 = vpop.f32.mrb[20].mxu0 }
 0x3f2   : > { %v2898_v50 = vsel %vm801_vm4, %v2895_v1, %v2897_v54  ;;  %v9288_v2 = vadd.f32 %v11308_v12, %v2671_v58  ;;  %v8897_v6 = vpop.f32.mrb[21].mxu0  ;;  %v11417_v40 = vpack.c.bf16 %v3206_v55, %v3205_v8 }
 0x3f3   : > { %v3094_v60 = vrot.slane %v3011_v39, 2  ;;  %v3012_v30 = vmax.f32 %v2805_v42, %v2898_v50  ;;  %v2674_v5 = vpop.f32.mrb[22].mxu0 }
 0x3f4   : > { %v2807_v15 = vmax.f32 %v9288_v2, 0.0  ;;  %v9289_v62 = vadd.f32 %v11308_v12, %v2674_v5  ;;  %v8898_v51 = vpop.f32.mrb[23].mxu0 }
 0x3f5   : > { %v3096_v34 = vrot.slane %v3012_v30, 2  ;;  %v3095_v61 = vsel %vm979_vm8, %v3092_v25, %v3094_v60 }
 0x3f6   : > { %v2899_v13 = vrot.slane %v2807_v15, 1  ;;  %v2808_v9 = vmax.f32 %v9289_v62, 0.0  ;;  %v3207_v20 = vmax.f32 %v3008_v4, %v3095_v61 }
 0x3f7   : > { %v3097_v24 = vsel %vm979_vm8, %v3094_v60, %v3096_v34 }
 0x3f8   : > { %v2900_v10 = vsel %vm801_vm4, %v2897_v54, %v2899_v13  ;;  %v2901_v7 = vrot.slane %v2808_v9, 1  ;;  %v3208_v26 = vmax.f32 %v3009_v52, %v3097_v24 }
 0x3f9   : > { %v3013_v36 = vmax.f32 %v2806_v45, %v2900_v10  ;;  %v2679_v23 = vpop.f32.mrb[24].mxu0 }
 0x3fa   : > { %v2902_v31 = vsel %vm801_vm4, %v2899_v13, %v2901_v7  ;;  %v9290_v33 = vadd.f32 %v11308_v12, %v2679_v23  ;;  %v8901_v41 = vpop.f32.mrb[25].mxu0  ;;  %v11425_v19 = vpack.c.bf16 %v3208_v26, %v3207_v20 }
 0x3fb   : > { %v3098_v0 = vrot.slane %v3013_v36, 2  ;;  %v3014_v11 = vmax.f32 %v2807_v15, %v2902_v31  ;;  %v2682_v43 = vpop.f32.mrb[26].mxu0 }
 0x3fc   : > { %v2809_v28 = vmax.f32 %v9290_v33, 0.0  ;;  %v9291_v4 = vadd.f32 %v11308_v12, %v2682_v43  ;;  %v8902_v42 = vpop.f32.mrb[27].mxu0 }
 0x3fd   : > { %v3100_v14 = vrot.slane %v3014_v11, 2  ;;  %v3099_v49 = vsel %vm979_vm8, %v3096_v34, %v3098_v0 }
 0x3fe   : > { %v2903_v52 = vrot.slane %v2809_v28, 1  ;;  %v2810_v25 = vmax.f32 %v9291_v4, 0.0  ;;  %v3209_v37 = vmax.f32 %v3010_v56, %v3099_v49 }
 0x3ff   : > { %v3101_v1 = vsel %vm979_vm8, %v3098_v0, %v3100_v14 }
 0x400   : > { %v2904_v45 = vsel %vm801_vm4, %v2901_v7, %v2903_v52  ;;  %v2905_v8 = vrot.slane %v2810_v25, 1  ;;  %v3210_v48 = vmax.f32 %v3011_v39, %v3101_v1 }
 0x401   : > { %v3015_v22 = vmax.f32 %v2808_v9, %v2904_v45  ;;  %v2687_v54 = vpop.f32.mrb[28].mxu0 }
 0x402   : > { %v2906_v55 = vsel %vm801_vm4, %v2903_v52, %v2905_v8  ;;  %v9292_v58 = vadd.f32 %v11308_v12, %v2687_v54  ;;  %v8905_v50 = vpop.f32.mrb[29].mxu0  ;;  %v11433_v2 = vpack.c.bf16 %v3210_v48, %v3209_v37 }
 0x403   : > { %v3102_v6 = vrot.slane %v3015_v22, 2  ;;  %v3016_v60 = vmax.f32 %v2809_v28, %v2906_v55  ;;  %v2690_v5 = vpop.f32.mrb[30].mxu0 }
 0x404   : > { %v2811_v15 = vmax.f32 %v9292_v58, 0.0  ;;  %v9293_v56 = vadd.f32 %v11308_v12, %v2690_v5  ;;  %v8906_v62 = vpop.f32.mrb[31].mxu0 }
 0x405   : > { %v3104_v51 = vrot.slane %v3016_v60, 2  ;;  %v3103_v34 = vsel %vm979_vm8, %v3100_v14, %v3102_v6 }
 0x406   : > { %v2907_v39 = vrot.slane %v2811_v15, 1  ;;  %v2812_v61 = vmax.f32 %v9293_v56, 0.0  ;;  %v3211_v13 = vmax.f32 %v3012_v30, %v3103_v34 }
 0x407   : > { %v3105_v9 = vsel %vm979_vm8, %v3102_v6, %v3104_v51 }
 0x408   : > { %v2908_v20 = vsel %vm801_vm4, %v2905_v8, %v2907_v39  ;;  %v2909_v24 = vrot.slane %v2812_v61, 1  ;;  %v3212_v10 = vmax.f32 %v3013_v36, %v3105_v9 }
 0x409   : > { %v3017_v7 = vmax.f32 %v2810_v25, %v2908_v20  ;;  %v2695_v26 = vpop.f32.mrb[32].mxu0 }
 0x40a   : > { %v2910_v23 = vsel %vm801_vm4, %v2907_v39, %v2909_v24  ;;  %v9294_v31 = vadd.f32 %v11308_v12, %v2695_v26  ;;  %v8909_v33 = vpop.f32.mrb[33].mxu0  ;;  %v11441_v41 = vpack.c.bf16 %v3212_v10, %v3211_v13 }
 0x40b   : > { %v3106_v0 = vrot.slane %v3017_v7, 2  ;;  %v3018_v43 = vmax.f32 %v2811_v15, %v2910_v23  ;;  %v2698_v28 = vpop.f32.mrb[34].mxu0 }
 0x40c   : > { %v2813_v4 = vmax.f32 %v9294_v31, 0.0  ;;  %v9295_v30 = vadd.f32 %v11308_v12, %v2698_v28  ;;  %v8910_v42 = vpop.f32.mrb[35].mxu0 }
 0x40d   : > { %v3108_v14 = vrot.slane %v3018_v43, 2  ;;  %v3107_v49 = vsel %vm979_vm8, %v3104_v51, %v3106_v0 }
 0x40e   : > { %v2911_v36 = vrot.slane %v2813_v4, 1  ;;  %v2814_v52 = vmax.f32 %v9295_v30, 0.0  ;;  %v3213_v25 = vmax.f32 %v3014_v11, %v3107_v49 }
 0x40f   : > { %v3109_v37 = vsel %vm979_vm8, %v3106_v0, %v3108_v14 }
 0x410   : > { %v2912_v1 = vsel %vm801_vm4, %v2909_v24, %v2911_v36  ;;  %v2913_v45 = vrot.slane %v2814_v52, 1  ;;  %v3214_v8 = vmax.f32 %v3015_v22, %v3109_v37 }
 0x411   : > { %v3019_v48 = vmax.f32 %v2812_v61, %v2912_v1  ;;  %v2703_v54 = vpop.f32.mrb[36].mxu0 }
 0x412   : > { %v2914_v55 = vsel %vm801_vm4, %v2911_v36, %v2913_v45  ;;  %v9296_v58 = vadd.f32 %v11308_v12, %v2703_v54  ;;  %v8913_v50 = vpop.f32.mrb[37].mxu0  ;;  %v11449_v6 = vpack.c.bf16 %v3214_v8, %v3213_v25 }
 0x413   : > { %v3110_v5 = vrot.slane %v3019_v48, 2  ;;  %v2706_v15 = vpop.f32.mrb[38].mxu0  ;;  %v3020_v56 = vmax.f32 %v2813_v4, %v2914_v55 }
 0x414   : > { %v2815_v62 = vmax.f32 %v9296_v58, 0.0  ;;  %v9297_v11 = vadd.f32 %v11308_v12, %v2706_v15  ;;  %v8914_v51 = vpop.f32.mrb[39].mxu0 }
 0x415   : > { %v3112_v34 = vrot.slane %v3020_v56, 2  ;;  %v3111_v39 = vsel %vm979_vm8, %v3108_v14, %v3110_v5 }
 0x416   : > { %v2915_v22 = vrot.slane %v2815_v62, 1  ;;  %v2816_v61 = vmax.f32 %v9297_v11, 0.0  ;;  %v3215_v13 = vmax.f32 %v3016_v60, %v3111_v39 }
 0x417   : > { %v3113_v9 = vsel %vm979_vm8, %v3110_v5, %v3112_v34 }
 0x418   : > { %v2916_v20 = vsel %vm801_vm4, %v2913_v45, %v2915_v22  ;;  %v2917_v24 = vrot.slane %v2816_v61, 1  ;;  %v3216_v10 = vmax.f32 %v3017_v7, %v3113_v9 }
 0x419   : > { %v2711_v26 = vpop.f32.mrb[40].mxu0  ;;  %v3021_v23 = vmax.f32 %v2814_v52, %v2916_v20 }
 0x41a   : > { %v2918_v31 = vsel %vm801_vm4, %v2915_v22, %v2917_v24  ;;  %v9298_v33 = vadd.f32 %v11308_v12, %v2711_v26  ;;  %v8917_v0 = vpop.f32.mrb[41].mxu0  ;;  %v11457_v28 = vpack.c.bf16 %v3216_v10, %v3215_v13 }
 0x41b   : > { %v11459_v4 = vmax.f32 %v2815_v62, %v2918_v31  ;;  %v2714_v30 = vpop.f32.mrb[42].mxu0  ;;  %v3114_v42 = vrot.slane %v3021_v23, 2 }
 0x41c   : > { %v2817_v60 = vmax.f32 %v9298_v33, 0.0  ;;  %v9299_v14 = vadd.f32 %v11308_v12, %v2714_v30  ;;  %v8918_v49 = vpop.f32.mrb[43].mxu0 }
 0x41d   : > { %v3116_v36 = vrot.slane %v11459_v4, 2  ;;  %v3115_v7 = vsel %vm979_vm8, %v3112_v34, %v3114_v42 }
 0x41e   : > { %v2919_v52 = vrot.slane %v2817_v60, 1  ;;  %v2818_v25 = vmax.f32 %v9299_v14, 0.0  ;;  %v3217_v37 = vmax.f32 %v3018_v43, %v3115_v7 }
 0x41f   : > { %v3117_v1 = vsel %vm979_vm8, %v3114_v42, %v3116_v36 }
 0x420   : > { %v2920_v45 = vsel %vm801_vm4, %v2917_v24, %v2919_v52  ;;  %v2921_v8 = vrot.slane %v2818_v25, 1  ;;  %v3218_v54 = vmax.f32 %v3019_v48, %v3117_v1 }
 0x421   : > { %v3023_v55 = vmax.f32 %v2816_v61, %v2920_v45  ;;  %v2719_v58 = vpop.f32.mrb[44].mxu0 }
 0x422   : > { %v2922_v50 = vsel %vm801_vm4, %v2919_v52, %v2921_v8  ;;  %v9300_v5 = vadd.f32 %v11308_v12, %v2719_v58  ;;  %v8921_v15 = vpop.f32.mrb[45].mxu0  ;;  %v11468_v62 = vpack.c.bf16 %v3218_v54, %v3217_v37 }
 0x423   : > { %v3118_v11 = vrot.slane %v3023_v55, 2  ;;  %v11470_v51 = vmax.f32 %v2817_v60, %v2922_v50  ;;  %v2722_v34 = vpop.f32.mrb[46].mxu0 }
 0x424   : > { %v2819_v43 = vmax.f32 %v9300_v5, 0.0  ;;  %v9301_v39 = vadd.f32 %v11308_v12, %v2722_v34  ;;  %v8922_v22 = vpop.f32.mrb[47].mxu0 }
 0x425   : > { %v3120_v13 = vrot.slane %v11470_v51, 2  ;;  %v3119_v48 = vsel %vm979_vm8, %v3116_v36, %v3118_v11 }
 0x426   : > { %v2923_v61 = vrot.slane %v2819_v43, 1  ;;  %v2820_v9 = vmax.f32 %v9301_v39, 0.0  ;;  %v3219_v20 = vmax.f32 %v3020_v56, %v3119_v48 }
 0x427   : > { %v3121_v24 = vsel %vm979_vm8, %v3118_v11, %v3120_v13 }
 0x428   : > { %v2924_v10 = vsel %vm801_vm4, %v2921_v8, %v2923_v61  ;;  %v2925_v26 = vrot.slane %v2820_v9, 1  ;;  %v3220_v31 = vmax.f32 %v3021_v23, %v3121_v24 }
 0x429   : > { %v3025_v33 = vmax.f32 %v2818_v25, %v2924_v10  ;;  %v2727_v0 = vpop.f32.mrb[48].mxu0 }
 0x42a   : > { %v2926_v30 = vsel %vm801_vm4, %v2923_v61, %v2925_v26  ;;  %v9302_v42 = vadd.f32 %v11308_v12, %v2727_v0  ;;  %v8925_v60 = vpop.f32.mrb[49].mxu0  ;;  %v9189_v14 = vpack.c.bf16 %v3220_v31, %v3219_v20 }
 0x42b   : > { %v3122_v49 = vrot.slane %v3025_v33, 2  ;;  %v11479_v7 = vmax.f32 %v2819_v43, %v2926_v30  ;;  %v2730_v36 = vpop.f32.mrb[50].mxu0 }
 0x42c   : > { %v2821_v52 = vmax.f32 %v9302_v42, 0.0  ;;  %v9303_v56 = vadd.f32 %v11308_v12, %v2730_v36  ;;  %v8926_v37 = vpop.f32.mrb[51].mxu0  ;;  %9190 = vmatprep.subr.bf16.mxu1 %v9189_v14 }
 0x42d   : > { %v3124_v1 = vrot.slane %v11479_v7, 2  ;;  %9192 = vmatpush3.bf16.msra.mxu1 %v11409_v27  ;;  %v3123_v23 = vsel %vm979_vm8, %v3120_v13, %v3122_v49 }
 0x42e   : > { %v2927_v25 = vrot.slane %v2821_v52, 1  ;;  %v2822_v45 = vmax.f32 %v9303_v56, 0.0  ;;  %v3221_v8 = vmax.f32 %v11459_v4, %v3123_v23 }
 0x42f   : > { %v3125_v54 = vsel %vm979_vm8, %v3122_v49, %v3124_v1 }
 0x430   : > { %v2928_v58 = vsel %vm801_vm4, %v2925_v26, %v2927_v25  ;;  %v2929_v50 = vrot.slane %v2822_v45, 1  ;;  %v3222_v5 = vmax.f32 %v3023_v55, %v3125_v54 }
 0x431   : > { %v3027_v15 = vmax.f32 %v2820_v9, %v2928_v58  ;;  %v2735_v11 = vpop.f32.mrb[52].mxu0 }
 0x432   : > { %v2930_v34 = vsel %vm801_vm4, %v2927_v25, %v2929_v50  ;;  %v9304_v43 = vadd.f32 %v11308_v12, %v2735_v11  ;;  %v8929_v39 = vpop.f32.mrb[53].mxu0  ;;  %v9193_v27 = vpack.c.bf16 %v3222_v5, %v3221_v8 }
 0x433   : > { %v3126_v22 = vrot.slane %v3027_v15, 2  ;;  %v3028_v13 = vmax.f32 %v2821_v52, %v2930_v34  ;;  %v2738_v48 = vpop.f32.mrb[54].mxu0 }
 0x434   : > { %v2823_v61 = vmax.f32 %v9304_v43, 0.0  ;;  %v9305_v4 = vadd.f32 %v11308_v12, %v2738_v48  ;;  %v8930_v20 = vpop.f32.mrb[55].mxu0  ;;  %9194 = vmatprep.subr.bf16.mxu1 %v9193_v27 }
 0x435   : > { %v3128_v24 = vrot.slane %v3028_v13, 2  ;;  %9196 = vmatpush3.bf16.msra.mxu1 %v11417_v40  ;;  %v3127_v55 = vsel %vm979_vm8, %v3124_v1, %v3126_v22 }
 0x436   : > { %v2931_v9 = vrot.slane %v2823_v61, 1  ;;  %v2824_v10 = vmax.f32 %v9305_v4, 0.0  ;;  %v3223_v26 = vmax.f32 %v11470_v51, %v3127_v55 }
 0x437   : > { %v3129_v31 = vsel %vm979_vm8, %v3126_v22, %v3128_v24 }
 0x438   : > { %v2932_v0 = vsel %vm801_vm4, %v2929_v50, %v2931_v9  ;;  %v2933_v30 = vrot.slane %v2824_v10, 1  ;;  %v3224_v42 = vmax.f32 %v3025_v33, %v3129_v31 }
 0x439   : > { %v3029_v60 = vmax.f32 %v2822_v45, %v2932_v0  ;;  %v2743_v14 = vpop.f32.mrb[56].mxu0 }
 0x43a   : > { %v2934_v49 = vsel %vm801_vm4, %v2931_v9, %v2933_v30  ;;  %v9306_v36 = vadd.f32 %v11308_v12, %v2743_v14  ;;  %v8933_v52 = vpop.f32.mrb[57].mxu0  ;;  %v9197_v40 = vpack.c.bf16 %v3224_v42, %v3223_v26  ;;  %v3262_v42 = vld [vmem:[%s13130_s3 + $0x90] sm:$0xff]  ;;  %v3269_v14 = vld [vmem:[%s13130_s3 + $0xc8] sm:$0xff] }
 0x43b   : > { %v3130_v56 = vrot.slane %v3029_v60, 2  ;;  %v3030_v37 = vmax.f32 %v2823_v61, %v2934_v49  ;;  %v2746_v1 = vpop.f32.mrb[58].mxu0  ;;  %v3268_v49 = vld [vmem:[%s13130_s3 + $0xc0] sm:$0xff]  ;;  %v3271_v52 = vld [vmem:[%s13130_s3 + $0xd8] sm:$0xff] }
 0x43c   : > { %v2825_v23 = vmax.f32 %v9306_v36, 0.0  ;;  %v9307_v51 = vadd.f32 %v11308_v12, %v2746_v1  ;;  %v8934_v25 = vpop.f32.mrb[59].mxu0  ;;  %9198 = vmatprep.subr.bf16.mxu1 %v9197_v40  ;;  %v3272_v36 = vld [vmem:[%s13130_s3 + $0xe0] sm:$0xff]  ;;  %v3275_v40 = vld [vmem:[%s13130_s3 + $0xf8] sm:$0xff]  ;;  %v3277_v1 = vld [vmem:[%s13130_s3 + $0x108] sm:$0xff] }
 0x43d   : > { %v3132_v8 = vrot.slane %v3030_v37, 2  ;;  %9200 = vmatpush3.bf16.msra.mxu1 %v11425_v19  ;;  %v3131_v33 = vsel %vm979_vm8, %v3128_v24, %v3130_v56  ;;  %v3246_v25 = vld [vmem:[%s13130_s3 + $0x10] sm:$0xff] }
 0x43e   : > { %v2935_v45 = vrot.slane %v2825_v23, 1  ;;  %v2826_v54 = vmax.f32 %v9307_v51, 0.0  ;;  %v3225_v58 = vmax.f32 %v11479_v7, %v3131_v33  ;;  %v3280_v51 = vld [vmem:[%s13130_s3 + $0x120] sm:$0xf] }
 0x43f   : > { %v3133_v50 = vsel %vm979_vm8, %v3130_v56, %v3132_v8  ;;  %v3274_v56 = vld [vmem:[%s13130_s3 + $0xf0] sm:$0xff]  ;;  %v3252_v33 = vld [vmem:[%s13130_s3 + $0x40] sm:$0xff] }
 0x440   : > { %v2936_v5 = vsel %vm801_vm4, %v2933_v30, %v2935_v45  ;;  %v2937_v11 = vrot.slane %v2826_v54, 1  ;;  %v3226_v34 = vmax.f32 %v3027_v15, %v3133_v50  ;;  %v3264_v50 = vld [vmem:[%s13130_s3 + $0xa0] sm:$0xff] }
 0x441   : > { %v3031_v43 = vmax.f32 %v2824_v10, %v2936_v5  ;;  %v3267_v5 = vld [vmem:[%s13130_s3 + $0xb8] sm:$0xff] }
 0x442   : > { %v2938_v12 = vsel %vm801_vm4, %v2935_v45, %v2937_v11  ;;  %v2940_v39 = vsel %vm801_vm4, %v2937_v11, %v11314_v63  ;;  %v9201_v27 = vpack.c.bf16 %v3226_v34, %v3225_v58  ;;  %v3255_v45 = vld [vmem:[%s13130_s3 + $0x58] sm:$0xff]  ;;  %v3261_v58 = vld [vmem:[%s13130_s3 + $0x88] sm:$0xff]  ;;  %v3270_v11 = vld [vmem:[%s13130_s3 + $0xd0] sm:$0xff] }
 0x443   : > { %v3134_v19 = vrot.slane %v3031_v43, 2  ;;  %v3032_v22 = vmax.f32 %v2825_v23, %v2938_v12  ;;  %v3033_v48 = vmax.f32 %v2826_v54, %v2940_v39  ;;  %v3281_v23 = vld [vmem:[%s13130_s3 + $0x128] sm:$0xf]  ;;  %v3258_v54 = vld [vmem:[%s13130_s3 + $0x70] sm:$0xff]  ;;  %v3279_v12 = vld [vmem:[%s13130_s3 + $0x118] sm:$0xff] }
 0x444   : > { %9202 = vmatprep.subr.bf16.mxu1 %v9201_v27  ;;  %v3273_v34 = vld [vmem:[%s13130_s3 + $0xe8] sm:$0xff]  ;;  %v3282_v39 = vld [vmem:[%s13130_s3 + $0x130] sm:$0xf]  ;;  %v9758_v27 = vld [vmem:[%s13128_s1 + $0x280] sm:$0xff]  }
 0x445   : > { %v3136_v61 = vrot.slane %v3032_v22, 2  ;;  %v3138_v4 = vrot.slane %v3033_v48, 2  ;;  %v3232_v7 = vmax.f32 %v3033_v48, %v11340_v3  ;;  %9204 = vmatpush3.bf16.msra.mxu1 %v11433_v2  ;;  %v3135_v20 = vsel %vm979_vm8, %v3132_v8, %v3134_v19  ;;  %v3251_v2 = vld [vmem:[%s13130_s3 + $0x38] sm:$0xff]  ;;  %v3249_v8 = vld [vmem:[%s13130_s3 + $0x28] sm:$0xff] }
 0x446   : > { %v3227_v15 = vmax.f32 %v3028_v13, %v3135_v20  ;;  %v3231_v24 = vmax.f32 %v3032_v22, %v11337_v46  ;;  %v3248_v46 = vld [vmem:[%s13130_s3 + $0x20] sm:$0xff]  ;;  %v3263_v13 = vld [vmem:[%s13130_s3 + $0x98] sm:$0xff]  ;;  %v9760_v22 = vld [vmem:[%s13128_s1 + $0x288] sm:$0xff]  }
 0x447   : > { %v3137_v55 = vsel %vm979_vm8, %v3134_v19, %v3136_v61  ;;  %v3139_v63 = vsel %vm979_vm8, %v3136_v61, %v3138_v4  ;;  %v3141_v9 = vsel %vm979_vm8, %v3138_v4, %v3140_v17  ;;  %v13199_v17 = vmov 0.0|0.0   ;;  %v9759_v19 = vld [vmem:[%s13128_s1 + $0x240] sm:$0xff]   ;;  %v9761_v48 = vld [vmem:[%s13128_s1 + $0x248] sm:$0xff]   ;;  %v9762_v61 = vld [vmem:[%s13128_s1 + $0x290] sm:$0xff]  }
 0x448   : > { %v3228_v10 = vmax.f32 %v3029_v60, %v3137_v55  ;;  %v3229_v26 = vmax.f32 %v3030_v37, %v3139_v63  ;;  %v3230_v31 = vmax.f32 %v3031_v43, %v3141_v9  ;;  %v9213_v0 = vpack.c.bf16 %v3232_v7, %v3231_v24  ;;  %v3265_v60 = vld [vmem:[%s13130_s3 + $0xa8] sm:$0xff]  ;;  %v3278_v37 = vld [vmem:[%s13130_s3 + $0x110] sm:$0xff]  ;;  %v3276_v43 = vld [vmem:[%s13130_s3 + $0x100] sm:$0xff] }
 0x449   : > { %v9763_v4 = vld [vmem:[%s13128_s1 + $0x250] sm:$0xff]   ;;  %v9764_v7 = vld [vmem:[%s13128_s1 + $0x298] sm:$0xff]   ;;  %v9767_v24 = vld [vmem:[%s13128_s1 + $0x260] sm:$0xff]  }
 0x44a   : > { %v9205_v3 = vpack.c.bf16 %v3228_v10, %v3227_v15  ;;  %v9209_v30 = vpack.c.bf16 %v3230_v31, %v3229_v26  ;;  %v9765_v20 = vld [vmem:[%s13128_s1 + $0x258] sm:$0xff]   ;;  %v9766_v15 = vld [vmem:[%s13128_s1 + $0x2a0] sm:$0xff]   ;;  %v9768_v55 = vld [vmem:[%s13128_s1 + $0x2a8] sm:$0xff]  }
 0x44b   : > { %v9769_v63 = vld [vmem:[%s13128_s1 + $0x268] sm:$0xff]   ;;  %v9770_v9 = vld [vmem:[%s13128_s1 + $0x2b0] sm:$0xff]   ;;  %v9772_v26 = vld [vmem:[%s13128_s1 + $0x2b8] sm:$0xff]  }
 0x44c   : > { %9206 = vmatprep.subr.bf16.mxu1 %v9205_v3  ;;  %v9771_v10 = vld [vmem:[%s13128_s1 + $0x270] sm:$0xff]   ;;  %v9773_v31 = vld [vmem:[%s13128_s1 + $0x278] sm:$0xff]  }
 0x44d   : > { %9208 = vmatpush3.bf16.msra.mxu1 %v11441_v41  ;;  %v3250_v41 = vld [vmem:[%s13130_s3 + $0x30] sm:$0xff] }
 0x44e   : > { %9210 = vmatprep.subr.bf16.mxu1 %v9209_v30 }
 0x451   : > { %9212 = vmatpush3.bf16.msra.mxu1 %v11449_v6  ;;  %v3253_v6 = vld [vmem:[%s13130_s3 + $0x48] sm:$0xff] }
 0x452   : > { %9214 = vmatprep.subr.bf16.mxu1 %v9213_v0  ;;  %v9774_v0 = vld [vmem:[%s13128_s1 + $0x300] sm:$0xff]  }
 0x455   : > { %9216 = vmatpush3.bf16.msra.mxu1 %v11457_v28  ;;  %v3256_v28 = vld [vmem:[%s13130_s3 + $0x60] sm:$0xff] }
 0x456   : > { %9218 = vmatprep.subr.bf16.mxu1 %v11359_v16  ;;  %v3247_v16 = vld [vmem:[%s13130_s3 + $0x18] sm:$0xff] }
 0x459   : > { %9220 = vmatpush3.bf16.msra.mxu1 %v11468_v62  ;;  %v3243_v62 = vmax.f32 %v11377_v59, 0.0  ;;  %v3266_v59 = vld [vmem:[%s13130_s3 + $0xb0] sm:$0xff] }
 0x45a   : > { %9221 = vmatprep.subr.bf16.mxu1 %v13199_v17 }
 0x45c   : > { %3392 = vmatmul.mubr.f32.vlgmr.msra.gmra.mrb[24].mxu1 %v3244_v47 }
 0x45d   : > { %9223 = vmatpush3.bf16.msra.mxu1 %v11369_v57  ;;  %3396 = vmatprep.mubr.f32.mxu1 %v3248_v46  ;;  %v3254_v57 = vld [vmem:[%s13130_s3 + $0x50] sm:$0xff] }
 0x45e   : > { %9224 = vmatprep.subr.bf16.mxu1 %v13199_v17 }
 0x460   : > { %3397 = vmatmul.mubr.f32.gmra.mrb[26].mxu1 %v3247_v16 }
 0x461   : > { %9226 = vmatpush3.bf16.msra.mxu1 %v11380_v38  ;;  %3401 = vmatprep.mubr.f32.mxu1 %v3251_v2  ;;  %v3257_v38 = vld [vmem:[%s13130_s3 + $0x68] sm:$0xff] }
 0x462   : > { %9227 = vmatprep.subr.bf16.mxu1 %v13199_v17 }
 0x464   : > { %3402 = vmatmul.mubr.f32.gmra.mrb[28].mxu1 %v3250_v41 }
 0x465   : > { %9229 = vmatpush3.bf16.msra.mxu1 %v11388_v21  ;;  %3406 = vmatprep.mubr.f32.mxu1 %v3254_v57  ;;  %v3260_v21 = vld [vmem:[%s13130_s3 + $0x80] sm:$0xff] }
 0x466   : > { %9230 = vmatprep.subr.bf16.mxu1 %v13199_v17 }
 0x468   : > { %3407 = vmatmul.mubr.f32.gmra.mrb[30].mxu1 %v3253_v6 }
 0x469   : > { %9232 = vmatpush3.bf16.msra.mxu1 %v11390_v18  ;;  %3411 = vmatprep.mubr.f32.mxu1 %v3257_v38  ;;  %v3259_v18 = vld [vmem:[%s13130_s3 + $0x78] sm:$0xff] }
 0x46a   : > { %8975 = vmatprep.subr.mxu1 %v13261_v44 }
 0x46c   : > { %3412 = vmatmul.mubr.f32.gmra.mrb[32].mxu1 %v3256_v28 }
 0x46d   : > { %8976 = vmatpush3.msk.msra.mxu1 %vm606_vm5, %v3243_v62  ;;  %3416 = vmatprep.mubr.f32.mxu1 %v3260_v21 }
 0x46e   : > { %8331 = vmatprep.subr.bf16.mxu1 %v9758_v27 }
 0x470   : > { %3417 = vmatmul.mubr.f32.gmra.mrb[34].mxu1 %v3259_v18 }
 0x471   : > { %3421 = vmatprep.mubr.f32.mxu1 %v3263_v13 }
 0x474   : > { %3422 = vmatmul.mubr.f32.gmra.mrb[36].mxu1 %v3262_v42 }
 0x475   : > { %3426 = vmatprep.mubr.f32.mxu1 %v3266_v59 }
 0x478   : > { %3427 = vmatmul.mubr.f32.gmra.mrb[38].mxu1 %v3265_v60 }
 0x479   : > { %3431 = vmatprep.mubr.f32.mxu1 %v3269_v14 }
 0x47c   : > { %3432 = vmatmul.mubr.f32.gmra.mrb[40].mxu1 %v3268_v49 }
 0x47d   : > { %3436 = vmatprep.mubr.f32.mxu1 %v3272_v36 }
 0x480   : > { %3437 = vmatmul.mubr.f32.gmra.mrb[42].mxu1 %v3271_v52 }
 0x481   : > { %3441 = vmatprep.mubr.f32.mxu1 %v3275_v40 }
 0x484   : > { %3442 = vmatmul.mubr.f32.gmra.mrb[44].mxu1 %v3274_v56 }
 0x485   : > { %3446 = vmatprep.mubr.f32.mxu1 %v3278_v37 }
 0x488   : > { %3447 = vmatmul.mubr.f32.gmra.mrb[46].mxu1 %v3277_v1 }
 0x489   : > { %3451 = vmatprep.mubr.f32.mxu1 %v3281_v23 }
 0x48c   : > { %3452 = vmatmul.mubr.f32.gmra.mrb[48].mxu1 %v3280_v51 }
 0x48d   : > { %8977 = vmatprep.mubr.msk.f32.mxu1 %vm10048_vm12, %v13261_v44 }
 0x490   : > { %8978 = vmatmul.mubr.msk.f32.vlgmr.msra.gmra.mrb[50].mxu1 %vm3283_vm14, %v3246_v25 }
 0x491   : > { %8980 = vmatprep.mubr.msk.f32.mxu1 %vm10048_vm12, %v13261_v44  ;;  %8332 = vmatpush3.bf16.msra.mxu1 %v9759_v19 }
 0x492   : > { %8333 = vmatprep.subr.bf16.mxu1 %v9760_v22 }
 0x494   : > { %8981 = vmatmul.mubr.msk.f32.gmra.mrb[52].mxu1 %vm3283_vm14, %v3249_v8 }
 0x495   : > { %8983 = vmatprep.mubr.msk.f32.mxu1 %vm10048_vm12, %v13261_v44  ;;  %8334 = vmatpush3.bf16.msra.mxu1 %v9761_v48 }
 0x496   : > { %8335 = vmatprep.subr.bf16.mxu1 %v9762_v61 }
 0x498   : > { %8984 = vmatmul.mubr.msk.f32.gmra.mrb[54].mxu1 %vm3283_vm14, %v3252_v33 }
 0x499   : > { %8986 = vmatprep.mubr.msk.f32.mxu1 %vm10048_vm12, %v13261_v44  ;;  %8336 = vmatpush3.bf16.msra.mxu1 %v9763_v4 }
 0x49a   : > { %8337 = vmatprep.subr.bf16.mxu1 %v9764_v7 }
 0x49c   : > { %8987 = vmatmul.mubr.msk.f32.gmra.mrb[56].mxu1 %vm3283_vm14, %v3255_v45 }
 0x49d   : > { %8989 = vmatprep.mubr.msk.f32.mxu1 %vm10048_vm12, %v13261_v44  ;;  %8338 = vmatpush3.bf16.msra.mxu1 %v9765_v20 }
 0x49e   : > { %8339 = vmatprep.subr.bf16.mxu1 %v9766_v15 }
 0x4a0   : > { %8990 = vmatmul.mubr.msk.f32.gmra.mrb[58].mxu1 %vm3283_vm14, %v3258_v54 }
 0x4a1   : > { %8992 = vmatprep.mubr.msk.f32.mxu1 %vm10048_vm12, %v13261_v44  ;;  %8340 = vmatpush3.bf16.msra.mxu1 %v9767_v24 }
 0x4a2   : > { %8341 = vmatprep.subr.bf16.mxu1 %v9768_v55 }
 0x4a4   : > { %8993 = vmatmul.mubr.msk.f32.gmra.mrb[60].mxu1 %vm3283_vm14, %v3261_v58 }
 0x4a5   : > { %8995 = vmatprep.mubr.msk.f32.mxu1 %vm10048_vm12, %v13261_v44  ;;  %8342 = vmatpush3.bf16.msra.mxu1 %v9769_v63 }
 0x4a6   : > { %8343 = vmatprep.subr.bf16.mxu1 %v9770_v9 }
 0x4a8   : > { %8996 = vmatmul.mubr.msk.f32.gmra.mrb[62].mxu1 %vm3283_vm14, %v3264_v50 }
 0x4a9   : > { %8998 = vmatprep.mubr.msk.f32.mxu1 %vm10048_vm12, %v13261_v44  ;;  %8344 = vmatpush3.bf16.msra.mxu1 %v9771_v10 }
 0x4aa   : > { %8345 = vmatprep.subr.bf16.mxu1 %v9772_v26 }
 0x4ac   : > { %8999 = vmatmul.mubr.msk.f32.gmra.mrb[64].mxu1 %vm3283_vm14, %v3267_v5 }
 0x4ad   : > { %9001 = vmatprep.mubr.msk.f32.mxu1 %vm10048_vm12, %v13261_v44  ;;  %8346 = vmatpush3.bf16.msra.mxu1 %v9773_v31 }
 0x4ae   : > { %8389 = vmatprep.subr.bf16.mxu1 %v9774_v0 }
 0x4b0   : > { %9002 = vmatmul.mubr.msk.f32.gmra.mrb[66].mxu1 %vm3283_vm14, %v3270_v11 }
 0x4b1   : > { %9004 = vmatprep.mubr.msk.f32.mxu1 %vm10048_vm12, %v13261_v44 }
 0x4b4   : > { %9005 = vmatmul.mubr.msk.f32.gmra.mrb[68].mxu1 %vm3283_vm14, %v3273_v34 }
 0x4b5   : > { %9007 = vmatprep.mubr.msk.f32.mxu1 %vm10048_vm12, %v13261_v44 }
 0x4b8   : > { %9008 = vmatmul.mubr.msk.f32.gmra.mrb[70].mxu1 %vm3283_vm14, %v3276_v43 }
 0x4b9   : > { %9010 = vmatprep.mubr.msk.f32.mxu1 %vm10048_vm12, %v13261_v44 }
 0x4bc   : > { %9011 = vmatmul.mubr.msk.f32.gmra.mrb[72].mxu1 %vm3283_vm14, %v3279_v12 }
 0x4bd   : > { %9013 = vmatprep.mubr.msk.f32.mxu1 %vm10048_vm12, %v13261_v44 }
 0x4c0   : > { %9014 = vmatmul.mubr.msk.f32.gmra.mrb[74].mxu1 %vm3283_vm14, %v3282_v39  ;;  %vm3666_vm14 = vmand %vm3665_vm9, %vm610_vm3  ;;  %vm5063_vm9 = vcmask 818176  }
 0x52f   : > { %v8270_v3 = vpop.f32.mrb[24].mxu1 }
 0x530   : > { %v8271_v30 = vpop.f32.mrb[25].mxu1 }
 0x531   : > { %v8272_v47 = vadd.f32 %v8271_v30, %v8270_v3 }
 0x533   : > { %v8273_v46 = vpop.f32.mrb[26].mxu1 }
 0x534   : > { %v8274_v16 = vpop.f32.mrb[27].mxu1 }
 0x535   : > { %v8275_v2 = vadd.f32 %v8274_v16, %v8273_v46 }
 0x537   : > { %v8276_v41 = vpop.f32.mrb[28].mxu1 }
 0x538   : > { %v8277_v57 = vpop.f32.mrb[29].mxu1 }
 0x539   : > { %v8278_v6 = vadd.f32 %v8277_v57, %v8276_v41 }
 0x53b   : > { %v8279_v38 = vpop.f32.mrb[30].mxu1 }
 0x53c   : > { %v8280_v28 = vpop.f32.mrb[31].mxu1 }
 0x53d   : > { %v8281_v21 = vadd.f32 %v8280_v28, %v8279_v38 }
 0x53f   : > { %v8282_v62 = vpop.f32.mrb[32].mxu1 }
 0x540   : > { %v8283_v18 = vpop.f32.mrb[33].mxu1 }
 0x541   : > { %v8284_v13 = vadd.f32 %v8283_v18, %v8282_v62 }
 0x543   : > { %v8285_v42 = vpop.f32.mrb[34].mxu1 }
 0x544   : > { %v8286_v59 = vpop.f32.mrb[35].mxu1 }
 0x545   : > { %v8287_v60 = vadd.f32 %v8286_v59, %v8285_v42 }
 0x547   : > { %v8288_v14 = vpop.f32.mrb[36].mxu1 }
 0x548   : > { %v8289_v49 = vpop.f32.mrb[37].mxu1 }
 0x549   : > { %v11736_v36 = vadd.f32 %v8289_v49, %v8288_v14 }
 0x54b   : > { %v8291_v52 = vpop.f32.mrb[38].mxu1 }
 0x54c   : > { %v8292_v40 = vpop.f32.mrb[39].mxu1 }
 0x54d   : > { %v11738_v56 = vadd.f32 %v8292_v40, %v8291_v52 }
 0x54f   : > { %v8294_v37 = vpop.f32.mrb[40].mxu1 }
 0x550   : > { %v8295_v1 = vpop.f32.mrb[41].mxu1 }
 0x551   : > { %v11740_v23 = vadd.f32 %v8295_v1, %v8294_v37 }
 0x553   : > { %v8297_v51 = vpop.f32.mrb[42].mxu1 }
 0x554   : > { %v8298_v25 = vpop.f32.mrb[43].mxu1 }
 0x555   : > { %v11742_v8 = vadd.f32 %v8298_v25, %v8297_v51 }
 0x557   : > { %v8300_v33 = vpop.f32.mrb[44].mxu1 }
 0x558   : > { %v8301_v45 = vpop.f32.mrb[45].mxu1 }
 0x559   : > { %v11744_v54 = vadd.f32 %v8301_v45, %v8300_v33 }
 0x55b   : > { %v8303_v58 = vpop.f32.mrb[46].mxu1 }
 0x55c   : > { %v8304_v50 = vpop.f32.mrb[47].mxu1 }
 0x55d   : > { %v11746_v5 = vadd.f32 %v8304_v50, %v8303_v58 }
 0x55f   : > { %v8306_v11 = vpop.f32.mrb[48].mxu1 }
 0x560   : > { %v8307_v34 = vpop.f32.mrb[49].mxu1 }
 0x561   : > { %v11748_v43 = vadd.f32 %v8307_v34, %v8306_v11 }
 0x563   : > { %v3523_v12 = vpop.f32.mrb[50].mxu1 }
 0x564   : > { %v3524_v39 = vadd.f32 %v8272_v47, %v3523_v12  ;;  %v8979_v27 = vpop.f32.mrb[51].mxu1 }
 0x567   : > { %v3528_v19 = vpop.f32.mrb[52].mxu1 }
 0x568   : > { %v3529_v22 = vadd.f32 %v8275_v2, %v3528_v19  ;;  %v8982_v48 = vpop.f32.mrb[53].mxu1 }
 0x56a   : > { %v3587_v61 = vpack.c.bf16 %v3529_v22, %v3524_v39 }
 0x56b   : > { %v3533_v4 = vpop.f32.mrb[54].mxu1 }
 0x56c   : > { %v3595_v7 = vshrl.u32 %v3587_v61, 16  ;;  %v3598_v20 = vshll.u32 %v3587_v61, 16  ;;  %v3534_v15 = vadd.f32 %v8278_v6, %v3533_v4  ;;  %v8985_v24 = vpop.f32.mrb[55].mxu1 }
 0x56e   : > { %v3597_v55 = vrot.slane %v3595_v7, 2  ;;  %v3600_v63 = vrot.slane %v3598_v20, 3  ;;  %v9775_v20 = vld [vmem:[%s13128_s1 + $0x2c0] sm:$0xff]  }
 0x56f   : > { %v3538_v10 = vpop.f32.mrb[56].mxu1 }
 0x570   : > { %v3601_v26 = vor.u32 %v3600_v63, %v3597_v55  ;;  %v3539_v31 = vadd.f32 %v8281_v21, %v3538_v10  ;;  %v8988_v0 = vpop.f32.mrb[57].mxu1  ;;  %v9776_v63 = vld [vmem:[%s13128_s1 + $0x308] sm:$0xff]  }
 0x572   : > { %v3664_v3 = vsel %vm11752_vm15, 0, %v3601_v26  ;;  %v3588_v30 = vpack.c.bf16 %v3539_v31, %v3534_v15 }
 0x573   : > { %v3543_v47 = vpop.f32.mrb[58].mxu1  ;;  %v3669_v46 = vshrl.u32 %v3664_v3, 16  ;;  %v3671_v16 = vshll.u32 %v3664_v3, 16  ;;  %v3753_v40 = vrot.slane %v3664_v3, 5  ;;  %v3732_v37 = vrot.slane %v3664_v3, 1 }
 0x574   : > { %v3603_v2 = vshrl.u32 %v3588_v30, 16  ;;  %v3606_v41 = vshll.u32 %v3588_v30, 16  ;;  %v3544_v57 = vadd.f32 %v8284_v13, %v3543_v47  ;;  %v8991_v6 = vpop.f32.mrb[59].mxu1  ;;  %v3808_v33 = vrot.slane %v3664_v3, 6 }
 0x575   : > { %v3774_v38 = vrot.slane %v3669_v46, 5  ;;  %v3775_v28 = vrot.slane %v3671_v16, 6  ;;  %v3673_v42 = vrot.slane %v3671_v16, 1 }
 0x576   : > { %v3605_v62 = vrot.slane %v3603_v2, 2  ;;  %v3608_v18 = vrot.slane %v3606_v41, 3 }
 0x577   : > { %v3548_v59 = vpop.f32.mrb[60].mxu1  ;;  %v3776_v14 = vor.u32 %v3775_v28, %v3774_v38  ;;  %v3674_v25 = vor.u32 %v3673_v42, %v3669_v46  ;;  %v9778_v28 = vld [vmem:[%s13128_s1 + $0x310] sm:$0xff]  }
 0x578   : > { %v3609_v21 = vor.u32 %v3608_v18, %v3605_v62  ;;  %v3549_v49 = vadd.f32 %v8287_v60, %v3548_v59  ;;  %v8994_v52 = vpop.f32.mrb[61].mxu1 }
 0x57a   : > { %v11759_v1 = vsel %vm1046_vm10, %v3601_v26, %v3609_v21  ;;  %v3589_v51 = vpack.c.bf16 %v3549_v49, %v3544_v57  ;;  %v9777_v57 = vld [vmem:[%s13128_s1 + $0x2c8] sm:$0xff]  }
 0x57b   : > { %v3553_v13 = vpop.f32.mrb[62].mxu1  ;;  %v3676_v45 = vshll.u32 %v11759_v1, 16  ;;  %v3680_v58 = vshrl.u32 %v11759_v1, 16  ;;  %v3754_v50 = vrot.slane %v11759_v1, 5  ;;  %v3733_v11 = vrot.slane %v11759_v1, 1 }
 0x57c   : > { %v3612_v34 = vshrl.u32 %v3589_v51, 16  ;;  %v3615_v60 = vshll.u32 %v3589_v51, 16  ;;  %v3554_v12 = vadd.f32 %v11736_v36, %v3553_v13  ;;  %v8997_v39 = vpop.f32.mrb[63].mxu1  ;;  %v3809_v27 = vrot.slane %v11759_v1, 6  ;;  %v9779_v13 = vld [vmem:[%s13128_s1 + $0x2d0] sm:$0xff]  }
 0x57d   : > { %v3678_v19 = vrot.slane %v3676_v45, 1  ;;  %v11768_v22 = vsel %vm3002_vm13, %v3753_v40, %v3754_v50  ;;  %v11771_v48 = vsel %vm801_vm4, %v3732_v37, %v3733_v11  ;;  %v3777_v61 = vrot.slane %v3680_v58, 5 }
 0x57e   : > { %v3614_v4 = vrot.slane %v3612_v34, 2  ;;  %v3617_v7 = vrot.slane %v3615_v60, 3  ;;  %v11777_v15 = vsel %vm603_vm1, %v3808_v33, %v3809_v27  ;;  %v3778_v36 = vrot.slane %v3676_v45, 6 }
 0x57f   : > { %v3558_v24 = vpop.f32.mrb[64].mxu1  ;;  %v3679_v55 = vsel %vm610_vm3, %v3674_v25, %v3678_v19  ;;  %v3846_v10 = vrot.slane %v3680_v58, 2  ;;  %v3847_v26 = vrot.slane %v3676_v45, 3  ;;  %v3682_v41 = vor.u32 %v3680_v58, %v3678_v19 }
 0x580   : > { %v3618_v31 = vor.u32 %v3617_v7, %v3614_v4  ;;  %v3559_v0 = vadd.f32 %v11738_v56, %v3558_v24  ;;  %v9000_v30 = vpop.f32.mrb[65].mxu1  ;;  %4511 = vmatprep.mubr.bf16.mxu1 %v3679_v55  ;;  %v3779_v47 = vor.u32 %v3778_v36, %v3777_v61 }
 0x581   : > { %4512 = vmatmul.mubr.bf16.vlgmr.msra.gmra.mrb[76].mxu1 %v3664_v3  ;;  %v11784_v46 = vor.u32 %v3847_v26, %v3846_v10  ;;  %v9782_v30 = vld [vmem:[%s13128_s1 + $0x320] sm:$0xff]  }
 0x582   : > { %v11787_v16 = vsel %vm1046_vm10, %v3609_v21, %v3618_v31  ;;  %v3590_v2 = vpack.c.bf16 %v3559_v0, %v3554_v12  ;;  %8390 = vmatpush3.bf16.msra.mxu1 %v9775_v20  ;;  %v11793_v6 = vsel %vm3773_vm2, %v3776_v14, %v3779_v47  ;;  %v3828_v12 = vrot.slane %v11759_v1, 2 }
 0x583   : > { %v3563_v56 = vpop.f32.mrb[66].mxu1  ;;  %v3684_v38 = vshll.u32 %v11787_v16, 16  ;;  %v3688_v3 = vshrl.u32 %v11787_v16, 16  ;;  %8391 = vmatprep.subr.bf16.mxu1 %v9776_v63  ;;  %v3756_v62 = vrot.slane %v11787_v16, 5  ;;  %v3735_v18 = vrot.slane %v11787_v16, 1 }
 0x584   : > { %v3621_v42 = vshrl.u32 %v3590_v2, 16  ;;  %v3624_v59 = vshll.u32 %v3590_v2, 16  ;;  %v3564_v21 = vadd.f32 %v11740_v23, %v3563_v56  ;;  %v9003_v14 = vpop.f32.mrb[67].mxu1  ;;  %v3811_v49 = vrot.slane %v11787_v16, 6 }
 0x585   : > { %v3686_v52 = vrot.slane %v3684_v38, 1  ;;  %v11805_v40 = vsel %vm3002_vm13, %v3754_v50, %v3756_v62  ;;  %v11808_v37 = vsel %vm801_vm4, %v3733_v11, %v3735_v18  ;;  %v3781_v51 = vrot.slane %v3688_v3, 5  ;;  %v9780_v50 = vld [vmem:[%s13128_s1 + $0x318] sm:$0xff]  }
 0x586   : > { %v3623_v25 = vrot.slane %v3621_v42, 2  ;;  %v3626_v33 = vrot.slane %v3624_v59, 3  ;;  %8392 = vmatpush3.bf16.msra.mxu1 %v9777_v57  ;;  %v11814_v23 = vsel %vm603_vm1, %v3809_v27, %v3811_v49  ;;  %v3782_v45 = vrot.slane %v3684_v38, 6 }
 0x587   : > { %v3568_v58 = vpop.f32.mrb[68].mxu1  ;;  %v3687_v34 = vsel %vm610_vm3, %v3682_v41, %v3686_v52  ;;  %8393 = vmatprep.subr.bf16.mxu1 %v9778_v28  ;;  %v3849_v11 = vrot.slane %v3688_v3, 2  ;;  %v3850_v60 = vrot.slane %v3684_v38, 3  ;;  %v3829_v4 = vrot.slane %v11787_v16, 2 }
 0x588   : > { %v3627_v39 = vor.u32 %v3626_v33, %v3623_v25  ;;  %v3569_v19 = vadd.f32 %v11742_v8, %v3568_v58  ;;  %v9006_v61 = vpop.f32.mrb[69].mxu1  ;;  %4519 = vmatprep.mubr.bf16.mxu1 %v3687_v34  ;;  %v3783_v27 = vor.u32 %v3782_v45, %v3781_v51  ;;  %v3690_v7 = vor.u32 %v3688_v3, %v3686_v52  ;;  %v9781_v8 = vld [vmem:[%s13128_s1 + $0x2d8] sm:$0xff]   ;;  %v9783_v51 = vld [vmem:[%s13128_s1 + $0x2e0] sm:$0xff]  }
 0x589   : > { %4520 = vmatmul.mubr.bf16.gmra.mrb[80].mxu1 %v11759_v1  ;;  %v11824_v20 = vor.u32 %v3850_v60, %v3849_v11  ;;  %v3877_v36 = vrot.slane %v11787_v16, 3  ;;  %v11839_v10 = vsel %vm979_vm8, %v3828_v12, %v3829_v4  ;;  %v3876_v58 = vrot.slane %v11759_v1, 3 }
 0x58a   : > { %v11828_v24 = vsel %vm1046_vm10, %v3618_v31, %v3627_v39  ;;  %v3591_v55 = vpack.c.bf16 %v3569_v19, %v3564_v21  ;;  %8394 = vmatpush3.bf16.msra.mxu1 %v9779_v13  ;;  %v11834_v63 = vsel %vm3773_vm2, %v3779_v47, %v3783_v27 }
 0x58b   : > { %v3573_v26 = vpop.f32.mrb[70].mxu1  ;;  %v3692_v0 = vshll.u32 %v11828_v24, 16  ;;  %v3696_v31 = vshrl.u32 %v11828_v24, 16  ;;  %8395 = vmatprep.subr.bf16.mxu1 %v9780_v50  ;;  %v3758_v2 = vrot.slane %v11828_v24, 5  ;;  %v3737_v47 = vrot.slane %v11828_v24, 1 }
 0x58c   : > { %v3630_v41 = vshrl.u32 %v3591_v55, 16  ;;  %v3633_v57 = vshll.u32 %v3591_v55, 16  ;;  %v3574_v56 = vadd.f32 %v11744_v54, %v3573_v26  ;;  %v9009_v38 = vpop.f32.mrb[71].mxu1  ;;  %v3813_v3 = vrot.slane %v11828_v24, 6 }
 0x58d   : > { %v3694_v28 = vrot.slane %v3692_v0, 1  ;;  %v11851_v42 = vsel %vm3002_vm13, %v3756_v62, %v3758_v2  ;;  %v11854_v59 = vsel %vm801_vm4, %v3735_v18, %v3737_v47  ;;  %v3785_v21 = vrot.slane %v3696_v31, 5  ;;  %v9784_v62 = vld [vmem:[%s13128_s1 + $0x328] sm:$0xff]  }
 0x58e   : > { %v3632_v14 = vrot.slane %v3630_v41, 2  ;;  %v3635_v52 = vrot.slane %v3633_v57, 3  ;;  %8396 = vmatpush3.bf16.msra.mxu1 %v9781_v8  ;;  %v11860_v54 = vsel %vm603_vm1, %v3811_v49, %v3813_v3  ;;  %v3786_v25 = vrot.slane %v3692_v0, 6 }
 0x58f   : > { %v3578_v33 = vpop.f32.mrb[72].mxu1  ;;  %v3695_v13 = vsel %vm610_vm3, %v3690_v7, %v3694_v28  ;;  %8397 = vmatprep.subr.bf16.mxu1 %v9782_v30  ;;  %v11869_v18 = vsel %vm1046_vm10, %v11784_v46, %v11824_v20  ;;  %v3853_v45 = vrot.slane %v3696_v31, 2  ;;  %v3854_v60 = vrot.slane %v3692_v0, 3  ;;  %v9785_v7 = vld [vmem:[%s13128_s1 + $0x2e8] sm:$0xff]  }
 0x590   : > { %v3636_v34 = vor.u32 %v3635_v52, %v3632_v14  ;;  %v3579_v49 = vadd.f32 %v11746_v5, %v3578_v33  ;;  %v9012_v50 = vpop.f32.mrb[73].mxu1  ;;  %4527 = vmatprep.mubr.bf16.mxu1 %v3695_v13  ;;  %v11873_v11 = vor.u32 %v3786_v25, %v3785_v21  ;;  %v3698_v12 = vor.u32 %v3696_v31, %v3694_v28 }
 0x591   : > { %4528 = vmatmul.mubr.bf16.gmra.mrb[84].mxu1 %v11787_v16  ;;  %v3831_v19 = vrot.slane %v11828_v24, 2  ;;  %v11880_v46 = vsel %vm1151_vm11, %v3876_v58, %v3877_v36  ;;  %v3879_v1 = vrot.slane %v11828_v24, 3  ;;  %v11893_v8 = vor.u32 %v3854_v60, %v3853_v45 }
 0x592   : > { %v11884_v5 = vsel %vm1046_vm10, %v3627_v39, %v3636_v34  ;;  %v3592_v61 = vpack.c.bf16 %v3579_v49, %v3574_v56  ;;  %8398 = vmatpush3.bf16.msra.mxu1 %v9783_v51  ;;  %v11891_v55 = vsel %vm3773_vm2, %v3783_v27, %v11873_v11  ;;  %v9786_v39 = vld [vmem:[%s13128_s1 + $0x330] sm:$0xff]  }
 0x593   : > { %v3583_v26 = vpop.f32.mrb[74].mxu1  ;;  %v3700_v0 = vshll.u32 %v11884_v5, 16  ;;  %v3704_v31 = vshrl.u32 %v11884_v5, 16  ;;  %8399 = vmatprep.subr.bf16.mxu1 %v9784_v62  ;;  %v3760_v30 = vrot.slane %v11884_v5, 5  ;;  %v3739_v41 = vrot.slane %v11884_v5, 1  ;;  %v9787_v62 = vld [vmem:[%s13128_s1 + $0x2f0] sm:$0xff]  }
 0x594   : > { %v3639_v57 = vshrl.u32 %v3592_v61, 16  ;;  %v3642_v56 = vshll.u32 %v3592_v61, 16  ;;  %v3584_v27 = vadd.f32 %v11748_v43, %v3583_v26  ;;  %v9015_v38 = vpop.f32.mrb[75].mxu1  ;;  %v3815_v28 = vrot.slane %v11884_v5, 6 }
 0x595   : > { %v3702_v21 = vrot.slane %v3700_v0, 1  ;;  %v11905_v14 = vsel %vm3002_vm13, %v3758_v2, %v3760_v30  ;;  %v11908_v52 = vsel %vm801_vm4, %v3737_v47, %v3739_v41  ;;  %v3789_v51 = vrot.slane %v3704_v31, 5  ;;  %v9788_v2 = vld [vmem:[%s13128_s1 + $0x338] sm:$0xff]  }
 0x596   : > { %v3641_v25 = vrot.slane %v3639_v57, 2  ;;  %v3644_v33 = vrot.slane %v3642_v56, 3  ;;  %v3593_v13 = vpack.c.bf16 %v3584_v27, %v3584_v27  ;;  %8400 = vmatpush3.bf16.msra.mxu1 %v9785_v7  ;;  %v11914_v43 = vsel %vm603_vm1, %v3813_v3, %v3815_v28  ;;  %v9789_v27 = vld [vmem:[%s13128_s1 + $0x2f8] sm:$0xff]  }
 0x597   : > { %v3703_v45 = vsel %vm610_vm3, %v3698_v12, %v3702_v21  ;;  %v3706_v58 = vor.u32 %v3704_v31, %v3702_v21  ;;  %8401 = vmatprep.subr.bf16.mxu1 %v9786_v39  ;;  %v3790_v47 = vrot.slane %v3700_v0, 6  ;;  %v11923_v49 = vsel %vm1046_vm10, %v11824_v20, %v11893_v8 }
 0x598   : > { %v3645_v50 = vor.u32 %v3644_v33, %v3641_v25  ;;  %v3648_v60 = vshrl.u32 %v3593_v13, 16  ;;  %v3651_v61 = vshll.u32 %v3593_v13, 16  ;;  %4535 = vmatprep.mubr.bf16.mxu1 %v3703_v45  ;;  %v11930_v3 = vsel %vm979_vm8, %v3829_v4, %v3831_v19 }
 0x599   : > { %4536 = vmatmul.mubr.bf16.gmra.mrb[88].mxu1 %v11828_v24  ;;  %v3791_v12 = vor.u32 %v3790_v47, %v3789_v51  ;;  %v3857_v7 = vrot.slane %v3704_v31, 2  ;;  %v3858_v26 = vrot.slane %v3700_v0, 3  ;;  %v3833_v39 = vrot.slane %v11884_v5, 2  ;;  %v9791_v24 = vld [vmem:[%s13128_s1 + $0x340] sm:$0xff]  }
 0x59a   : > { %v11935_v20 = vsel %vm1046_vm10, %v3636_v34, %v3645_v50  ;;  %v3650_v57 = vrot.slane %v3648_v60, 2  ;;  %v3653_v56 = vrot.slane %v3651_v61, 3  ;;  %8402 = vmatpush3.bf16.msra.mxu1 %v9787_v62  ;;  %v11945_v4 = vsel %vm1151_vm11, %v3877_v36, %v3879_v1  ;;  %v9790_v34 = vld [vmem:[%s13128_s1 + $0x380] sm:$0xff]  }
 0x59b   : > { %v3708_v0 = vshll.u32 %v11935_v20, 16  ;;  %v3712_v31 = vshrl.u32 %v11935_v20, 16  ;;  %8403 = vmatprep.subr.bf16.mxu1 %v9788_v2  ;;  %v3762_v38 = vrot.slane %v11935_v20, 5  ;;  %v3741_v21 = vrot.slane %v11935_v20, 1 }
 0x59c   : > { %v3654_v51 = vor.u32 %v3653_v56, %v3650_v57  ;;  %v11958_v16 = vsel %vm3773_vm2, %v11873_v11, %v3791_v12  ;;  %v3817_v36 = vrot.slane %v11935_v20, 6  ;;  %v3859_v25 = vor.u32 %v3858_v26, %v3857_v7 }
 0x59d   : > { %v3710_v33 = vrot.slane %v3708_v0, 1  ;;  %v11962_v13 = vsel %vm3002_vm13, %v3760_v30, %v3762_v38  ;;  %v11965_v62 = vsel %vm801_vm4, %v3739_v41, %v3741_v21  ;;  %v3793_v45 = vrot.slane %v3712_v31, 5 }
 0x59e   : > { %v3655_v2 = vsel %vm1046_vm10, %v3645_v50, %v3654_v51  ;;  %8404 = vmatpush3.bf16.msra.mxu1 %v9789_v27  ;;  %v11969_v47 = vsel %vm603_vm1, %v3815_v28, %v3817_v36  ;;  %v3794_v60 = vrot.slane %v3708_v0, 6  ;;  %v11973_v11 = vsel %vm1046_vm10, %v11893_v8, %v3859_v25 }
 0x59f   : > { %v11975_v61 = vsel %vm3666_vm14, %v3655_v2, 0  ;;  %v3711_v30 = vsel %vm610_vm3, %v3706_v58, %v3710_v33  ;;  %v3714_v7 = vor.u32 %v3712_v31, %v3710_v33  ;;  %8447 = vmatprep.subr.bf16.mxu1 %v9790_v34  ;;  %v11981_v41 = vsel %vm979_vm8, %v3831_v19, %v3833_v39 }
 0x5a0   : > { %4543 = vmatprep.mubr.bf16.mxu1 %v3711_v30  ;;  %v3716_v28 = vshll.u32 %v11975_v61, 16  ;;  %v3720_v50 = vshrl.u32 %v11975_v61, 16  ;;  %v13202_v26 = vrot.slane %v11975_v61, 5  ;;  %v13201_v8 = vrot.slane %v11975_v61, 1 }
 0x5a1   : > { %4544 = vmatmul.mubr.bf16.gmra.mrb[92].mxu1 %v11884_v5  ;;  %v3795_v57 = vor.u32 %v3794_v60, %v3793_v45  ;;  %v3819_v58 = vrot.slane %v11975_v61, 6  ;;  %v3861_v56 = vrot.slane %v3712_v31, 2  ;;  %v3862_v27 = vrot.slane %v3708_v0, 3 }
 0x5a2   : > { %v3718_v34 = vrot.slane %v3716_v28, 1  ;;  %v11992_v19 = vsel %vm3002_vm13, %v3762_v38, %v13202_v26  ;;  %v11997_v51 = vsel %vm801_vm4, %v3741_v21, %v13201_v8  ;;  %v3797_v33 = vrot.slane %v3720_v50, 5 }
 0x5a3   : > { %v12000_v2 = vsel %vm3773_vm2, %v3791_v12, %v3795_v57  ;;  %v12005_v31 = vsel %vm603_vm1, %v3817_v36, %v3819_v58  ;;  %v3798_v0 = vrot.slane %v3716_v28, 6  ;;  %v3863_v45 = vor.u32 %v3862_v27, %v3861_v56 }
 0x5a4   : > { %v3719_v60 = vsel %vm610_vm3, %v3714_v7, %v3718_v34  ;;  %v3835_v38 = vrot.slane %v11935_v20, 2  ;;  %v3865_v30 = vrot.slane %v3720_v50, 2  ;;  %v3866_v12 = vrot.slane %v3716_v28, 3 }
 0x5a5   : > { %4551 = vmatprep.mubr.bf16.mxu1 %v3719_v60  ;;  %v12009_v17 = vor.u32 %v3798_v0, %v3797_v33  ;;  %v12012_v21 = vsel %vm1046_vm10, %v3859_v25, %v3863_v45  ;;  %v3837_v8 = vrot.slane %v11975_v61, 2  ;;  %v3881_v36 = vrot.slane %v11884_v5, 3  ;;  %v9802_v60 = vld [vmem:[%s13128_s1 + $0x3b0] sm:$0xff]  }
 0x5a6   : > { %v12016_v26 = vsel %vm979_vm8, %v3833_v39, %v3835_v38  ;;  %v3883_v56 = vrot.slane %v11935_v20, 3  ;;  %v3885_v7 = vrot.slane %v11975_v61, 3  ;;  %v12025_v33 = vor.u32 %v3866_v12, %v3865_v30  ;;  %v9806_v30 = vld [vmem:[%s13128_s1 + $0x400] sm:$0xff]  }
 0x5a7   : > { %v12023_v27 = vsel %vm3773_vm2, %v3795_v57, %v12009_v17  ;;  %v12030_v25 = vsel %vm979_vm8, %v3835_v38, %v3837_v8  ;;  %v3722_v28 = vor.u32 %v3720_v50, %v3718_v34  ;;  %v12035_v5 = vsel %vm1151_vm11, %v3879_v1, %v3881_v36  ;;  %v9792_v1 = vld [vmem:[%s13128_s1 + $0x388] sm:$0xff]   ;;  %v9795_v50 = vld [vmem:[%s13128_s1 + $0x350] sm:$0xff]   ;;  %v9798_v34 = vld [vmem:[%s13128_s1 + $0x3a0] sm:$0xff]  }
 0x5a8   : > { %v12038_v39 = vsel %vm1151_vm11, %v3881_v36, %v3883_v56  ;;  %v12043_v57 = vsel %vm1151_vm11, %v3883_v56, %v3885_v7  ;;  %v12048_v0 = vsel %vm1046_vm10, %v3863_v45, %v12025_v33  ;;  %v9799_v45 = vld [vmem:[%s13128_s1 + $0x360] sm:$0xff]   ;;  %v9803_v38 = vld [vmem:[%s13128_s1 + $0x370] sm:$0xff]   ;;  %vm5297_vm14 = vcmask 1040384  }
 0x5a9   : > { %4552 = vmatmul.mubr.bf16.gmra.mrb[96].mxu1 %v11935_v20  ;;  %v9793_v20 = vld [vmem:[%s13128_s1 + $0x348] sm:$0xff]   ;;  %v9807_v12 = vld [vmem:[%s13128_s1 + $0x3c0] sm:$0xff]  }
 0x5aa   : > { %4559 = vmatprep.mubr.bf16.mxu1 %v3722_v28  ;;  %v9814_v36 = vld [vmem:[%s13128_s1 + $0x420] sm:$0xff]   ;;  %v9818_v28 = vld [vmem:[%s13128_s1 + $0x430] sm:$0xff]  }
 0x5ab   : > { %v9815_v56 = vld [vmem:[%s13128_s1 + $0x3e0] sm:$0xff]  }
 0x5b1   : > { %4560 = vmatmul.mubr.bf16.gmra.mrb[100].mxu1 %v11975_v61 }
 0x5b2   : > { %4599 = vmatprep.mubr.bf16.mxu1 %v11768_v22  ;;  %v9794_v22 = vld [vmem:[%s13128_s1 + $0x390] sm:$0xff]  }
 0x5b9   : > { %4600 = vmatmul.mubr.bf16.vlgmr.msra.gmra.mrb[104].mxu1 %v11771_v48  ;;  %v9796_v48 = vld [vmem:[%s13128_s1 + $0x398] sm:$0xff]  }
 0x5ba   : > { %4607 = vmatprep.mubr.bf16.mxu1 %v11805_v40  ;;  %8448 = vmatpush3.bf16.msra.mxu1 %v9791_v24  ;;  %v9797_v40 = vld [vmem:[%s13128_s1 + $0x358] sm:$0xff]   ;;  %v9819_v24 = vld [vmem:[%s13128_s1 + $0x3f0] sm:$0xff]  }
 0x5bb   : > { %8449 = vmatprep.subr.bf16.mxu1 %v9792_v1 }
 0x5be   : > { %8450 = vmatpush3.bf16.msra.mxu1 %v9793_v20 }
 0x5bf   : > { %8451 = vmatprep.subr.bf16.mxu1 %v9794_v22 }
 0x5c1   : > { %4608 = vmatmul.mubr.bf16.gmra.mrb[108].mxu1 %v11808_v37  ;;  %v9800_v37 = vld [vmem:[%s13128_s1 + $0x3a8] sm:$0xff]  }
 0x5c2   : > { %4615 = vmatprep.mubr.bf16.mxu1 %v11851_v42  ;;  %8452 = vmatpush3.bf16.msra.mxu1 %v9795_v50  ;;  %v9801_v42 = vld [vmem:[%s13128_s1 + $0x368] sm:$0xff]  }
 0x5c3   : > { %8453 = vmatprep.subr.bf16.mxu1 %v9796_v48 }
 0x5c6   : > { %8454 = vmatpush3.bf16.msra.mxu1 %v9797_v40 }
 0x5c7   : > { %8455 = vmatprep.subr.bf16.mxu1 %v9798_v34 }
 0x5c9   : > { %4616 = vmatmul.mubr.bf16.gmra.mrb[112].mxu1 %v11854_v59  ;;  %v9804_v59 = vld [vmem:[%s13128_s1 + $0x3b8] sm:$0xff]  }
 0x5ca   : > { %4623 = vmatprep.mubr.bf16.mxu1 %v11905_v14  ;;  %8456 = vmatpush3.bf16.msra.mxu1 %v9799_v45  ;;  %v9805_v14 = vld [vmem:[%s13128_s1 + $0x378] sm:$0xff]  }
 0x5cb   : > { %8457 = vmatprep.subr.bf16.mxu1 %v9800_v37 }
 0x5ce   : > { %8458 = vmatpush3.bf16.msra.mxu1 %v9801_v42 }
 0x5cf   : > { %8459 = vmatprep.subr.bf16.mxu1 %v9802_v60 }
 0x5d1   : > { %4624 = vmatmul.mubr.bf16.gmra.mrb[116].mxu1 %v11908_v52  ;;  %v13316_v52 = vrot.slane %v11975_v61, 5 }
 0x5d2   : > { %4631 = vmatprep.mubr.bf16.mxu1 %v11962_v13  ;;  %8460 = vmatpush3.bf16.msra.mxu1 %v9803_v38  ;;  %v13317_v13 = vrot.slane %v11975_v61, 1 }
 0x5d3   : > { %8461 = vmatprep.subr.bf16.mxu1 %v9804_v59 }
 0x5d6   : > { %8462 = vmatpush3.bf16.msra.mxu1 %v9805_v14 }
 0x5d7   : > { %8505 = vmatprep.subr.bf16.mxu1 %v9806_v30 }
 0x5d9   : > { %4632 = vmatmul.mubr.bf16.gmra.mrb[120].mxu1 %v11965_v62  ;;  %v9808_v62 = vld [vmem:[%s13128_s1 + $0x408] sm:$0xff]  }
 0x5da   : > { %4639 = vmatprep.mubr.bf16.mxu1 %v11992_v19  ;;  %v9809_v19 = vld [vmem:[%s13128_s1 + $0x3c8] sm:$0xff]  }
 0x5e1   : > { %4640 = vmatmul.mubr.bf16.gmra.mrb[124].mxu1 %v11997_v51  ;;  %v9811_v51 = vld [vmem:[%s13128_s1 + $0x3d0] sm:$0xff]  }
 0x5e2   : > { %4647 = vmatprep.mubr.bf16.mxu1 %v13316_v52 }
 0x5e9   : > { %4648 = vmatmul.mubr.bf16.gmra.mrb[128].mxu1 %v13317_v13 }
 0x5ea   : > { %4687 = vmatprep.mubr.bf16.mxu1 %v11777_v15  ;;  %v9810_v15 = vld [vmem:[%s13128_s1 + $0x410] sm:$0xff]  }
 0x5f1   : > { %4688 = vmatmul.mubr.bf16.vlgmr.msra.gmra.mrb[132].mxu1 %v11793_v6  ;;  %v9812_v6 = vld [vmem:[%s13128_s1 + $0x418] sm:$0xff]  }
 0x5f2   : > { %4695 = vmatprep.mubr.bf16.mxu1 %v11814_v23  ;;  %8506 = vmatpush3.bf16.msra.mxu1 %v9807_v12  ;;  %v9813_v23 = vld [vmem:[%s13128_s1 + $0x3d8] sm:$0xff]  }
 0x5f3   : > { %8507 = vmatprep.subr.bf16.mxu1 %v9808_v62 }
 0x5f6   : > { %8508 = vmatpush3.bf16.msra.mxu1 %v9809_v19 }
 0x5f7   : > { %8509 = vmatprep.subr.bf16.mxu1 %v9810_v15 }
 0x5f9   : > { %4696 = vmatmul.mubr.bf16.gmra.mrb[136].mxu1 %v11834_v63  ;;  %v9816_v63 = vld [vmem:[%s13128_s1 + $0x428] sm:$0xff]  }
 0x5fa   : > { %4703 = vmatprep.mubr.bf16.mxu1 %v11860_v54  ;;  %8510 = vmatpush3.bf16.msra.mxu1 %v9811_v51  ;;  %v9817_v54 = vld [vmem:[%s13128_s1 + $0x3e8] sm:$0xff]  }
 0x5fb   : > { %8511 = vmatprep.subr.bf16.mxu1 %v9812_v6 }
 0x5fe   : > { %8512 = vmatpush3.bf16.msra.mxu1 %v9813_v23 }
 0x5ff   : > { %8513 = vmatprep.subr.bf16.mxu1 %v9814_v36 }
 0x601   : > { %4704 = vmatmul.mubr.bf16.gmra.mrb[140].mxu1 %v11891_v55  ;;  %v9820_v55 = vld [vmem:[%s13128_s1 + $0x438] sm:$0xff]  }
 0x602   : > { %4711 = vmatprep.mubr.bf16.mxu1 %v11914_v43  ;;  %8514 = vmatpush3.bf16.msra.mxu1 %v9815_v56  ;;  %v9821_v43 = vld [vmem:[%s13128_s1 + $0x3f8] sm:$0xff]  }
 0x603   : > { %8515 = vmatprep.subr.bf16.mxu1 %v9816_v63 }
 0x606   : > { %8516 = vmatpush3.bf16.msra.mxu1 %v9817_v54  ;;  %v3887_v54 = vsel %vm1151_vm11, %v3885_v7, %v11139_v35 }
 0x607   : > { %8517 = vmatprep.subr.bf16.mxu1 %v9818_v28 }
 0x609   : > { %4712 = vmatmul.mubr.bf16.gmra.mrb[144].mxu1 %v11958_v16  ;;  %v9822_v16 = vld [vmem:[%s13128_s1 + $0x440] sm:$0xff]  }
 0x60a   : > { %4719 = vmatprep.mubr.bf16.mxu1 %v11969_v47  ;;  %8518 = vmatpush3.bf16.msra.mxu1 %v9819_v24  ;;  %v9823_v47 = vld [vmem:[%s13128_s1 + $0x448] sm:$0xff]  }
 0x60b   : > { %8519 = vmatprep.subr.bf16.mxu1 %v9820_v55 }
 0x60e   : > { %8520 = vmatpush3.bf16.msra.mxu1 %v9821_v43 }
 0x60f   : > { %9016 = vmatprep.subr.bf16.mxu1 %v13261_v44 }
 0x611   : > { %4720 = vmatmul.mubr.bf16.gmra.mrb[148].mxu1 %v12000_v2 }
 0x612   : > { %4727 = vmatprep.mubr.bf16.mxu1 %v12005_v31 }
 0x619   : > { %4728 = vmatmul.mubr.bf16.gmra.mrb[152].mxu1 %v12023_v27 }
 0x61a   : > { %4735 = vmatprep.mubr.bf16.mxu1 %v3819_v58  ;;  %v3869_v58 = vsel %vm1046_vm10, %v12025_v33, %v11211_v32 }
 0x621   : > { %4736 = vmatmul.mubr.bf16.gmra.mrb[156].mxu1 %v12009_v17  ;;  %v9824_v17 = vld [vmem:[%s13128_s1 + $0x450] sm:$0xff]  }
 0x622   : > { %4775 = vmatprep.mubr.bf16.mxu1 %v11869_v18  ;;  %v9826_v18 = vld [vmem:[%s13128_s1 + $0x460] sm:$0xff]  }
 0x629   : > { %4776 = vmatmul.mubr.bf16.vlgmr.msra.gmra.mrb[160].mxu1 %v11839_v10  ;;  %v9825_v10 = vld [vmem:[%s13128_s1 + $0x458] sm:$0xff]  }
 0x62a   : > { %4783 = vmatprep.mubr.bf16.mxu1 %v11923_v49  ;;  %9017 = vmatpush3.bf16.msra.mxu1 %v9822_v16  ;;  %v9827_v49 = vld [vmem:[%s13128_s1 + $0x468] sm:$0xff]  }
 0x62b   : > { %9018 = vmatprep.subr.bf16.mxu1 %v13261_v44 }
 0x62e   : > { %9019 = vmatpush3.bf16.msra.mxu1 %v9823_v47 }
 0x62f   : > { %9020 = vmatprep.subr.bf16.mxu1 %v13261_v44 }
 0x631   : > { %4784 = vmatmul.mubr.bf16.gmra.mrb[164].mxu1 %v11930_v3  ;;  %v9828_v3 = vld [vmem:[%s13128_s1 + $0x470] sm:$0xff]  }
 0x632   : > { %4791 = vmatprep.mubr.bf16.mxu1 %v11973_v11  ;;  %9021 = vmatpush3.bf16.msra.mxu1 %v9824_v17  ;;  %v9829_v11 = vld [vmem:[%s13128_s1 + $0x478] sm:$0xff]  }
 0x633   : > { %9022 = vmatprep.subr.bf16.mxu1 %v13261_v44 }
 0x636   : > { %9023 = vmatpush3.bf16.msra.mxu1 %v9825_v10 }
 0x637   : > { %9024 = vmatprep.subr.bf16.mxu1 %v13261_v44 }
 0x639   : > { %4792 = vmatmul.mubr.bf16.gmra.mrb[168].mxu1 %v11981_v41  ;;  %v13318_v41 = vmov 0.0|0.0  }
 0x63a   : > { %4799 = vmatprep.mubr.bf16.mxu1 %v12012_v21  ;;  %9025 = vmatpush3.bf16.msra.mxu1 %v9826_v18 }
 0x63b   : > { %9026 = vmatprep.subr.bf16.mxu1 %v13261_v44 }
 0x63e   : > { %9027 = vmatpush3.bf16.msra.mxu1 %v9827_v49 }
 0x63f   : > { %9028 = vmatprep.subr.bf16.mxu1 %v13261_v44 }
 0x641   : > { %4800 = vmatmul.mubr.bf16.gmra.mrb[172].mxu1 %v12016_v26  ;;  %v3839_v26 = vsel %vm979_vm8, %v3837_v8, %v11206_v29 }
 0x642   : > { %4807 = vmatprep.mubr.bf16.mxu1 %v12048_v0  ;;  %9029 = vmatpush3.bf16.msra.mxu1 %v9828_v3 }
 0x643   : > { %9030 = vmatprep.subr.bf16.mxu1 %v13261_v44 }
 0x646   : > { %9031 = vmatpush3.bf16.msra.mxu1 %v9829_v11 }
 0x647   : > { %9233 = vmatprep.subr.bf16.mxu1 %v13318_v41 }
 0x649   : > { %4808 = vmatmul.mubr.bf16.gmra.mrb[176].mxu1 %v12030_v25 }
 0x64a   : > { %4815 = vmatprep.mubr.bf16.mxu1 %v3869_v58 }
 0x651   : > { %4816 = vmatmul.mubr.bf16.gmra.mrb[180].mxu1 %v3839_v26 }
 0x652   : > { %4823 = vmatprep.mubr.bf16.mxu1 %v11211_v32 }
 0x654   : > { %v8347_v2 = vpop.f32.mrb[76].mxu1 }
 0x655   : > { %v8348_v31 = vpop.f32.mrb[77].mxu1 }
 0x656   : > { %v8349_v21 = vadd.f32 %v8348_v31, %v8347_v2  ;;  %v8350_v27 = vpop.f32.mrb[78].mxu1 }
 0x657   : > { %v8351_v0 = vpop.f32.mrb[79].mxu1 }
 0x658   : > { %v8352_v1 = vadd.f32 %v8351_v0, %v8350_v27 }
 0x659   : > { %4824 = vmatmul.mubr.bf16.gmra.mrb[184].mxu1 %v11206_v29 }
 0x65a   : > { %9032 = vmatprep.mubr.msk.bf16.mxu1 %vm10048_vm12, %v13261_v44 }
 0x65c   : > { %v8353_v33 = vpop.f32.mrb[80].mxu1 }
 0x65d   : > { %v8354_v25 = vpop.f32.mrb[81].mxu1 }
 0x65e   : > { %v8355_v20 = vadd.f32 %v8354_v25, %v8353_v33  ;;  %v8356_v22 = vpop.f32.mrb[82].mxu1 }
 0x65f   : > { %v8357_v50 = vpop.f32.mrb[83].mxu1 }
 0x660   : > { %v8358_v8 = vadd.f32 %v8357_v50, %v8356_v22 }
 0x661   : > { %9033 = vmatmul.mubr.bf16.vlgmr.msra.gmra.mrb[188].mxu1 %v11880_v46 }
 0x662   : > { %9036 = vmatprep.mubr.msk.bf16.mxu1 %vm10048_vm12, %v13261_v44 }
 0x664   : > { %v8359_v32 = vpop.f32.mrb[84].mxu1 }
 0x665   : > { %v8360_v48 = vpop.f32.mrb[85].mxu1 }
 0x666   : > { %v12232_v40 = vadd.f32 %v8360_v48, %v8359_v32  ;;  %v8362_v34 = vpop.f32.mrb[86].mxu1 }
 0x667   : > { %v8363_v29 = vpop.f32.mrb[87].mxu1 }
 0x668   : > { %v12234_v45 = vadd.f32 %v8363_v29, %v8362_v34 }
 0x669   : > { %9037 = vmatmul.mubr.bf16.gmra.mrb[192].mxu1 %v11945_v4 }
 0x66a   : > { %9040 = vmatprep.mubr.msk.bf16.mxu1 %vm10048_vm12, %v13261_v44 }
 0x66c   : > { %v8365_v37 = vpop.f32.mrb[88].mxu1 }
 0x66d   : > { %v8366_v42 = vpop.f32.mrb[89].mxu1 }
 0x66e   : > { %v12239_v60 = vadd.f32 %v8366_v42, %v8365_v37  ;;  %v8368_v46 = vpop.f32.mrb[90].mxu1 }
 0x66f   : > { %v8369_v38 = vpop.f32.mrb[91].mxu1 }
 0x670   : > { %v12241_v59 = vadd.f32 %v8369_v38, %v8368_v46 }
 0x671   : > { %9041 = vmatmul.mubr.bf16.gmra.mrb[196].mxu1 %v12035_v5 }
 0x672   : > { %9044 = vmatprep.mubr.msk.bf16.mxu1 %vm10048_vm12, %v13261_v44 }
 0x674   : > { %v8371_v14 = vpop.f32.mrb[92].mxu1 }
 0x675   : > { %v8372_v30 = vpop.f32.mrb[93].mxu1 }
 0x676   : > { %v12246_v52 = vadd.f32 %v8372_v30, %v8371_v14  ;;  %v8374_v4 = vpop.f32.mrb[94].mxu1 }
 0x677   : > { %v8375_v13 = vpop.f32.mrb[95].mxu1 }
 0x678   : > { %v12248_v12 = vadd.f32 %v8375_v13, %v8374_v4 }
 0x679   : > { %9045 = vmatmul.mubr.bf16.gmra.mrb[200].mxu1 %v12038_v39 }
 0x67a   : > { %9048 = vmatprep.mubr.msk.bf16.mxu1 %vm10048_vm12, %v13261_v44 }
 0x67c   : > { %v8377_v62 = vpop.f32.mrb[96].mxu1 }
 0x67d   : > { %v8378_v19 = vpop.f32.mrb[97].mxu1 }
 0x67e   : > { %v12253_v15 = vadd.f32 %v8378_v19, %v8377_v62  ;;  %v8380_v5 = vpop.f32.mrb[98].mxu1 }
 0x67f   : > { %v8381_v51 = vpop.f32.mrb[99].mxu1 }
 0x680   : > { %v12255_v6 = vadd.f32 %v8381_v51, %v8380_v5 }
 0x681   : > { %9049 = vmatmul.mubr.bf16.gmra.mrb[204].mxu1 %v12043_v57  ;;  %v12271_v57 = vld [vmem:[%s13129_s2 + $0x1] ss:$0 sm:$0xff] }
 0x682   : > { %9052 = vmatprep.mubr.msk.bf16.mxu1 %vm10048_vm12, %v13261_v44  ;;  %v4514_v55 = vadd.f32 %v8349_v21, %v12271_v57  ;;  %v4517_v61 = vadd.f32 %v8352_v1, %v12271_v57  ;;  %v4522_v3 = vadd.f32 %v8355_v20, %v12271_v57  ;;  %v4525_v2 = vadd.f32 %v8358_v8, %v12271_v57 }
 0x683   : > { %v4530_v1 = vadd.f32 %v12232_v40, %v12271_v57  ;;  %v4533_v20 = vadd.f32 %v12234_v45, %v12271_v57  ;;  %v4538_v29 = vadd.f32 %v12239_v60, %v12271_v57  ;;  %v4541_v40 = vadd.f32 %v12241_v59, %v12271_v57 }
 0x684   : > { %v8383_v23 = vpop.f32.mrb[100].mxu1  ;;  %v4546_v45 = vadd.f32 %v12246_v52, %v12271_v57  ;;  %v4549_v60 = vadd.f32 %v12248_v12, %v12271_v57  ;;  %v4554_v59 = vadd.f32 %v12253_v15, %v12271_v57  ;;  %v4557_v52 = vadd.f32 %v12255_v6, %v12271_v57 }
 0x685   : > { %v8384_v36 = vpop.f32.mrb[101].mxu1 }
 0x686   : > { %v12260_v56 = vadd.f32 %v8384_v36, %v8383_v23  ;;  %v8386_v39 = vpop.f32.mrb[102].mxu1 }
 0x687   : > { %v8387_v63 = vpop.f32.mrb[103].mxu1 }
 0x688   : > { %v4562_v12 = vadd.f32 %v12260_v56, %v12271_v57 }
 0x689   : > { %9053 = vmatmul.mubr.bf16.gmra.mrb[208].mxu1 %v3887_v54 }
 0x68a   : > { %9056 = vmatprep.mubr.msk.bf16.mxu1 %vm10048_vm12, %v13261_v44 }
 0x68c   : > { %v8405_v28 = vpop.f32.mrb[104].mxu1 }
 0x68d   : > { %v8406_v24 = vpop.f32.mrb[105].mxu1 }
 0x68e   : > { %v8407_v43 = vadd.f32 %v8406_v24, %v8405_v28  ;;  %v8408_v16 = vpop.f32.mrb[106].mxu1 }
 0x68f   : > { %v8409_v47 = vpop.f32.mrb[107].mxu1 }
 0x690   : > { %v12275_v17 = vadd.f32 %v8407_v43, %v4514_v55  ;;  %v8410_v7 = vadd.f32 %v8409_v47, %v8408_v16 }
 0x691   : > { %9057 = vmatmul.mubr.bf16.gmra.mrb[212].mxu1 %v11139_v35 }
 0x692   : > { %v12278_v10 = vadd.f32 %v8410_v7, %v4517_v61  ;;  %9086 = vmatprep.mubr.msk.f32.mxu1 %vm10048_vm12, %v13261_v44 }
 0x694   : > { %v8411_v18 = vpop.f32.mrb[108].mxu1 }
 0x695   : > { %v8412_v49 = vpop.f32.mrb[109].mxu1 }
 0x696   : > { %v8413_v11 = vadd.f32 %v8412_v49, %v8411_v18  ;;  %v8414_v58 = vpop.f32.mrb[110].mxu1 }
 0x697   : > { %v8415_v26 = vpop.f32.mrb[111].mxu1 }
 0x698   : > { %v12284_v31 = vadd.f32 %v8413_v11, %v4522_v3  ;;  %v8416_v21 = vadd.f32 %v8415_v26, %v8414_v58 }
 0x69a   : > { %v12286_v27 = vadd.f32 %v8416_v21, %v4525_v2 }
 0x69c   : > { %v8417_v35 = vpop.f32.mrb[112].mxu1 }
 0x69d   : > { %v8418_v0 = vpop.f32.mrb[113].mxu1 }
 0x69e   : > { %v8419_v33 = vadd.f32 %v8418_v0, %v8417_v35  ;;  %v8420_v25 = vpop.f32.mrb[114].mxu1 }
 0x69f   : > { %v8421_v22 = vpop.f32.mrb[115].mxu1 }
 0x6a0   : > { %v4618_v50 = vadd.f32 %v8419_v33, %v4530_v1  ;;  %v8422_v32 = vadd.f32 %v8421_v22, %v8420_v25 }
 0x6a2   : > { %v4621_v48 = vadd.f32 %v8422_v32, %v4533_v20 }
 0x6a4   : > { %v8423_v8 = vpop.f32.mrb[116].mxu1 }
 0x6a5   : > { %v8424_v34 = vpop.f32.mrb[117].mxu1 }
 0x6a6   : > { %v8425_v37 = vadd.f32 %v8424_v34, %v8423_v8  ;;  %v8426_v42 = vpop.f32.mrb[118].mxu1 }
 0x6a7   : > { %v8427_v46 = vpop.f32.mrb[119].mxu1 }
 0x6a8   : > { %v4626_v38 = vadd.f32 %v8425_v37, %v4538_v29  ;;  %v8428_v14 = vadd.f32 %v8427_v46, %v8426_v42 }
 0x6aa   : > { %v4629_v30 = vadd.f32 %v8428_v14, %v4541_v40 }
 0x6ac   : > { %v8429_v4 = vpop.f32.mrb[120].mxu1 }
 0x6ad   : > { %v8430_v13 = vpop.f32.mrb[121].mxu1 }
 0x6ae   : > { %v8431_v62 = vadd.f32 %v8430_v13, %v8429_v4  ;;  %v8432_v19 = vpop.f32.mrb[122].mxu1 }
 0x6af   : > { %v8433_v5 = vpop.f32.mrb[123].mxu1 }
 0x6b0   : > { %v4634_v51 = vadd.f32 %v8431_v62, %v4546_v45  ;;  %v8434_v23 = vadd.f32 %v8433_v5, %v8432_v19 }
 0x6b2   : > { %v4637_v36 = vadd.f32 %v8434_v23, %v4549_v60 }
 0x6b4   : > { %v8435_v39 = vpop.f32.mrb[124].mxu1 }
 0x6b5   : > { %v8436_v63 = vpop.f32.mrb[125].mxu1 }
 0x6b6   : > { %v8437_v54 = vadd.f32 %v8436_v63, %v8435_v39  ;;  %v8438_v28 = vpop.f32.mrb[126].mxu1 }
 0x6b7   : > { %v8439_v24 = vpop.f32.mrb[127].mxu1 }
 0x6b8   : > { %v4642_v55 = vadd.f32 %v8437_v54, %v4554_v59  ;;  %v8440_v43 = vadd.f32 %v8439_v24, %v8438_v28 }
 0x6ba   : > { %v4645_v16 = vadd.f32 %v8440_v43, %v4557_v52 }
 0x6bc   : > { %v8441_v47 = vpop.f32.mrb[128].mxu1 }
 0x6bd   : > { %v8442_v61 = vpop.f32.mrb[129].mxu1 }
 0x6be   : > { %v8443_v7 = vadd.f32 %v8442_v61, %v8441_v47  ;;  %v8444_v18 = vpop.f32.mrb[130].mxu1 }
 0x6bf   : > { %v8445_v49 = vpop.f32.mrb[131].mxu1 }
 0x6c0   : > { %v4650_v3 = vadd.f32 %v8443_v7, %v4562_v12 }
 0x6c4   : > { %v8463_v11 = vpop.f32.mrb[132].mxu1 }
 0x6c5   : > { %v8464_v15 = vpop.f32.mrb[133].mxu1 }
 0x6c6   : > { %v8465_v58 = vadd.f32 %v8464_v15, %v8463_v11  ;;  %v8466_v26 = vpop.f32.mrb[134].mxu1 }
 0x6c7   : > { %v8467_v2 = vpop.f32.mrb[135].mxu1 }
 0x6c8   : > { %v4690_v21 = vadd.f32 %v8465_v58, %v12275_v17  ;;  %v8468_v6 = vadd.f32 %v8467_v2, %v8466_v26 }
 0x6ca   : > { %v4693_v35 = vadd.f32 %v8468_v6, %v12278_v10 }
 0x6cc   : > { %v8469_v0 = vpop.f32.mrb[136].mxu1 }
 0x6cd   : > { %v8470_v1 = vpop.f32.mrb[137].mxu1 }
 0x6ce   : > { %v8471_v33 = vadd.f32 %v8470_v1, %v8469_v0  ;;  %v8472_v25 = vpop.f32.mrb[138].mxu1 }
 0x6cf   : > { %v8473_v22 = vpop.f32.mrb[139].mxu1 }
 0x6d0   : > { %v4698_v56 = vadd.f32 %v8471_v33, %v12284_v31  ;;  %v8474_v57 = vadd.f32 %v8473_v22, %v8472_v25 }
 0x6d2   : > { %v4701_v20 = vadd.f32 %v8474_v57, %v12286_v27 }
 0x6d4   : > { %v8475_v32 = vpop.f32.mrb[140].mxu1 }
 0x6d5   : > { %v8476_v8 = vpop.f32.mrb[141].mxu1 }
 0x6d6   : > { %v8477_v34 = vadd.f32 %v8476_v8, %v8475_v32  ;;  %v8478_v29 = vpop.f32.mrb[142].mxu1 }
 0x6d7   : > { %v8479_v37 = vpop.f32.mrb[143].mxu1 }
 0x6d8   : > { %v4706_v42 = vadd.f32 %v8477_v34, %v4618_v50  ;;  %v8480_v17 = vadd.f32 %v8479_v37, %v8478_v29 }
 0x6da   : > { %v4709_v46 = vadd.f32 %v8480_v17, %v4621_v48 }
 0x6dc   : > { %v8481_v40 = vpop.f32.mrb[144].mxu1 }
 0x6dd   : > { %v8482_v10 = vpop.f32.mrb[145].mxu1 }
 0x6de   : > { %v8483_v14 = vadd.f32 %v8482_v10, %v8481_v40  ;;  %v8484_v4 = vpop.f32.mrb[146].mxu1 }
 0x6df   : > { %v8485_v13 = vpop.f32.mrb[147].mxu1 }
 0x6e0   : > { %v4714_v45 = vadd.f32 %v8483_v14, %v4626_v38  ;;  %v8486_v62 = vadd.f32 %v8485_v13, %v8484_v4 }
 0x6e2   : > { %v4717_v19 = vadd.f32 %v8486_v62, %v4629_v30 }
 0x6e4   : > { %v8487_v31 = vpop.f32.mrb[148].mxu1 }
 0x6e5   : > { %v8488_v5 = vpop.f32.mrb[149].mxu1 }
 0x6e6   : > { %v8489_v60 = vadd.f32 %v8488_v5, %v8487_v31  ;;  %v8490_v27 = vpop.f32.mrb[150].mxu1 }
 0x6e7   : > { %v8491_v23 = vpop.f32.mrb[151].mxu1 }
 0x6e8   : > { %v4722_v39 = vadd.f32 %v8489_v60, %v4634_v51  ;;  %v8492_v63 = vadd.f32 %v8491_v23, %v8490_v27 }
 0x6ea   : > { %v4725_v59 = vadd.f32 %v8492_v63, %v4637_v36 }
 0x6ec   : > { %v8493_v54 = vpop.f32.mrb[152].mxu1 }
 0x6ed   : > { %v8494_v50 = vpop.f32.mrb[153].mxu1 }
 0x6ee   : > { %v8495_v28 = vadd.f32 %v8494_v50, %v8493_v54  ;;  %v8496_v48 = vpop.f32.mrb[154].mxu1 }
 0x6ef   : > { %v8497_v24 = vpop.f32.mrb[155].mxu1 }
 0x6f0   : > { %v4730_v52 = vadd.f32 %v8495_v28, %v4642_v55  ;;  %v8498_v43 = vadd.f32 %v8497_v24, %v8496_v48 }
 0x6f2   : > { %v4733_v47 = vadd.f32 %v8498_v43, %v4645_v16 }
 0x6f4   : > { %v8499_v61 = vpop.f32.mrb[156].mxu1 }
 0x6f5   : > { %v8500_v38 = vpop.f32.mrb[157].mxu1 }
 0x6f6   : > { %v8501_v12 = vadd.f32 %v8500_v38, %v8499_v61  ;;  %v8502_v30 = vpop.f32.mrb[158].mxu1 }
 0x6f7   : > { %v8503_v7 = vpop.f32.mrb[159].mxu1 }
 0x6f8   : > { %v4738_v18 = vadd.f32 %v8501_v12, %v4650_v3 }
 0x6fc   : > { %v8521_v49 = vpop.f32.mrb[160].mxu1 }
 0x6fd   : > { %v8522_v11 = vpop.f32.mrb[161].mxu1 }
 0x6fe   : > { %v8523_v15 = vadd.f32 %v8522_v11, %v8521_v49  ;;  %v8524_v51 = vpop.f32.mrb[162].mxu1 }
 0x6ff   : > { %v8525_v58 = vpop.f32.mrb[163].mxu1 }
 0x700   : > { %v8526_v36 = vadd.f32 %v8525_v58, %v8524_v51  ;;  %v4778_v26 = vadd.f32 %v8523_v15, %v4690_v21 }
 0x702   : > { %v4781_v2 = vadd.f32 %v8526_v36, %v4693_v35 }
 0x704   : > { %v8527_v6 = vpop.f32.mrb[164].mxu1 }
 0x705   : > { %v8528_v0 = vpop.f32.mrb[165].mxu1 }
 0x706   : > { %v8529_v1 = vadd.f32 %v8528_v0, %v8527_v6  ;;  %v8530_v55 = vpop.f32.mrb[166].mxu1 }
 0x707   : > { %v8531_v33 = vpop.f32.mrb[167].mxu1 }
 0x708   : > { %v8532_v16 = vadd.f32 %v8531_v33, %v8530_v55  ;;  %v4786_v25 = vadd.f32 %v8529_v1, %v4698_v56 }
 0x70a   : > { %v4789_v22 = vadd.f32 %v8532_v16, %v4701_v20 }
 0x70c   : > { %v8533_v57 = vpop.f32.mrb[168].mxu1 }
 0x70d   : > { %v8534_v32 = vpop.f32.mrb[169].mxu1 }
 0x70e   : > { %v8535_v8 = vadd.f32 %v8534_v32, %v8533_v57  ;;  %v8536_v3 = vpop.f32.mrb[170].mxu1 }
 0x70f   : > { %v8537_v34 = vpop.f32.mrb[171].mxu1 }
 0x710   : > { %v8538_v29 = vadd.f32 %v8537_v34, %v8536_v3  ;;  %v4794_v37 = vadd.f32 %v8535_v8, %v4706_v42 }
 0x712   : > { %v4797_v17 = vadd.f32 %v8538_v29, %v4709_v46 }
 0x714   : > { %v8539_v40 = vpop.f32.mrb[172].mxu1 }
 0x715   : > { %v8540_v10 = vpop.f32.mrb[173].mxu1 }
 0x716   : > { %v8541_v21 = vadd.f32 %v8540_v10, %v8539_v40  ;;  %v8542_v35 = vpop.f32.mrb[174].mxu1 }
 0x717   : > { %v8543_v14 = vpop.f32.mrb[175].mxu1 }
 0x718   : > { %v8544_v4 = vadd.f32 %v8543_v14, %v8542_v35  ;;  %v12310_v13 = vadd.f32 %v8541_v21, %v4714_v45 }
 0x71a   : > { %v12312_v62 = vadd.f32 %v8544_v4, %v4717_v19 }
 0x71c   : > { %v8545_v56 = vpop.f32.mrb[176].mxu1 }
 0x71d   : > { %v8546_v20 = vpop.f32.mrb[177].mxu1 }
 0x71e   : > { %v8547_v31 = vadd.f32 %v8546_v20, %v8545_v56  ;;  %v8548_v5 = vpop.f32.mrb[178].mxu1 }
 0x71f   : > { %v8549_v60 = vpop.f32.mrb[179].mxu1 }
 0x720   : > { %v8550_v27 = vadd.f32 %v8549_v60, %v8548_v5  ;;  %v12314_v23 = vadd.f32 %v8547_v31, %v4722_v39 }
 0x722   : > { %v12316_v42 = vadd.f32 %v8550_v27, %v4725_v59 }
 0x724   : > { %v8551_v46 = vpop.f32.mrb[180].mxu1 }
 0x725   : > { %v8552_v63 = vpop.f32.mrb[181].mxu1 }
 0x726   : > { %v8553_v54 = vadd.f32 %v8552_v63, %v8551_v46  ;;  %v8554_v50 = vpop.f32.mrb[182].mxu1 }
 0x727   : > { %v8555_v28 = vpop.f32.mrb[183].mxu1 }
 0x728   : > { %v8556_v48 = vadd.f32 %v8555_v28, %v8554_v50  ;;  %v12318_v45 = vadd.f32 %v8553_v54, %v4730_v52 }
 0x72a   : > { %v12320_v19 = vadd.f32 %v8556_v48, %v4733_v47 }
 0x72c   : > { %v8557_v24 = vpop.f32.mrb[184].mxu1 }
 0x72d   : > { %v8558_v43 = vpop.f32.mrb[185].mxu1 }
 0x72e   : > { %v8559_v61 = vadd.f32 %v8558_v43, %v8557_v24  ;;  %v8560_v38 = vpop.f32.mrb[186].mxu1 }
 0x72f   : > { %v8561_v12 = vpop.f32.mrb[187].mxu1 }
 0x730   : > { %v12322_v30 = vadd.f32 %v8559_v61, %v4738_v18 }
 0x734   : > { %v4865_v39 = vpop.f32.mrb[188].mxu1 }
 0x735   : > { %v4866_v59 = vadd.f32 %v4865_v39, %v4778_v26  ;;  %v9034_v7 = vpop.f32.mrb[189].mxu1 }
 0x736   : > { %v4868_v49 = vpop.f32.mrb[190].mxu1 }
 0x737   : > { %v4919_v11 = vmax.f32 %v4866_v59, 0.0  ;;  %v4869_v15 = vadd.f32 %v4868_v49, %v4781_v2  ;;  %v9035_v51 = vpop.f32.mrb[191].mxu1 }
 0x739   : > { %v4920_v58 = vmax.f32 %v4869_v15, 0.0  ;;  %v4945_v36 = vrot.slane %v4919_v11, 1 }
 0x73b   : > { %v4946_v52 = vrot.slane %v4920_v58, 1 }
 0x73c   : > { %v4873_v6 = vpop.f32.mrb[192].mxu1 }
 0x73d   : > { %v4947_v47 = vsel %vm801_vm4, %v4945_v36, %v4946_v52  ;;  %v4874_v0 = vadd.f32 %v4873_v6, %v4786_v25  ;;  %v9038_v1 = vpop.f32.mrb[193].mxu1 }
 0x73e   : > { %v4984_v55 = vmax.f32 %v4919_v11, %v4947_v47  ;;  %v4876_v33 = vpop.f32.mrb[194].mxu1 }
 0x73f   : > { %v4921_v16 = vmax.f32 %v4874_v0, 0.0  ;;  %v4877_v18 = vadd.f32 %v4876_v33, %v4789_v22  ;;  %v9039_v57 = vpop.f32.mrb[195].mxu1 }
 0x741   : > { %v4948_v32 = vrot.slane %v4921_v16, 1  ;;  %v4922_v26 = vmax.f32 %v4877_v18, 0.0 }
 0x743   : > { %v4949_v8 = vsel %vm801_vm4, %v4946_v52, %v4948_v32  ;;  %v4950_v3 = vrot.slane %v4922_v26, 1 }
 0x744   : > { %v4985_v2 = vmax.f32 %v4920_v58, %v4949_v8  ;;  %v4881_v34 = vpop.f32.mrb[196].mxu1 }
 0x745   : > { %v4951_v29 = vsel %vm801_vm4, %v4948_v32, %v4950_v3  ;;  %v4882_v40 = vadd.f32 %v4881_v34, %v4794_v37  ;;  %v9042_v10 = vpop.f32.mrb[197].mxu1 }
 0x746   : > { %v4986_v21 = vmax.f32 %v4921_v16, %v4951_v29  ;;  %v4884_v35 = vpop.f32.mrb[198].mxu1  ;;  %v5009_v56 = vrot.slane %v4985_v2, 2 }
 0x747   : > { %v4923_v25 = vmax.f32 %v4882_v40, 0.0  ;;  %v4885_v14 = vadd.f32 %v4884_v35, %v4797_v17  ;;  %v9043_v4 = vpop.f32.mrb[199].mxu1 }
 0x748   : > { %v5010_v20 = vrot.slane %v4986_v21, 2 }
 0x749   : > { %v4952_v22 = vrot.slane %v4923_v25, 1  ;;  %v4924_v31 = vmax.f32 %v4885_v14, 0.0 }
 0x74a   : > { %v5011_v5 = vsel %vm979_vm8, %v5009_v56, %v5010_v20 }
 0x74b   : > { %v4953_v60 = vsel %vm801_vm4, %v4950_v3, %v4952_v22  ;;  %v4954_v27 = vrot.slane %v4924_v31, 1  ;;  %v5045_v46 = vmax.f32 %v4984_v55, %v5011_v5 }
 0x74c   : > { %v4987_v63 = vmax.f32 %v4922_v26, %v4953_v60  ;;  %v4889_v54 = vpop.f32.mrb[200].mxu1 }
 0x74d   : > { %v4955_v37 = vsel %vm801_vm4, %v4952_v22, %v4954_v27  ;;  %v4890_v50 = vadd.f32 %v4889_v54, %v12310_v13  ;;  %v9046_v28 = vpop.f32.mrb[201].mxu1 }
 0x74e   : > { %v5012_v48 = vrot.slane %v4987_v63, 2  ;;  %v4988_v17 = vmax.f32 %v4923_v25, %v4955_v37  ;;  %v4892_v24 = vpop.f32.mrb[202].mxu1 }
 0x74f   : > { %v4925_v43 = vmax.f32 %v4890_v50, 0.0  ;;  %v4893_v61 = vadd.f32 %v4892_v24, %v12312_v62  ;;  %v9047_v38 = vpop.f32.mrb[203].mxu1 }
 0x750   : > { %v5014_v12 = vrot.slane %v4988_v17, 2  ;;  %v5013_v39 = vsel %vm979_vm8, %v5010_v20, %v5012_v48 }
 0x751   : > { %v4956_v59 = vrot.slane %v4925_v43, 1  ;;  %v4926_v7 = vmax.f32 %v4893_v61, 0.0  ;;  %v5046_v49 = vmax.f32 %v4985_v2, %v5013_v39 }
 0x752   : > { %v5015_v11 = vsel %vm979_vm8, %v5012_v48, %v5014_v12 }
 0x753   : > { %v4957_v15 = vsel %vm801_vm4, %v4954_v27, %v4956_v59  ;;  %v4958_v51 = vrot.slane %v4926_v7, 1  ;;  %v9234_v13 = vpack.c.bf16 %v5046_v49, %v5045_v46  ;;  %v5047_v58 = vmax.f32 %v4986_v21, %v5015_v11 }
 0x754   : > { %v4989_v36 = vmax.f32 %v4924_v31, %v4957_v15  ;;  %v4897_v52 = vpop.f32.mrb[204].mxu1 }
 0x755   : > { %v4959_v6 = vsel %vm801_vm4, %v4956_v59, %v4958_v51  ;;  %v4898_v62 = vadd.f32 %v4897_v52, %v12314_v23  ;;  %v9050_v47 = vpop.f32.mrb[205].mxu1  ;;  %9235 = vmatpush3.bf16.msra.mxu1 %v9234_v13 }
 0x756   : > { %v5016_v0 = vrot.slane %v4989_v36, 2  ;;  %v4990_v1 = vmax.f32 %v4925_v43, %v4959_v6  ;;  %v4900_v55 = vpop.f32.mrb[206].mxu1  ;;  %9236 = vmatprep.subr.bf16.mxu1 %v13318_v41 }
 0x757   : > { %v4927_v33 = vmax.f32 %v4898_v62, 0.0  ;;  %v4901_v16 = vadd.f32 %v4900_v55, %v12316_v42  ;;  %v9051_v18 = vpop.f32.mrb[207].mxu1 }
 0x758   : > { %v5018_v57 = vrot.slane %v4990_v1, 2  ;;  %v5017_v32 = vsel %vm979_vm8, %v5014_v12, %v5016_v0 }
 0x759   : > { %v4960_v26 = vrot.slane %v4927_v33, 1  ;;  %v4928_v8 = vmax.f32 %v4901_v16, 0.0  ;;  %v5048_v3 = vmax.f32 %v4987_v63, %v5017_v32 }
 0x75a   : > { %v5019_v2 = vsel %vm979_vm8, %v5016_v0, %v5018_v57 }
 0x75b   : > { %v4961_v23 = vsel %vm801_vm4, %v4958_v51, %v4960_v26  ;;  %v4962_v34 = vrot.slane %v4928_v8, 1  ;;  %v9237_v29 = vpack.c.bf16 %v5048_v3, %v5047_v58  ;;  %v5049_v40 = vmax.f32 %v4988_v17, %v5019_v2  ;;  %v5058_v3 = vld [vmem:[%s13131_s4] sm:$0xff] }
 0x75c   : > { %v4991_v10 = vmax.f32 %v4926_v7, %v4961_v23  ;;  %v4905_v21 = vpop.f32.mrb[208].mxu1  ;;  %v9831_v2 = vld [vmem:[%s13128_s1 + $0x480] sm:$0xff]   ;;  %v9832_v23 = vld [vmem:[%s13128_s1 + $0x4c8] sm:$0xff]  }
 0x75d   : > { %v4963_v35 = vsel %vm801_vm4, %v4960_v26, %v4962_v34  ;;  %v4906_v42 = vadd.f32 %v4905_v21, %v12318_v45  ;;  %v9054_v25 = vpop.f32.mrb[209].mxu1  ;;  %9238 = vmatpush3.bf16.msra.mxu1 %v9237_v29  ;;  %v9830_v26 = vld [vmem:[%s13128_s1 + $0x4c0] sm:$0xff]   ;;  %v9833_v29 = vld [vmem:[%s13128_s1 + $0x488] sm:$0xff]  }
 0x75e   : > { %v5020_v14 = vrot.slane %v4991_v10, 2  ;;  %v4992_v4 = vmax.f32 %v4927_v33, %v4963_v35  ;;  %v4908_v56 = vpop.f32.mrb[210].mxu1  ;;  %9239 = vmatprep.subr.bf16.mxu1 %v13318_v41  ;;  %v5062_v21 = vld [vmem:[%s13131_s4 + $0x20] sm:$0xf]  ;;  %v9834_v35 = vld [vmem:[%s13128_s1 + $0x4d0] sm:$0xff]   ;;  %v9836_v25 = vld [vmem:[%s13128_s1 + $0x4d8] sm:$0xff]  }
 0x75f   : > { %v4929_v20 = vmax.f32 %v4906_v42, 0.0  ;;  %v4909_v22 = vadd.f32 %v4908_v56, %v12320_v19  ;;  %v9055_v31 = vpop.f32.mrb[211].mxu1  ;;  %v9835_v42 = vld [vmem:[%s13128_s1 + $0x490] sm:$0xff]   ;;  %v9839_v56 = vld [vmem:[%s13128_s1 + $0x4a0] sm:$0xff]  }
 0x760   : > { %v5022_v5 = vrot.slane %v4992_v4, 2  ;;  %v5021_v60 = vsel %vm979_vm8, %v5018_v57, %v5020_v14  ;;  %v9842_v31 = vld [vmem:[%s13128_s1 + $0x4f0] sm:$0xff]  }
 0x761   : > { %v4964_v27 = vrot.slane %v4929_v20, 1  ;;  %v4930_v46 = vmax.f32 %v4909_v22, 0.0  ;;  %v5050_v63 = vmax.f32 %v4989_v36, %v5021_v60  ;;  %v9841_v22 = vld [vmem:[%s13128_s1 + $0x4a8] sm:$0xff]   ;;  %v9844_v60 = vld [vmem:[%s13128_s1 + $0x4f8] sm:$0xff]  }
 0x762   : > { %v5023_v54 = vsel %vm979_vm8, %v5020_v14, %v5022_v5  ;;  %v9837_v14 = vld [vmem:[%s13128_s1 + $0x498] sm:$0xff]  }
 0x763   : > { %v4965_v45 = vsel %vm801_vm4, %v4962_v34, %v4964_v27  ;;  %v4966_v37 = vrot.slane %v4930_v46, 1  ;;  %v9240_v50 = vpack.c.bf16 %v5050_v63, %v5049_v40  ;;  %v5051_v28 = vmax.f32 %v4990_v1, %v5023_v54  ;;  %v5059_v34 = vld [vmem:[%s13131_s4 + $0x8] sm:$0xff]  ;;  %v5060_v40 = vld [vmem:[%s13131_s4 + $0x10] sm:$0xff] }
 0x764   : > { %v4993_v48 = vmax.f32 %v4928_v8, %v4965_v45  ;;  %v4913_v17 = vpop.f32.mrb[212].mxu1 }
 0x765   : > { %v4967_v24 = vsel %vm801_vm4, %v4964_v27, %v4966_v37  ;;  %v4914_v19 = vadd.f32 %v4913_v17, %v12322_v30  ;;  %v9058_v43 = vpop.f32.mrb[213].mxu1  ;;  %9241 = vmatpush3.bf16.msra.mxu1 %v9240_v50  ;;  %v9845_v27 = vld [vmem:[%s13128_s1 + $0x4b8] sm:$0xff]  }
 0x766   : > { %v5024_v61 = vrot.slane %v4993_v48, 2  ;;  %v4994_v38 = vmax.f32 %v4929_v20, %v4967_v24  ;;  %v4916_v12 = vpop.f32.mrb[214].mxu1  ;;  %9242 = vmatprep.subr.bf16.mxu1 %v13318_v41  ;;  %v9840_v20 = vld [vmem:[%s13128_s1 + $0x4e8] sm:$0xff]  }
 0x767   : > { %v4931_v39 = vmax.f32 %v4914_v19, 0.0  ;;  %v9059_v59 = vpop.f32.mrb[215].mxu1 }
 0x768   : > { %v5026_v7 = vrot.slane %v4994_v38, 2  ;;  %v5025_v49 = vsel %vm979_vm8, %v5022_v5, %v5024_v61  ;;  %v9843_v5 = vld [vmem:[%s13128_s1 + $0x4b0] sm:$0xff]  }
 0x769   : > { %v4968_v11 = vrot.slane %v4931_v39, 1  ;;  %v5052_v15 = vmax.f32 %v4991_v10, %v5025_v49  ;;  %v5061_v10 = vld [vmem:[%s13131_s4 + $0x18] sm:$0xff] }
 0x76a   : > { %v5027_v51 = vsel %vm979_vm8, %v5024_v61, %v5026_v7 }
 0x76b   : > { %v4969_v13 = vsel %vm801_vm4, %v4966_v37, %v4968_v11  ;;  %v4983_v30 = vsel %vm3002_vm13, %v4968_v11, 0.0  ;;  %v9243_v58 = vpack.c.bf16 %v5052_v15, %v5051_v28  ;;  %v5053_v36 = vmax.f32 %v4992_v4, %v5027_v51  ;;  %v9838_v4 = vld [vmem:[%s13128_s1 + $0x4e0] sm:$0xff]  }
 0x76c   : > { %v4995_v52 = vmax.f32 %v4930_v46, %v4969_v13  ;;  %v4996_v6 = vmax.f32 %v4931_v39, %v4983_v30  ;;  %v9846_v46 = vld [vmem:[%s13128_s1 + $0x540] sm:$0xff]  }
 0x76d   : > { %9244 = vmatpush3.bf16.msra.mxu1 %v9243_v58 }
 0x76e   : > { %v5028_v62 = vrot.slane %v4995_v52, 2  ;;  %v5030_v47 = vrot.slane %v4996_v6, 2  ;;  %9245 = vmatprep.subr.bf16.mxu1 %v13318_v41  ;;  %v5057_v8 = vmax.f32 %v4996_v6, 0.0 }
 0x770   : > { %v5031_v0 = vsel %vm979_vm8, %v5028_v62, %v5030_v47  ;;  %v5044_v1 = vsel %vm603_vm1, %v5030_v47, 0.0  ;;  %v5029_v55 = vsel %vm979_vm8, %v5026_v7, %v5028_v62 }
 0x771   : > { %v5056_v33 = vmax.f32 %v4995_v52, %v5044_v1  ;;  %v5054_v16 = vmax.f32 %v4993_v48, %v5029_v55  ;;  %v5055_v18 = vmax.f32 %v4994_v38, %v5031_v0 }
 0x773   : > { %v9246_v57 = vpack.c.bf16 %v5054_v16, %v5053_v36  ;;  %v9249_v32 = vpack.c.bf16 %v5056_v33, %v5055_v18 }
 0x775   : > { %9247 = vmatpush3.bf16.msra.mxu1 %v9246_v57 }
 0x776   : > { %9248 = vmatprep.subr.bf16.mxu1 %v13318_v41 }
 0x779   : > { %9250 = vmatpush3.bf16.msra.mxu1 %v9249_v32 }
 0x77a   : > { %9084 = vmatprep.subr.mxu1 %v13261_v44 }
 0x77d   : > { %9085 = vmatpush3.msk.msra.mxu1 %vm606_vm5, %v5057_v8 }
 0x77e   : > { %9087 = vmatmul.mubr.msk.f32.vlgmr.msra.gmra.mrb[216].mxu1 %vm5063_vm9, %v5058_v3  ;;  %8596 = vmatprep.subr.bf16.mxu1 %v9830_v26 }
 0x77f   : > { %9089 = vmatprep.mubr.msk.f32.mxu1 %vm10048_vm12, %v13261_v44  ;;  %8597 = vmatpush3.bf16.msra.mxu1 %v9831_v2 }
 0x780   : > { %8598 = vmatprep.subr.bf16.mxu1 %v9832_v23 }
 0x782   : > { %9090 = vmatmul.mubr.msk.f32.gmra.mrb[218].mxu1 %vm5063_vm9, %v5059_v34 }
 0x783   : > { %9092 = vmatprep.mubr.msk.f32.mxu1 %vm10048_vm12, %v13261_v44  ;;  %8599 = vmatpush3.bf16.msra.mxu1 %v9833_v29 }
 0x784   : > { %8600 = vmatprep.subr.bf16.mxu1 %v9834_v35 }
 0x786   : > { %9093 = vmatmul.mubr.msk.f32.gmra.mrb[220].mxu1 %vm5063_vm9, %v5060_v40 }
 0x787   : > { %9095 = vmatprep.mubr.msk.f32.mxu1 %vm10048_vm12, %v13261_v44  ;;  %8601 = vmatpush3.bf16.msra.mxu1 %v9835_v42 }
 0x788   : > { %8602 = vmatprep.subr.bf16.mxu1 %v9836_v25 }
 0x78a   : > { %9096 = vmatmul.mubr.msk.f32.gmra.mrb[222].mxu1 %vm5063_vm9, %v5061_v10 }
 0x78b   : > { %9098 = vmatprep.mubr.msk.f32.mxu1 %vm10048_vm12, %v13261_v44  ;;  %8603 = vmatpush3.bf16.msra.mxu1 %v9837_v14 }
 0x78c   : > { %8604 = vmatprep.subr.bf16.mxu1 %v9838_v4 }
 0x78e   : > { %9099 = vmatmul.mubr.msk.f32.gmra.mrb[224].mxu1 %vm5063_vm9, %v5062_v21 }
 0x78f   : > { %8605 = vmatpush3.bf16.msra.mxu1 %v9839_v56 }
 0x790   : > { %8606 = vmatprep.subr.bf16.mxu1 %v9840_v20 }
 0x793   : > { %8607 = vmatpush3.bf16.msra.mxu1 %v9841_v22 }
 0x794   : > { %8608 = vmatprep.subr.bf16.mxu1 %v9842_v31 }
 0x797   : > { %8609 = vmatpush3.bf16.msra.mxu1 %v9843_v5 }
 0x798   : > { %8610 = vmatprep.subr.bf16.mxu1 %v9844_v60 }
 0x79b   : > { %8611 = vmatpush3.bf16.msra.mxu1 %v9845_v27  ;;  %v9847_v27 = vld [vmem:[%s13128_s1 + $0x500] sm:$0xff]  }
 0x79c   : > { %8630 = vmatprep.subr.bf16.mxu1 %v9846_v46 }
 0x851   : > { %v5148_v63 = vpop.f32.mrb[216].mxu1 }
 0x852   : > { %v9088_v54 = vpop.f32.mrb[217].mxu1 }
 0x855   : > { %v5153_v45 = vpop.f32.mrb[218].mxu1 }
 0x856   : > { %v5172_v37 = vpack.c.bf16 %v5153_v45, %v5148_v63  ;;  %v9091_v50 = vpop.f32.mrb[219].mxu1 }
 0x857   : > { %v9848_v50 = vld [vmem:[%s13128_s1 + $0x548] sm:$0xff]  }
 0x858   : > { %v5176_v28 = vshrl.u32 %v5172_v37, 16  ;;  %v5179_v48 = vshll.u32 %v5172_v37, 16 }
 0x859   : > { %v5158_v17 = vpop.f32.mrb[220].mxu1 }
 0x85a   : > { %v5178_v24 = vrot.slane %v5176_v28, 4  ;;  %v5181_v19 = vrot.slane %v5179_v48, 5  ;;  %v9094_v43 = vpop.f32.mrb[221].mxu1 }
 0x85c   : > { %v5182_v61 = vor.u32 %v5181_v19, %v5178_v24 }
 0x85d   : > { %v5163_v38 = vpop.f32.mrb[222].mxu1 }
 0x85e   : > { %v12444_v39 = vsel %vm10783_vm7, 0, %v5182_v61  ;;  %v5173_v59 = vpack.c.bf16 %v5163_v38, %v5158_v17  ;;  %v9097_v7 = vpop.f32.mrb[223].mxu1  ;;  %vm5250_vm7 = vsmask.f32 4352 }
 0x85f   : > { %v5207_v49 = vshrl.u32 %v12444_v39, 16  ;;  %v5209_v11 = vshll.u32 %v12444_v39, 16  ;;  %v5273_v55 = vrot.slane %v12444_v39, 6  ;;  %v5242_v8 = vrot.slane %v12444_v39, 3 }
 0x860   : > { %v5184_v15 = vshrl.u32 %v5173_v59, 16  ;;  %v5187_v51 = vshll.u32 %v5173_v59, 16  ;;  %v5234_v3 = vrot.slane %v12444_v39, 1  ;;  %v5265_v2 = vrot.slane %v12444_v39, 4 }
 0x861   : > { %v5168_v13 = vpop.f32.mrb[224].mxu1  ;;  %v5211_v30 = vrot.slane %v5209_v11, 1  ;;  %v5251_v58 = vrot.slane %v5207_v49, 3  ;;  %v5252_v36 = vrot.slane %v5209_v11, 4  ;;  %v5281_v52 = vrot.slane %v5207_v49, 6 }
 0x862   : > { %v5186_v6 = vrot.slane %v5184_v15, 4  ;;  %v5189_v62 = vrot.slane %v5187_v51, 5  ;;  %v5174_v47 = vpack.c.bf16 %v5168_v13, %v5168_v13  ;;  %v9100_v0 = vpop.f32.mrb[225].mxu1  ;;  %v5282_v1 = vrot.slane %v5209_v11, 7 }
 0x863   : > { %v5253_v33 = vor.u32 %v5252_v36, %v5251_v58  ;;  %v5212_v26 = vor.u32 %v5211_v30, %v5207_v49  ;;  %v5298_v40 = vrot.slane %v12444_v39, 7  ;;  %v9849_v49 = vld [vmem:[%s13128_s1 + $0x508] sm:$0xff]  }
 0x864   : > { %v5190_v16 = vor.u32 %v5189_v62, %v5186_v6  ;;  %v5193_v18 = vshrl.u32 %v5174_v47, 16  ;;  %v5196_v57 = vshll.u32 %v5174_v47, 16  ;;  %v5283_v32 = vor.u32 %v5282_v1, %v5281_v52 }
 0x866   : > { %v12453_v23 = vsel %vm607_vm6, %v5182_v61, %v5190_v16  ;;  %v5195_v34 = vrot.slane %v5193_v18, 4  ;;  %v5198_v29 = vrot.slane %v5196_v57, 5 }
 0x867   : > { %v5214_v10 = vshll.u32 %v12453_v23, 16  ;;  %v5218_v21 = vshrl.u32 %v12453_v23, 16  ;;  %v5243_v35 = vrot.slane %v12453_v23, 3  ;;  %v5235_v42 = vrot.slane %v12453_v23, 1 }
 0x868   : > { %v5199_v25 = vor.u32 %v5198_v29, %v5195_v34  ;;  %v5266_v14 = vrot.slane %v12453_v23, 4  ;;  %v5274_v4 = vrot.slane %v12453_v23, 6  ;;  %v5299_v56 = vrot.slane %v12453_v23, 7  ;;  %v9856_v34 = vld [vmem:[%s13128_s1 + $0x568] sm:$0xff]  }
 0x869   : > { %v5216_v20 = vrot.slane %v5214_v10, 1  ;;  %v12464_v22 = vsel %vm1151_vm11, %v5242_v8, %v5243_v35  ;;  %v12467_v31 = vsel %vm801_vm4, %v5234_v3, %v5235_v42  ;;  %v5254_v5 = vrot.slane %v5218_v21, 3  ;;  %v9853_v3 = vld [vmem:[%s13128_s1 + $0x518] sm:$0xff]   ;;  %v9857_v29 = vld [vmem:[%s13128_s1 + $0x528] sm:$0xff]  }
 0x86a   : > { %v5200_v60 = vsel %vm607_vm6, %v5190_v16, %v5199_v25  ;;  %v12474_v46 = vsel %vm606_vm5, %v5265_v2, %v5266_v14  ;;  %v5255_v63 = vrot.slane %v5214_v10, 4  ;;  %v5284_v54 = vrot.slane %v5218_v21, 6  ;;  %v9852_v16 = vld [vmem:[%s13128_s1 + $0x558] sm:$0xff]   ;;  %v9854_v2 = vld [vmem:[%s13128_s1 + $0x560] sm:$0xff]  }
 0x86b   : > { %v12478_v45 = vsel %vm11752_vm15, %v5200_v60, 0  ;;  %v5217_v37 = vsel %vm610_vm3, %v5212_v26, %v5216_v20  ;;  %v5220_v28 = vor.u32 %v5218_v21, %v5216_v20  ;;  %v5285_v48 = vrot.slane %v5214_v10, 7  ;;  %v9859_v10 = vld [vmem:[%s13128_s1 + $0x530] sm:$0xff]   ;;  %v9860_v21 = vld [vmem:[%s13128_s1 + $0x578] sm:$0xff]   ;;  %v9863_v25 = vld [vmem:[%s13128_s1 + $0x580] sm:$0xff]  }
 0x86c   : > { %5925 = vmatprep.mubr.bf16.mxu1 %v5217_v37  ;;  %v5222_v17 = vshll.u32 %v12478_v45, 16  ;;  %v5226_v24 = vshrl.u32 %v12478_v45, 16  ;;  %v5245_v19 = vrot.slane %v12478_v45, 3  ;;  %v5237_v43 = vrot.slane %v12478_v45, 1  ;;  %v9867_v20 = vld [vmem:[%s13128_s1 + $0x590] sm:$0xff]   ;;  %v9871_v60 = vld [vmem:[%s13128_s1 + $0x5a0] sm:$0xff]  }
 0x86d   : > { %5926 = vmatmul.mubr.bf16.vlgmr.msra.gmra.mrb[228].mxu1 %v12444_v39  ;;  %v5256_v9 = vor.u32 %v5255_v63, %v5254_v5  ;;  %v5268_v61 = vrot.slane %v12478_v45, 4  ;;  %v5286_v38 = vor.u32 %v5285_v48, %v5284_v54  ;;  %v12491_v12 = vsel %vm603_vm1, %v5273_v55, %v5274_v4  ;;  %v9850_v39 = vld [vmem:[%s13128_s1 + $0x550] sm:$0xff]   ;;  %v9870_v5 = vld [vmem:[%s13128_s1 + $0x5e0] sm:$0xff]   ;;  %v9873_v63 = vld [vmem:[%s13128_s1 + $0x5a8] sm:$0xff]  }
 0x86e   : > { %8631 = vmatpush3.bf16.msra.mxu1 %v9847_v27  ;;  %v5224_v59 = vrot.slane %v5222_v17, 1  ;;  %v5259_v7 = vrot.slane %v5222_v17, 4  ;;  %v5258_v11 = vrot.slane %v5226_v24, 3  ;;  %v5246_v15 = vsel %vm1151_vm11, %v5243_v35, %v5245_v19  ;;  %v9851_v55 = vld [vmem:[%s13128_s1 + $0x510] sm:$0xff]   ;;  %v9861_v35 = vld [vmem:[%s13128_s1 + $0x538] sm:$0xff]   ;;  %v9872_v27 = vld [vmem:[%s13128_s1 + $0x5e8] sm:$0xff]  }
 0x86f   : > { %8632 = vmatprep.subr.bf16.mxu1 %v9848_v50  ;;  %v5238_v51 = vsel %vm801_vm4, %v5235_v42, %v5237_v43  ;;  %v12506_v13 = vsel %vm5250_vm7, %v5253_v33, %v5256_v9  ;;  %v12511_v30 = vsel %vm606_vm5, %v5266_v14, %v5268_v61  ;;  %v12514_v58 = vsel %vm393_vm0, %v5283_v32, %v5286_v38  ;;  %v9862_v42 = vld [vmem:[%s13128_s1 + $0x5c0] sm:$0xff]   ;;  %v9864_v14 = vld [vmem:[%s13128_s1 + $0x5c8] sm:$0xff]   ;;  %v9874_v54 = vld [vmem:[%s13128_s1 + $0x5f0] sm:$0xff]  }
 0x870   : > { %v5225_v36 = vsel %vm610_vm3, %v5220_v28, %v5224_v59  ;;  %v12517_v52 = vor.u32 %v5259_v7, %v5258_v11  ;;  %v5288_v6 = vrot.slane %v5226_v24, 6  ;;  %v5289_v62 = vrot.slane %v5222_v17, 7  ;;  %v9875_v37 = vld [vmem:[%s13128_s1 + $0x5b0] sm:$0xff]   ;;  %v9876_v50 = vld [vmem:[%s13128_s1 + $0x5f8] sm:$0xff]   ;;  %v9878_v28 = vld [vmem:[%s13128_s1 + $0x640] sm:$0xff]  }
 0x871   : > { %5933 = vmatprep.mubr.bf16.mxu1 %v5225_v36  ;;  %v5276_v47 = vrot.slane %v12478_v45, 6  ;;  %v12521_v0 = vsel %vm5297_vm14, %v5298_v40, %v5299_v56  ;;  %v5301_v1 = vrot.slane %v12478_v45, 7  ;;  %v5228_v26 = vor.u32 %v5226_v24, %v5224_v59  ;;  %v9858_v40 = vld [vmem:[%s13128_s1 + $0x570] sm:$0xff]   ;;  %v9879_v48 = vld [vmem:[%s13128_s1 + $0x600] sm:$0xff]   ;;  %v9880_v17 = vld [vmem:[%s13128_s1 + $0x648] sm:$0xff]  }
 0x872   : > { %8633 = vmatpush3.bf16.msra.mxu1 %v9849_v49  ;;  %v12529_v33 = vsel %vm5250_vm7, %v5256_v9, %v12517_v52  ;;  %v12534_v18 = vor.u32 %v5289_v62, %v5288_v6  ;;  %v9881_v24 = vld [vmem:[%s13128_s1 + $0x608] sm:$0xff]   ;;  %v9884_v9 = vld [vmem:[%s13128_s1 + $0x658] sm:$0xff]   ;;  %v9886_v59 = vld [vmem:[%s13128_s1 + $0x660] sm:$0xff]   ;;  %v5292_v36 = vrot.slane %v13250_v53, 7 }
 0x873   : > { %8634 = vmatprep.subr.bf16.mxu1 %v9850_v39  ;;  %v12539_v57 = vsel %vm603_vm1, %v5274_v4, %v5276_v47  ;;  %v12544_v32 = vsel %vm5297_vm14, %v5299_v56, %v5301_v1  ;;  %v9865_v4 = vld [vmem:[%s13128_s1 + $0x588] sm:$0xff]   ;;  %v9866_v56 = vld [vmem:[%s13128_s1 + $0x5d0] sm:$0xff]   ;;  %v9887_v7 = vld [vmem:[%s13128_s1 + $0x620] sm:$0xff]  }
 0x874   : > { %v12549_v8 = vsel %vm393_vm0, %v5286_v38, %v12534_v18  ;;  %v9885_v38 = vld [vmem:[%s13128_s1 + $0x618] sm:$0xff]   ;;  %v9889_v49 = vld [vmem:[%s13128_s1 + $0x628] sm:$0xff]   ;;  %v9890_v11 = vld [vmem:[%s13128_s1 + $0x670] sm:$0xff]  }
 0x875   : > { %5934 = vmatmul.mubr.bf16.gmra.mrb[232].mxu1 %v12453_v23  ;;  %v9855_v23 = vld [vmem:[%s13128_s1 + $0x520] sm:$0xff]   ;;  %v9892_v39 = vld [vmem:[%s13128_s1 + $0x678] sm:$0xff]   ;;  %v9899_v53 = vld [vmem:[%s13128_s1 + $0x6a8] sm:$0xff]  }
 0x876   : > { %8635 = vmatpush3.bf16.msra.mxu1 %v9851_v55  ;;  %5941 = vmatprep.mubr.bf16.mxu1 %v5228_v26  ;;  %v9898_v6 = vld [vmem:[%s13128_s1 + $0x6a0] sm:$0xff]   ;;  %v9900_v62 = vld [vmem:[%s13128_s1 + $0x6b0] sm:$0xff]   ;;  %v5304_v55 = vsel %vm5297_vm14, %v5301_v1, %v5292_v36 }
 0x877   : > { %8636 = vmatprep.subr.bf16.mxu1 %v9852_v16  ;;  %v7903_v1 = vld [vmem:[%s13129_s2 + $0x2] ss:$0 sm:$0xff] }
 0x87a   : > { %8637 = vmatpush3.bf16.msra.mxu1 %v9853_v3 }
 0x87b   : > { %8638 = vmatprep.subr.bf16.mxu1 %v9854_v2 }
 0x87d   : > { %5942 = vmatmul.mubr.bf16.gmra.mrb[236].mxu1 %v12478_v45 }
 0x87e   : > { %8639 = vmatpush3.bf16.msra.mxu1 %v9855_v23  ;;  %5981 = vmatprep.mubr.bf16.mxu1 %v12464_v22  ;;  %v9868_v22 = vld [vmem:[%s13128_s1 + $0x5d8] sm:$0xff]  }
 0x87f   : > { %8640 = vmatprep.subr.bf16.mxu1 %v9856_v34 }
 0x882   : > { %8641 = vmatpush3.bf16.msra.mxu1 %v9857_v29 }
 0x883   : > { %8642 = vmatprep.subr.bf16.mxu1 %v9858_v40 }
 0x886   : > { %8643 = vmatpush3.bf16.msra.mxu1 %v9859_v10 }
 0x887   : > { %8644 = vmatprep.subr.bf16.mxu1 %v9860_v21 }
 0x88a   : > { %8645 = vmatpush3.bf16.msra.mxu1 %v9861_v35 }
 0x88b   : > { %8664 = vmatprep.subr.bf16.mxu1 %v9862_v42 }
 0x88d   : > { %5982 = vmatmul.mubr.bf16.vlgmr.msra.gmra.mrb[240].mxu1 %v12467_v31  ;;  %v9869_v31 = vld [vmem:[%s13128_s1 + $0x598] sm:$0xff]  }
 0x88e   : > { %5989 = vmatprep.mubr.bf16.mxu1 %v5246_v15  ;;  %8665 = vmatpush3.bf16.msra.mxu1 %v9863_v25  ;;  %v9891_v15 = vld [vmem:[%s13128_s1 + $0x630] sm:$0xff]  }
 0x88f   : > { %8666 = vmatprep.subr.bf16.mxu1 %v9864_v14 }
 0x892   : > { %8667 = vmatpush3.bf16.msra.mxu1 %v9865_v4 }
 0x893   : > { %8668 = vmatprep.subr.bf16.mxu1 %v9866_v56 }
 0x895   : > { %5990 = vmatmul.mubr.bf16.gmra.mrb[244].mxu1 %v5238_v51  ;;  %v9893_v51 = vld [vmem:[%s13128_s1 + $0x638] sm:$0xff]  }
 0x896   : > { %5997 = vmatprep.mubr.bf16.mxu1 %v5245_v19  ;;  %8669 = vmatpush3.bf16.msra.mxu1 %v9867_v20  ;;  %v9882_v19 = vld [vmem:[%s13128_s1 + $0x650] sm:$0xff]  }
 0x897   : > { %8670 = vmatprep.subr.bf16.mxu1 %v9868_v22 }
 0x89a   : > { %8671 = vmatpush3.bf16.msra.mxu1 %v9869_v31 }
 0x89b   : > { %8672 = vmatprep.subr.bf16.mxu1 %v9870_v5 }
 0x89d   : > { %5998 = vmatmul.mubr.bf16.gmra.mrb[248].mxu1 %v5237_v43  ;;  %v9883_v43 = vld [vmem:[%s13128_s1 + $0x610] sm:$0xff]  }
 0x89e   : > { %8673 = vmatpush3.bf16.msra.mxu1 %v9871_v60  ;;  %6037 = vmatprep.mubr.bf16.mxu1 %v12474_v46  ;;  %v9877_v46 = vld [vmem:[%s13128_s1 + $0x5b8] sm:$0xff]   ;;  %v6227_v60 = vld [vmem:[%s13132_s5] sm:$0xff] }
 0x89f   : > { %8674 = vmatprep.subr.bf16.mxu1 %v9872_v27 }
 0x8a2   : > { %8675 = vmatpush3.bf16.msra.mxu1 %v9873_v63 }
 0x8a3   : > { %8676 = vmatprep.subr.bf16.mxu1 %v9874_v54 }
 0x8a6   : > { %8677 = vmatpush3.bf16.msra.mxu1 %v9875_v37 }
 0x8a7   : > { %8678 = vmatprep.subr.bf16.mxu1 %v9876_v50 }
 0x8aa   : > { %8679 = vmatpush3.bf16.msra.mxu1 %v9877_v46 }
 0x8ab   : > { %8698 = vmatprep.subr.bf16.mxu1 %v9878_v28 }
 0x8ad   : > { %6038 = vmatmul.mubr.bf16.vlgmr.msra.gmra.mrb[252].mxu1 %v12506_v13  ;;  %v9894_v13 = vld [vmem:[%s13128_s1 + $0x680] sm:$0xff]  }
 0x8ae   : > { %6045 = vmatprep.mubr.bf16.mxu1 %v12511_v30  ;;  %8699 = vmatpush3.bf16.msra.mxu1 %v9879_v48  ;;  %v9895_v30 = vld [vmem:[%s13128_s1 + $0x688] sm:$0xff]  }
 0x8af   : > { %8700 = vmatprep.subr.bf16.mxu1 %v9880_v17 }
 0x8b2   : > { %8701 = vmatpush3.bf16.msra.mxu1 %v9881_v24 }
 0x8b3   : > { %8702 = vmatprep.subr.bf16.mxu1 %v9882_v19 }
 0x8b5   : > { %6046 = vmatmul.mubr.bf16.gmra.mrb[0].mxu1 %v12529_v33 }
 0x8b6   : > { %6053 = vmatprep.mubr.bf16.mxu1 %v5268_v61  ;;  %8703 = vmatpush3.bf16.msra.mxu1 %v9883_v43  ;;  %v9888_v61 = vld [vmem:[%s13128_s1 + $0x668] sm:$0xff]  }
 0x8b7   : > { %8704 = vmatprep.subr.bf16.mxu1 %v9884_v9 }
 0x8ba   : > { %8705 = vmatpush3.bf16.msra.mxu1 %v9885_v38 }
 0x8bb   : > { %8706 = vmatprep.subr.bf16.mxu1 %v9886_v59 }
 0x8bd   : > { %6054 = vmatmul.mubr.bf16.gmra.mrb[4].mxu1 %v12517_v52  ;;  %v9897_v52 = vld [vmem:[%s13128_s1 + $0x698] sm:$0xff]  }
 0x8be   : > { %8707 = vmatpush3.bf16.msra.mxu1 %v9887_v7  ;;  %6093 = vmatprep.mubr.bf16.mxu1 %v12514_v58  ;;  %v9896_v58 = vld [vmem:[%s13128_s1 + $0x690] sm:$0xff]  }
 0x8bf   : > { %8708 = vmatprep.subr.bf16.mxu1 %v9888_v61 }
 0x8c2   : > { %8709 = vmatpush3.bf16.msra.mxu1 %v9889_v49 }
 0x8c3   : > { %8710 = vmatprep.subr.bf16.mxu1 %v9890_v11 }
 0x8c6   : > { %8711 = vmatpush3.bf16.msra.mxu1 %v9891_v15 }
 0x8c7   : > { %8712 = vmatprep.subr.bf16.mxu1 %v9892_v39 }
 0x8ca   : > { %8713 = vmatpush3.bf16.msra.mxu1 %v9893_v51 }
 0x8cb   : > { %9101 = vmatprep.subr.bf16.mxu1 %v13261_v44 }
 0x8cd   : > { %6094 = vmatmul.mubr.bf16.vlgmr.msra.gmra.mrb[8].mxu1 %v12491_v12  ;;  %v5293_v12 = vsel %vm393_vm0, %v12534_v18, %v5292_v36  ;;  %vm6229_vm0 = vcmask 293888  }
 0x8ce   : > { %6101 = vmatprep.mubr.bf16.mxu1 %v12549_v8  ;;  %9102 = vmatpush3.bf16.msra.mxu1 %v9894_v13 }
 0x8cf   : > { %9103 = vmatprep.subr.bf16.mxu1 %v13261_v44 }
 0x8d2   : > { %9104 = vmatpush3.bf16.msra.mxu1 %v9895_v30 }
 0x8d3   : > { %9105 = vmatprep.subr.bf16.mxu1 %v13261_v44 }
 0x8d5   : > { %6102 = vmatmul.mubr.bf16.gmra.mrb[12].mxu1 %v12539_v57 }
 0x8d6   : > { %6109 = vmatprep.mubr.bf16.mxu1 %v5293_v12  ;;  %9106 = vmatpush3.bf16.msra.mxu1 %v9896_v58 }
 0x8d7   : > { %9107 = vmatprep.subr.bf16.mxu1 %v13261_v44 }
 0x8da   : > { %9108 = vmatpush3.bf16.msra.mxu1 %v9897_v52 }
 0x8db   : > { %9109 = vmatprep.subr.bf16.mxu1 %v13261_v44 }
 0x8dd   : > { %6110 = vmatmul.mubr.bf16.gmra.mrb[16].mxu1 %v5276_v47  ;;  %v9901_v47 = vld [vmem:[%s13128_s1 + $0x6b8] sm:$0xff]  }
 0x8de   : > { %9110 = vmatpush3.bf16.msra.mxu1 %v9898_v6  ;;  %9117 = vmatprep.mubr.msk.bf16.mxu1 %vm10048_vm12, %v13261_v44 }
 0x8df   : > { %9111 = vmatprep.subr.bf16.mxu1 %v13261_v44 }
 0x8e2   : > { %9112 = vmatpush3.bf16.msra.mxu1 %v9899_v53 }
 0x8e3   : > { %9113 = vmatprep.subr.bf16.mxu1 %v13261_v44 }
 0x8e6   : > { %9114 = vmatpush3.bf16.msra.mxu1 %v9900_v62 }
 0x8e7   : > { %9115 = vmatprep.subr.bf16.mxu1 %v13261_v44 }
 0x8ea   : > { %9116 = vmatpush3.bf16.msra.mxu1 %v9901_v47 }
 0x8ed   : > { %9118 = vmatmul.mubr.bf16.vlgmr.msra.gmra.mrb[20].mxu1 %v12521_v0 }
 0x8ee   : > { %9121 = vmatprep.mubr.msk.bf16.mxu1 %vm10048_vm12, %v13261_v44 }
 0x8f5   : > { %9122 = vmatmul.mubr.bf16.gmra.mrb[24].mxu1 %v12544_v32 }
 0x8f6   : > { %9125 = vmatprep.mubr.msk.bf16.mxu1 %vm10048_vm12, %v13261_v44 }
 0x8fd   : > { %9126 = vmatmul.mubr.bf16.gmra.mrb[28].mxu1 %v5304_v55 }
 0x8fe   : > { %9139 = vmatprep.mubr.msk.f32.mxu1 %vm6229_vm0, %v6227_v60 }
 0x940   : > { %v8612_v33 = vpop.f32.mrb[228].mxu1 }
 0x941   : > { %v8613_v16 = vpop.f32.mrb[229].mxu1 }
 0x942   : > { %v8614_v18 = vadd.f32 %v8613_v16, %v8612_v33  ;;  %v8615_v57 = vpop.f32.mrb[230].mxu1 }
 0x943   : > { %v8616_v26 = vpop.f32.mrb[231].mxu1 }
 0x944   : > { %v8617_v8 = vadd.f32 %v8616_v26, %v8615_v57  ;;  %v5928_v25 = vadd.f32 %v8614_v18, %v7903_v1 }
 0x946   : > { %v5931_v20 = vadd.f32 %v8617_v8, %v7903_v1 }
 0x948   : > { %v8618_v0 = vpop.f32.mrb[232].mxu1 }
 0x949   : > { %v8619_v3 = vpop.f32.mrb[233].mxu1 }
 0x94a   : > { %v8620_v2 = vadd.f32 %v8619_v3, %v8618_v0  ;;  %v8621_v23 = vpop.f32.mrb[234].mxu1 }
 0x94b   : > { %v8622_v34 = vpop.f32.mrb[235].mxu1 }
 0x94c   : > { %v8623_v32 = vadd.f32 %v8622_v34, %v8621_v23  ;;  %v5936_v54 = vadd.f32 %v8620_v2, %v7903_v1 }
 0x94e   : > { %v5939_v28 = vadd.f32 %v8623_v32, %v7903_v1 }
 0x950   : > { %v8624_v29 = vpop.f32.mrb[236].mxu1 }
 0x951   : > { %v8625_v40 = vpop.f32.mrb[237].mxu1 }
 0x952   : > { %v8626_v10 = vadd.f32 %v8625_v40, %v8624_v29  ;;  %v8627_v21 = vpop.f32.mrb[238].mxu1 }
 0x953   : > { %v8628_v45 = vpop.f32.mrb[239].mxu1 }
 0x954   : > { %v5944_v9 = vadd.f32 %v8626_v10, %v7903_v1 }
 0x960   : > { %v8646_v35 = vpop.f32.mrb[240].mxu1 }
 0x961   : > { %v8647_v42 = vpop.f32.mrb[241].mxu1 }
 0x962   : > { %v8648_v14 = vadd.f32 %v8647_v42, %v8646_v35  ;;  %v8649_v4 = vpop.f32.mrb[242].mxu1 }
 0x963   : > { %v8650_v56 = vpop.f32.mrb[243].mxu1 }
 0x964   : > { %v5984_v22 = vadd.f32 %v8648_v14, %v5928_v25  ;;  %v8651_v31 = vadd.f32 %v8650_v56, %v8649_v4 }
 0x966   : > { %v5987_v5 = vadd.f32 %v8651_v31, %v5931_v20 }
 0x968   : > { %v8652_v27 = vpop.f32.mrb[244].mxu1 }
 0x969   : > { %v8653_v63 = vpop.f32.mrb[245].mxu1 }
 0x96a   : > { %v8654_v37 = vadd.f32 %v8653_v63, %v8652_v27  ;;  %v8655_v50 = vpop.f32.mrb[246].mxu1 }
 0x96b   : > { %v8656_v46 = vpop.f32.mrb[247].mxu1 }
 0x96c   : > { %v5992_v48 = vadd.f32 %v8654_v37, %v5936_v54  ;;  %v8657_v17 = vadd.f32 %v8656_v46, %v8655_v50 }
 0x96e   : > { %v5995_v24 = vadd.f32 %v8657_v17, %v5939_v28 }
 0x970   : > { %v8658_v19 = vpop.f32.mrb[248].mxu1 }
 0x971   : > { %v8659_v43 = vpop.f32.mrb[249].mxu1 }
 0x972   : > { %v8660_v38 = vadd.f32 %v8659_v43, %v8658_v19  ;;  %v8661_v59 = vpop.f32.mrb[250].mxu1 }
 0x973   : > { %v8662_v7 = vpop.f32.mrb[251].mxu1 }
 0x974   : > { %v6000_v61 = vadd.f32 %v8660_v38, %v5944_v9 }
 0x980   : > { %v8680_v49 = vpop.f32.mrb[252].mxu1 }
 0x981   : > { %v8681_v11 = vpop.f32.mrb[253].mxu1 }
 0x982   : > { %v8682_v15 = vadd.f32 %v8681_v11, %v8680_v49  ;;  %v8683_v39 = vpop.f32.mrb[254].mxu1 }
 0x983   : > { %v8684_v51 = vpop.f32.mrb[255].mxu1 }
 0x984   : > { %v6040_v13 = vadd.f32 %v8682_v15, %v5984_v22  ;;  %v8685_v30 = vadd.f32 %v8684_v51, %v8683_v39 }
 0x986   : > { %v6043_v58 = vadd.f32 %v8685_v30, %v5987_v5 }
 0x988   : > { %v8686_v36 = vpop.f32.mrb[0].mxu1 }
 0x989   : > { %v8687_v12 = vpop.f32.mrb[1].mxu1 }
 0x98a   : > { %v8688_v52 = vadd.f32 %v8687_v12, %v8686_v36  ;;  %v8689_v6 = vpop.f32.mrb[2].mxu1 }
 0x98b   : > { %v8690_v53 = vpop.f32.mrb[3].mxu1 }
 0x98c   : > { %v6048_v62 = vadd.f32 %v8688_v52, %v5992_v48  ;;  %v8691_v47 = vadd.f32 %v8690_v53, %v8689_v6 }
 0x98e   : > { %v6051_v55 = vadd.f32 %v8691_v47, %v5995_v24 }
 0x990   : > { %v8692_v33 = vpop.f32.mrb[4].mxu1 }
 0x991   : > { %v8693_v16 = vpop.f32.mrb[5].mxu1 }
 0x992   : > { %v8694_v18 = vadd.f32 %v8693_v16, %v8692_v33  ;;  %v8695_v57 = vpop.f32.mrb[6].mxu1 }
 0x993   : > { %v8696_v26 = vpop.f32.mrb[7].mxu1 }
 0x994   : > { %v6056_v8 = vadd.f32 %v8694_v18, %v6000_v61 }
 0x9a0   : > { %v8714_v0 = vpop.f32.mrb[8].mxu1 }
 0x9a1   : > { %v8715_v3 = vpop.f32.mrb[9].mxu1 }
 0x9a2   : > { %v8716_v2 = vadd.f32 %v8715_v3, %v8714_v0  ;;  %v8717_v23 = vpop.f32.mrb[10].mxu1 }
 0x9a3   : > { %v8718_v34 = vpop.f32.mrb[11].mxu1 }
 0x9a4   : > { %v8719_v32 = vadd.f32 %v8718_v34, %v8717_v23  ;;  %v6096_v29 = vadd.f32 %v8716_v2, %v6040_v13 }
 0x9a6   : > { %v6099_v40 = vadd.f32 %v8719_v32, %v6043_v58 }
 0x9a8   : > { %v8720_v10 = vpop.f32.mrb[12].mxu1 }
 0x9a9   : > { %v8721_v21 = vpop.f32.mrb[13].mxu1 }
 0x9aa   : > { %v8722_v45 = vadd.f32 %v8721_v21, %v8720_v10  ;;  %v8723_v1 = vpop.f32.mrb[14].mxu1 }
 0x9ab   : > { %v8724_v35 = vpop.f32.mrb[15].mxu1 }
 0x9ac   : > { %v8725_v42 = vadd.f32 %v8724_v35, %v8723_v1  ;;  %v6104_v25 = vadd.f32 %v8722_v45, %v6048_v62 }
 0x9ae   : > { %v6107_v14 = vadd.f32 %v8725_v42, %v6051_v55 }
 0x9b0   : > { %v8726_v4 = vpop.f32.mrb[16].mxu1 }
 0x9b1   : > { %v8727_v56 = vpop.f32.mrb[17].mxu1 }
 0x9b2   : > { %v8728_v20 = vadd.f32 %v8727_v56, %v8726_v4  ;;  %v8729_v22 = vpop.f32.mrb[18].mxu1  ;;  %v9903_v4 = vld [vmem:[%s13128_s1 + $0x6c0] sm:$0xff]   ;;  %v9904_v56 = vld [vmem:[%s13128_s1 + $0x708] sm:$0xff]  }
 0x9b3   : > { %v8730_v31 = vpop.f32.mrb[19].mxu1  ;;  %v9906_v22 = vld [vmem:[%s13128_s1 + $0x710] sm:$0xff]  }
 0x9b4   : > { %v6112_v5 = vadd.f32 %v8728_v20, %v6056_v8  ;;  %v9905_v20 = vld [vmem:[%s13128_s1 + $0x6c8] sm:$0xff]   ;;  %v9907_v31 = vld [vmem:[%s13128_s1 + $0x6d0] sm:$0xff]  }
 0x9c0   : > { %v6151_v60 = vpop.f32.mrb[20].mxu1 }
 0x9c1   : > { %v6152_v27 = vadd.f32 %v6151_v60, %v6096_v29  ;;  %v9119_v63 = vpop.f32.mrb[21].mxu1  ;;  %v9909_v60 = vld [vmem:[%s13128_s1 + $0x6d8] sm:$0xff]  }
 0x9c2   : > { %v6154_v54 = vpop.f32.mrb[22].mxu1  ;;  %v9911_v63 = vld [vmem:[%s13128_s1 + $0x6e0] sm:$0xff]  }
 0x9c3   : > { %v6173_v37 = vmax.f32 %v6152_v27, 0.0  ;;  %v6155_v50 = vadd.f32 %v6154_v54, %v6099_v40  ;;  %v9120_v46 = vpop.f32.mrb[23].mxu1  ;;  %v9910_v27 = vld [vmem:[%s13128_s1 + $0x720] sm:$0xff]   ;;  %v9912_v54 = vld [vmem:[%s13128_s1 + $0x728] sm:$0xff]  }
 0x9c4   : > { %v9915_v46 = vld [vmem:[%s13128_s1 + $0x6f0] sm:$0xff]  }
 0x9c5   : > { %v6174_v28 = vmax.f32 %v6155_v50, 0.0  ;;  %v6183_v48 = vrot.slane %v6173_v37, 1  ;;  %v9914_v50 = vld [vmem:[%s13128_s1 + $0x730] sm:$0xff]  }
 0x9c7   : > { %v6184_v17 = vrot.slane %v6174_v28, 1 }
 0x9c8   : > { %v6159_v24 = vpop.f32.mrb[24].mxu1 }
 0x9c9   : > { %v6185_v19 = vsel %vm801_vm4, %v6183_v48, %v6184_v17  ;;  %v6160_v43 = vadd.f32 %v6159_v24, %v6104_v25  ;;  %v9123_v9 = vpop.f32.mrb[25].mxu1  ;;  %v9902_v25 = vld [vmem:[%s13128_s1 + $0x700] sm:$0xff]   ;;  %v9917_v48 = vld [vmem:[%s13128_s1 + $0x6f8] sm:$0xff]  }
 0x9ca   : > { %v6162_v38 = vpop.f32.mrb[26].mxu1  ;;  %v6198_v59 = vmax.f32 %v6173_v37, %v6185_v19  ;;  %v9913_v37 = vld [vmem:[%s13128_s1 + $0x6e8] sm:$0xff]  }
 0x9cb   : > { %v6175_v7 = vmax.f32 %v6160_v43, 0.0  ;;  %v6163_v61 = vadd.f32 %v6162_v38, %v6107_v14  ;;  %v9124_v49 = vpop.f32.mrb[27].mxu1  ;;  %v6228_v14 = vld [vmem:[%s13132_s5 + $0x8] sm:$0xff] }
 0x9cc   : > { %v6208_v53 = vrot.slane %v6198_v59, 6 }
 0x9cd   : > { %v6186_v11 = vrot.slane %v6175_v7, 1  ;;  %v6176_v15 = vmax.f32 %v6163_v61, 0.0 }
 0x9cf   : > { %v6187_v39 = vsel %vm801_vm4, %v6184_v17, %v6186_v11  ;;  %v6188_v51 = vrot.slane %v6176_v15, 1  ;;  %v9918_v17 = vld [vmem:[%s13128_s1 + $0x780] sm:$0xff]  }
 0x9d0   : > { %v6167_v13 = vpop.f32.mrb[28].mxu1  ;;  %v6199_v30 = vmax.f32 %v6174_v28, %v6187_v39  ;;  %v9916_v28 = vld [vmem:[%s13128_s1 + $0x738] sm:$0xff]  }
 0x9d1   : > { %v6189_v58 = vsel %vm801_vm4, %v6186_v11, %v6188_v51  ;;  %v6168_v36 = vadd.f32 %v6167_v13, %v6112_v5  ;;  %v9127_v12 = vpop.f32.mrb[29].mxu1  ;;  %v9908_v5 = vld [vmem:[%s13128_s1 + $0x718] sm:$0xff]  }
 0x9d2   : > { %v6200_v52 = vmax.f32 %v6175_v7, %v6189_v58  ;;  %v6170_v6 = vpop.f32.mrb[30].mxu1  ;;  %v6209_v62 = vrot.slane %v6199_v30, 6 }
 0x9d3   : > { %v6177_v47 = vmax.f32 %v6168_v36, 0.0  ;;  %v9128_v55 = vpop.f32.mrb[31].mxu1 }
 0x9d4   : > { %v6211_v33 = vrot.slane %v6200_v52, 6  ;;  %v6210_v16 = vsel %vm603_vm1, %v6208_v53, %v6209_v62 }
 0x9d5   : > { %v6190_v18 = vrot.slane %v6177_v47, 1  ;;  %v6222_v57 = vmax.f32 %v6198_v59, %v6210_v16 }
 0x9d6   : > { %v6212_v26 = vsel %vm603_vm1, %v6209_v62, %v6211_v33 }
 0x9d7   : > { %v6191_v8 = vsel %vm801_vm4, %v6188_v51, %v6190_v18  ;;  %v6197_v0 = vsel %vm3002_vm13, %v6190_v18, 0.0  ;;  %v6223_v3 = vmax.f32 %v6199_v30, %v6212_v26 }
 0x9d8   : > { %v6202_v2 = vmax.f32 %v6177_v47, %v6197_v0  ;;  %v6201_v23 = vmax.f32 %v6176_v15, %v6191_v8  ;;  %v9919_v8 = vld [vmem:[%s13128_s1 + $0x740] sm:$0xff]  }
 0x9d9   : > { %v9251_v34 = vpack.c.bf16 %v6223_v3, %v6222_v57 }
 0x9da   : > { %v6215_v32 = vrot.slane %v6202_v2, 6  ;;  %v6213_v29 = vrot.slane %v6201_v23, 6  ;;  %v6226_v42 = vmax.f32 %v6202_v2, 0.0 }
 0x9db   : > { %9252 = vmatprep.subr.bf16.mxu1 %v9251_v34 }
 0x9dc   : > { %9254 = vmatpush3.bf16.msra.mxu1 %v9251_v34  ;;  %v6214_v40 = vsel %vm603_vm1, %v6211_v33, %v6213_v29  ;;  %v6216_v10 = vsel %vm603_vm1, %v6213_v29, %v6215_v32  ;;  %vm6324_vm1 = vmand %vm3002_vm13, %vm3773_vm2 }
 0x9dd   : > { %v6221_v21 = vsel %vm979_vm8, %v6216_v10, 0.0  ;;  %v6224_v45 = vmax.f32 %v6200_v52, %v6214_v40 }
 0x9de   : > { %v6225_v1 = vmax.f32 %v6201_v23, %v6221_v21  ;;  %v9920_v23 = vld [vmem:[%s13128_s1 + $0x788] sm:$0xff]  }
 0x9e0   : > { %v9255_v35 = vpack.c.bf16 %v6225_v1, %v6224_v45 }
 0x9e2   : > { %9256 = vmatprep.subr.bf16.mxu1 %v9255_v35 }
 0x9e3   : > { %9258 = vmatpush3.bf16.msra.mxu1 %v9255_v35  ;;  %v9921_v35 = vld [vmem:[%s13128_s1 + $0x748] sm:$0xff]  }
 0x9e4   : > { %9137 = vmatprep.subr.msk.mxu1 %vm606_vm5, %v6226_v42 }
 0x9e7   : > { %9138 = vmatpush3.msk.msra.mxu1 %vm606_vm5, %v6226_v42 }
 0x9e8   : > { %9140 = vmatmul.mubr.msk.f32.vlgmr.msra.gmra.mrb[226].mxu1 %vm6229_vm0, %v6228_v14  ;;  %8750 = vmatprep.subr.bf16.mxu1 %v9902_v25  ;;  %v9922_v25 = vld [vmem:[%s13128_s1 + $0x790] sm:$0xff]  }
 0x9e9   : > { %8751 = vmatpush3.bf16.msra.mxu1 %v9903_v4  ;;  %v9923_v14 = vld [vmem:[%s13128_s1 + $0x750] sm:$0xff]   ;;  %v9924_v4 = vld [vmem:[%s13128_s1 + $0x798] sm:$0xff]  }
 0x9ea   : > { %8752 = vmatprep.subr.bf16.mxu1 %v9904_v56  ;;  %v9925_v56 = vld [vmem:[%s13128_s1 + $0x758] sm:$0xff]  }
 0x9ed   : > { %8753 = vmatpush3.bf16.msra.mxu1 %v9905_v20  ;;  %v9926_v20 = vld [vmem:[%s13128_s1 + $0x7a0] sm:$0xff]  }
 0x9ee   : > { %8754 = vmatprep.subr.bf16.mxu1 %v9906_v22  ;;  %v9927_v22 = vld [vmem:[%s13128_s1 + $0x760] sm:$0xff]  }
 0x9f1   : > { %8755 = vmatpush3.bf16.msra.mxu1 %v9907_v31  ;;  %v9928_v31 = vld [vmem:[%s13128_s1 + $0x7a8] sm:$0xff]  }
 0x9f2   : > { %8756 = vmatprep.subr.bf16.mxu1 %v9908_v5  ;;  %v9929_v5 = vld [vmem:[%s13128_s1 + $0x768] sm:$0xff]  }
 0x9f5   : > { %8757 = vmatpush3.bf16.msra.mxu1 %v9909_v60  ;;  %v9930_v60 = vld [vmem:[%s13128_s1 + $0x7b0] sm:$0xff]  }
 0x9f6   : > { %8758 = vmatprep.subr.bf16.mxu1 %v9910_v27  ;;  %v9931_v27 = vld [vmem:[%s13128_s1 + $0x770] sm:$0xff]  }
 0x9f9   : > { %8759 = vmatpush3.bf16.msra.mxu1 %v9911_v63  ;;  %v9932_v63 = vld [vmem:[%s13128_s1 + $0x7b8] sm:$0xff]  }
 0x9fa   : > { %8760 = vmatprep.subr.bf16.mxu1 %v9912_v54  ;;  %v9933_v54 = vld [vmem:[%s13128_s1 + $0x778] sm:$0xff]  }
 0x9fd   : > { %8761 = vmatpush3.bf16.msra.mxu1 %v9913_v37  ;;  %v9934_v37 = vld [vmem:[%s13128_s1 + $0x800] sm:$0xff]  }
 0x9fe   : > { %8762 = vmatprep.subr.bf16.mxu1 %v9914_v50 }
 0xa01   : > { %8763 = vmatpush3.bf16.msra.mxu1 %v9915_v46 }
 0xa02   : > { %8764 = vmatprep.subr.bf16.mxu1 %v9916_v28 }
 0xa05   : > { %8765 = vmatpush3.bf16.msra.mxu1 %v9917_v48 }
 0xa06   : > { %8772 = vmatprep.subr.bf16.mxu1 %v9918_v17  ;;  %v9935_v17 = vld [vmem:[%s13128_s1 + $0x7c0] sm:$0xff]  }
 0xabb   : > { %v9141_v24 = vpop.f32.mrb[226].mxu1 }
 0xabc   : > { %v6305_v19 = vpop.f32.mrb[227].mxu1 }
 0xabd   : > { %v6314_v43 = vpack.c.bf16 %v9141_v24, %v6305_v19  ;;  %v9936_v24 = vld [vmem:[%s13128_s1 + $0x808] sm:$0xff]  }
 0xabf   : > { %v6316_v9 = vshrl.u32 %v6314_v43, 16  ;;  %v6319_v38 = vshll.u32 %v6314_v43, 16 }
 0xac1   : > { %v6318_v59 = vrot.slane %v6316_v9, 5  ;;  %v6321_v7 = vrot.slane %v6319_v38, 6  ;;  %v9937_v9 = vld [vmem:[%s13128_s1 + $0x7c8] sm:$0xff]   ;;  %v9938_v38 = vld [vmem:[%s13128_s1 + $0x810] sm:$0xff]  }
 0xac3   : > { %v6322_v61 = vor.u32 %v6321_v7, %v6318_v59  ;;  %v9939_v59 = vld [vmem:[%s13128_s1 + $0x7d0] sm:$0xff]   ;;  %v9940_v7 = vld [vmem:[%s13128_s1 + $0x818] sm:$0xff]  }
 0xac5   : > { %v12816_v49 = vsel %vm6324_vm1, 0, %v6322_v61  ;;  %v12818_v11 = vsel %vm6324_vm1, %v6322_v61, 0  ;;  %v9941_v61 = vld [vmem:[%s13128_s1 + $0x7d8] sm:$0xff]  }
 0xac6   : > { %v6353_v15 = vshrl.u32 %v12818_v11, 16  ;;  %v6328_v39 = vshrl.u32 %v12816_v49, 16  ;;  %v6330_v51 = vshll.u32 %v12816_v49, 16  ;;  %v6335_v13 = vshll.u32 %v12818_v11, 16 }
 0xac7   : > { %v6365_v30 = vrot.slane %v12818_v11, 4  ;;  %v6377_v36 = vrot.slane %v12818_v11, 5  ;;  %v6346_v47 = vrot.slane %v12816_v49, 2  ;;  %v6347_v55 = vrot.slane %v12818_v11, 2 }
 0xac8   : > { %v6355_v58 = vrot.slane %v6353_v15, 2  ;;  %v6332_v12 = vrot.slane %v6330_v51, 1  ;;  %v6350_v52 = vrot.slane %v6328_v39, 2  ;;  %v6351_v6 = vrot.slane %v6330_v51, 3 }
 0xac9   : > { %v6337_v53 = vrot.slane %v6335_v13, 1  ;;  %v6356_v62 = vrot.slane %v6335_v13, 3  ;;  %v6368_v18 = vrot.slane %v6328_v39, 4  ;;  %v6369_v57 = vrot.slane %v6330_v51, 5  ;;  %v9946_v51 = vld [vmem:[%s13128_s1 + $0x830] sm:$0xff]  }
 0xaca   : > { %v6333_v33 = vor.u32 %v6332_v12, %v6328_v39  ;;  %v6352_v16 = vor.u32 %v6351_v6, %v6350_v52  ;;  %v6371_v0 = vrot.slane %v6353_v15, 4  ;;  %v6372_v3 = vrot.slane %v6335_v13, 5  ;;  %v9944_v15 = vld [vmem:[%s13128_s1 + $0x828] sm:$0xff]   ;;  %v9947_v13 = vld [vmem:[%s13128_s1 + $0x7f0] sm:$0xff]   ;;  %v9951_v12 = vld [vmem:[%s13128_s1 + $0x840] sm:$0xff]  }
 0xacb   : > { %v6357_v26 = vor.u32 %v6356_v62, %v6355_v58  ;;  %v6370_v34 = vor.u32 %v6369_v57, %v6368_v18  ;;  %v6364_v32 = vrot.slane %v12816_v49, 4  ;;  %v6376_v29 = vrot.slane %v12816_v49, 5  ;;  %v9945_v39 = vld [vmem:[%s13128_s1 + $0x7e8] sm:$0xff]   ;;  %v9949_v58 = vld [vmem:[%s13128_s1 + $0x7f8] sm:$0xff]   ;;  %v9955_v62 = vld [vmem:[%s13128_s1 + $0x850] sm:$0xff]  }
 0xacc   : > { %v6338_v2 = vsel %vm610_vm3, %v6333_v33, %v6337_v53  ;;  %v6373_v10 = vor.u32 %v6372_v3, %v6371_v0  ;;  %v6348_v21 = vsel %vm979_vm8, %v6346_v47, %v6347_v55  ;;  %v6343_v50 = vrot.slane %v12818_v11, 1  ;;  %v9952_v52 = vld [vmem:[%s13128_s1 + $0x888] sm:$0xff]   ;;  %v9954_v53 = vld [vmem:[%s13128_s1 + $0x890] sm:$0xff]   ;;  %v9956_v47 = vld [vmem:[%s13128_s1 + $0x898] sm:$0xff]  }
 0xacd   : > { %6997 = vmatprep.mubr.bf16.mxu1 %v6338_v2  ;;  %v12838_v40 = vsel %vm1046_vm10, %v6352_v16, %v6357_v26  ;;  %v12843_v45 = vsel %vm606_vm5, %v6364_v32, %v6365_v30  ;;  %v12846_v1 = vsel %vm3002_vm13, %v6376_v29, %v6377_v36  ;;  %v6342_v46 = vrot.slane %v12816_v49, 1  ;;  %v9948_v30 = vld [vmem:[%s13128_s1 + $0x838] sm:$0xff]   ;;  %v9950_v36 = vld [vmem:[%s13128_s1 + $0x880] sm:$0xff]   ;;  %v9953_v6 = vld [vmem:[%s13128_s1 + $0x848] sm:$0xff]  }
 0xace   : > { %6998 = vmatmul.mubr.bf16.vlgmr.msra.gmra.mrb[32].mxu1 %v12816_v49  ;;  %v12852_v42 = vsel %vm607_vm6, %v6370_v34, %v6373_v10  ;;  %v6360_v28 = vrot.slane %v12816_v49, 3  ;;  %v6361_v48 = vrot.slane %v12818_v11, 3  ;;  %v9942_v49 = vld [vmem:[%s13128_s1 + $0x820] sm:$0xff]   ;;  %v9957_v55 = vld [vmem:[%s13128_s1 + $0x858] sm:$0xff]   ;;  %v9960_v18 = vld [vmem:[%s13128_s1 + $0x8a8] sm:$0xff]   ;;  %vm7193_vm3 = vcmask 130048  }
 0xacf   : > { %8773 = vmatpush3.bf16.msra.mxu1 %v9919_v8  ;;  %7038 = vmatprep.mubr.bf16.mxu1 %v6348_v21  ;;  %v6344_v19 = vsel %vm801_vm4, %v6342_v46, %v6343_v50  ;;  %v9943_v11 = vld [vmem:[%s13128_s1 + $0x7e0] sm:$0xff]   ;;  %v9961_v57 = vld [vmem:[%s13128_s1 + $0x868] sm:$0xff]   ;;  %v9962_v26 = vld [vmem:[%s13128_s1 + $0x8b0] sm:$0xff]  }
 0xad0   : > { %8774 = vmatprep.subr.bf16.mxu1 %v9920_v23  ;;  %v6362_v43 = vsel %vm1151_vm11, %v6360_v28, %v6361_v48  ;;  %v9958_v33 = vld [vmem:[%s13128_s1 + $0x8a0] sm:$0xff]   ;;  %v9963_v8 = vld [vmem:[%s13128_s1 + $0x870] sm:$0xff]   ;;  %v9964_v0 = vld [vmem:[%s13128_s1 + $0x8b8] sm:$0xff]  }
 0xad1   : > { %v9959_v16 = vld [vmem:[%s13128_s1 + $0x860] sm:$0xff]   ;;  %v9965_v3 = vld [vmem:[%s13128_s1 + $0x878] sm:$0xff]   ;;  %v9967_v23 = vld [vmem:[%s13128_s1 + $0x8c8] sm:$0xff]  }
 0xad2   : > { %v9966_v2 = vld [vmem:[%s13128_s1 + $0x8c0] sm:$0xff]   ;;  %v9968_v34 = vld [vmem:[%s13128_s1 + $0x8d0] sm:$0xff]   ;;  %v9969_v32 = vld [vmem:[%s13128_s1 + $0x8d8] sm:$0xff]  }
 0xad3   : > { %8775 = vmatpush3.bf16.msra.mxu1 %v9921_v35  ;;  %v9970_v29 = vld [vmem:[%s13128_s1 + $0x8e0] sm:$0xff]   ;;  %v9972_v10 = vld [vmem:[%s13128_s1 + $0x8f0] sm:$0xff]   ;;  %v9973_v21 = vld [vmem:[%s13128_s1 + $0x8f8] sm:$0xff]  }
 0xad4   : > { %8776 = vmatprep.subr.bf16.mxu1 %v9922_v25 }
 0xad7   : > { %8777 = vmatpush3.bf16.msra.mxu1 %v9923_v14 }
 0xad8   : > { %8778 = vmatprep.subr.bf16.mxu1 %v9924_v4 }
 0xadb   : > { %8779 = vmatpush3.bf16.msra.mxu1 %v9925_v56  ;;  %v8124_v56 = vld [vmem:[%s13129_s2 + $0x3] ss:$0 sm:$0xff] }
 0xadc   : > { %8780 = vmatprep.subr.bf16.mxu1 %v9926_v20 }
 0xadf   : > { %8781 = vmatpush3.bf16.msra.mxu1 %v9927_v22 }
 0xae0   : > { %8782 = vmatprep.subr.bf16.mxu1 %v9928_v31 }
 0xae3   : > { %8783 = vmatpush3.bf16.msra.mxu1 %v9929_v5 }
 0xae4   : > { %8784 = vmatprep.subr.bf16.mxu1 %v9930_v60 }
 0xae7   : > { %8785 = vmatpush3.bf16.msra.mxu1 %v9931_v27 }
 0xae8   : > { %8786 = vmatprep.subr.bf16.mxu1 %v9932_v63 }
 0xaeb   : > { %8787 = vmatpush3.bf16.msra.mxu1 %v9933_v54 }
 0xaec   : > { %8794 = vmatprep.subr.bf16.mxu1 %v9934_v37 }
 0xaee   : > { %7039 = vmatmul.mubr.bf16.vlgmr.msra.gmra.mrb[36].mxu1 %v6344_v19 }
 0xaef   : > { %8795 = vmatpush3.bf16.msra.mxu1 %v9935_v17  ;;  %7079 = vmatprep.mubr.bf16.mxu1 %v6362_v43 }
 0xaf0   : > { %8796 = vmatprep.subr.bf16.mxu1 %v9936_v24 }
 0xaf3   : > { %8797 = vmatpush3.bf16.msra.mxu1 %v9937_v9 }
 0xaf4   : > { %8798 = vmatprep.subr.bf16.mxu1 %v9938_v38 }
 0xaf7   : > { %8799 = vmatpush3.bf16.msra.mxu1 %v9939_v59 }
 0xaf8   : > { %8800 = vmatprep.subr.bf16.mxu1 %v9940_v7 }
 0xafb   : > { %8801 = vmatpush3.bf16.msra.mxu1 %v9941_v61 }
 0xafc   : > { %8802 = vmatprep.subr.bf16.mxu1 %v9942_v49 }
 0xaff   : > { %8803 = vmatpush3.bf16.msra.mxu1 %v9943_v11 }
 0xb00   : > { %8804 = vmatprep.subr.bf16.mxu1 %v9944_v15 }
 0xb03   : > { %8805 = vmatpush3.bf16.msra.mxu1 %v9945_v39 }
 0xb04   : > { %8806 = vmatprep.subr.bf16.mxu1 %v9946_v51 }
 0xb07   : > { %8807 = vmatpush3.bf16.msra.mxu1 %v9947_v13 }
 0xb08   : > { %8808 = vmatprep.subr.bf16.mxu1 %v9948_v30 }
 0xb0b   : > { %8809 = vmatpush3.bf16.msra.mxu1 %v9949_v58 }
 0xb0c   : > { %8816 = vmatprep.subr.bf16.mxu1 %v9950_v36 }
 0xb0e   : > { %7080 = vmatmul.mubr.bf16.vlgmr.msra.gmra.mrb[40].mxu1 %v12838_v40  ;;  %v9971_v40 = vld [vmem:[%s13128_s1 + $0x8e8] sm:$0xff]  }
 0xb0f   : > { %8817 = vmatpush3.bf16.msra.mxu1 %v9951_v12  ;;  %7120 = vmatprep.mubr.bf16.mxu1 %v12852_v42 }
 0xb10   : > { %8818 = vmatprep.subr.bf16.mxu1 %v9952_v52 }
 0xb13   : > { %8819 = vmatpush3.bf16.msra.mxu1 %v9953_v6 }
 0xb14   : > { %8820 = vmatprep.subr.bf16.mxu1 %v9954_v53 }
 0xb17   : > { %8821 = vmatpush3.bf16.msra.mxu1 %v9955_v62 }
 0xb18   : > { %8822 = vmatprep.subr.bf16.mxu1 %v9956_v47 }
 0xb1b   : > { %8823 = vmatpush3.bf16.msra.mxu1 %v9957_v55 }
 0xb1c   : > { %8824 = vmatprep.subr.bf16.mxu1 %v9958_v33 }
 0xb1f   : > { %8825 = vmatpush3.bf16.msra.mxu1 %v9959_v16 }
 0xb20   : > { %8826 = vmatprep.subr.bf16.mxu1 %v9960_v18 }
 0xb23   : > { %8827 = vmatpush3.bf16.msra.mxu1 %v9961_v57 }
 0xb24   : > { %8828 = vmatprep.subr.bf16.mxu1 %v9962_v26 }
 0xb27   : > { %8829 = vmatpush3.bf16.msra.mxu1 %v9963_v8 }
 0xb28   : > { %8830 = vmatprep.subr.bf16.mxu1 %v9964_v0 }
 0xb2b   : > { %8831 = vmatpush3.bf16.msra.mxu1 %v9965_v3  ;;  %v7192_v3 = vld [vmem:[%s13133_s6] sm:$0x1] }
 0xb2c   : > { %9142 = vmatprep.subr.bf16.mxu1 %v13261_v44 }
 0xb2e   : > { %7121 = vmatmul.mubr.bf16.vlgmr.msra.gmra.mrb[44].mxu1 %v12843_v45 }
 0xb2f   : > { %9143 = vmatpush3.bf16.msra.mxu1 %v9966_v2  ;;  %9158 = vmatprep.mubr.msk.bf16.mxu1 %vm10048_vm12, %v13261_v44  ;;  %v9974_v2 = vld [vmem:[%s13134_s7] sm:$0xff]  }
 0xb30   : > { %9144 = vmatprep.subr.bf16.mxu1 %v13261_v44 }
 0xb33   : > { %9145 = vmatpush3.bf16.msra.mxu1 %v9967_v23  ;;  %v9975_v23 = vld [vmem:[%s13134_s7 + $0x8] sm:$0xff]  }
 0xb34   : > { %9146 = vmatprep.subr.bf16.mxu1 %v13261_v44 }
 0xb37   : > { %9147 = vmatpush3.bf16.msra.mxu1 %v9968_v34  ;;  %v9976_v34 = vld [vmem:[%s13134_s7 + $0x10] sm:$0xff]  }
 0xb38   : > { %9148 = vmatprep.subr.bf16.mxu1 %v13261_v44 }
 0xb3b   : > { %9149 = vmatpush3.bf16.msra.mxu1 %v9969_v32  ;;  %v9977_v32 = vld [vmem:[%s13134_s7 + $0x18] sm:$0xff]  }
 0xb3c   : > { %9150 = vmatprep.subr.bf16.mxu1 %v13261_v44 }
 0xb3f   : > { %9151 = vmatpush3.bf16.msra.mxu1 %v9970_v29  ;;  %v9978_v29 = vld [vmem:[%s13134_s7 + $0x20] sm:$0xff]  }
 0xb40   : > { %9152 = vmatprep.subr.bf16.mxu1 %v13261_v44 }
 0xb43   : > { %9153 = vmatpush3.bf16.msra.mxu1 %v9971_v40  ;;  %v9979_v40 = vld [vmem:[%s13134_s7 + $0x28] sm:$0xff]  }
 0xb44   : > { %9154 = vmatprep.subr.bf16.mxu1 %v13261_v44 }
 0xb47   : > { %9155 = vmatpush3.bf16.msra.mxu1 %v9972_v10  ;;  %v9980_v10 = vld [vmem:[%s13134_s7 + $0x30] sm:$0xff]  }
 0xb48   : > { %9156 = vmatprep.subr.bf16.mxu1 %v13261_v44 }
 0xb4b   : > { %9157 = vmatpush3.bf16.msra.mxu1 %v9973_v21  ;;  %v9981_v21 = vld [vmem:[%s13134_s7 + $0x38] sm:$0xff]  }
 0xb4c   : > { %9259 = vmatprep.subr.bf16.mxu1 %v13318_v41 }
 0xb4e   : > { %9159 = vmatmul.mubr.bf16.vlgmr.msra.gmra.mrb[48].mxu1 %v12846_v1 }
 0xb4f   : > { %9166 = vmatprep.mubr.msk.f32.mxu1 %vm10048_vm12, %v13261_v44 }
 0xba1   : > { %v8766_v45 = vpop.f32.mrb[32].mxu1 }
 0xba2   : > { %v8767_v35 = vpop.f32.mrb[33].mxu1 }
 0xba3   : > { %v8768_v42 = vadd.f32 %v8767_v35, %v8766_v45  ;;  %v8769_v25 = vpop.f32.mrb[34].mxu1 }
 0xba4   : > { %v8770_v14 = vpop.f32.mrb[35].mxu1 }
 0xba5   : > { %v8771_v4 = vadd.f32 %v8770_v14, %v8769_v25  ;;  %v7000_v31 = vadd.f32 %v8768_v42, %v8124_v56  ;;  %v7284_v25 = vld [vmem:[%s13135_s8] sm:$0x1] }
 0xba7   : > { %v7003_v1 = vadd.f32 %v8771_v4, %v8124_v56 }
 0xbc1   : > { %v8788_v20 = vpop.f32.mrb[36].mxu1 }
 0xbc2   : > { %v8789_v22 = vpop.f32.mrb[37].mxu1 }
 0xbc3   : > { %v8790_v5 = vadd.f32 %v8789_v22, %v8788_v20  ;;  %v8791_v41 = vpop.f32.mrb[38].mxu1 }
 0xbc4   : > { %v8792_v60 = vpop.f32.mrb[39].mxu1 }
 0xbc5   : > { %v7041_v27 = vadd.f32 %v8790_v5, %v7000_v31  ;;  %v8793_v63 = vadd.f32 %v8792_v60, %v8791_v41 }
 0xbc7   : > { %v7044_v54 = vadd.f32 %v8793_v63, %v7003_v1 }
 0xbe1   : > { %v8810_v37 = vpop.f32.mrb[40].mxu1 }
 0xbe2   : > { %v8811_v50 = vpop.f32.mrb[41].mxu1 }
 0xbe3   : > { %v8812_v46 = vadd.f32 %v8811_v50, %v8810_v37  ;;  %v8813_v28 = vpop.f32.mrb[42].mxu1 }
 0xbe4   : > { %v8814_v48 = vpop.f32.mrb[43].mxu1 }
 0xbe5   : > { %v7082_v17 = vadd.f32 %v8812_v46, %v7041_v27  ;;  %v8815_v24 = vadd.f32 %v8814_v48, %v8813_v28 }
 0xbe7   : > { %v7085_v19 = vadd.f32 %v8815_v24, %v7044_v54 }
 0xc01   : > { %v8832_v43 = vpop.f32.mrb[44].mxu1 }
 0xc02   : > { %v8833_v9 = vpop.f32.mrb[45].mxu1 }
 0xc03   : > { %v8834_v38 = vadd.f32 %v8833_v9, %v8832_v43  ;;  %v8835_v59 = vpop.f32.mrb[46].mxu1 }
 0xc04   : > { %v8836_v7 = vpop.f32.mrb[47].mxu1 }
 0xc05   : > { %v8837_v61 = vadd.f32 %v8836_v7, %v8835_v59  ;;  %v7123_v49 = vadd.f32 %v8834_v38, %v7082_v17 }
 0xc07   : > { %v7126_v11 = vadd.f32 %v8837_v61, %v7085_v19 }
 0xc21   : > { %v7163_v15 = vpop.f32.mrb[48].mxu1 }
 0xc22   : > { %v7164_v39 = vadd.f32 %v7163_v15, %v7123_v49  ;;  %v9160_v51 = vpop.f32.mrb[49].mxu1 }
 0xc23   : > { %v7166_v13 = vpop.f32.mrb[50].mxu1 }
 0xc24   : > { %v7170_v30 = vmax.f32 %v7164_v39, 0.0  ;;  %v7167_v58 = vadd.f32 %v7166_v13, %v7126_v11  ;;  %v9161_v36 = vpop.f32.mrb[51].mxu1 }
 0xc26   : > { %v7171_v12 = vmax.f32 %v7167_v58, 0.0  ;;  %v7174_v52 = vrot.slane %v7170_v30, 1 }
 0xc28   : > { %v7175_v6 = vrot.slane %v7171_v12, 1 }
 0xc2a   : > { %v7176_v53 = vsel %vm801_vm4, %v7174_v52, %v7175_v6  ;;  %v7179_v62 = vsel %vm801_vm4, %v7175_v6, 0.0 }
 0xc2b   : > { %v7180_v47 = vmax.f32 %v7170_v30, %v7176_v53  ;;  %v7181_v55 = vmax.f32 %v7171_v12, %v7179_v62 }
 0xc2d   : > { %v7184_v33 = vrot.slane %v7180_v47, 4  ;;  %v7185_v16 = vrot.slane %v7181_v55, 4 }
 0xc2f   : > { %v7186_v18 = vsel %vm606_vm5, %v7184_v33, %v7185_v16  ;;  %v7189_v57 = vsel %vm606_vm5, %v7185_v16, 0.0 }
 0xc30   : > { %v7190_v26 = vmax.f32 %v7180_v47, %v7186_v18  ;;  %v7191_v8 = vmax.f32 %v7181_v55, %v7189_v57 }
 0xc32   : > { %v9260_v0 = vpack.c.bf16 %v7191_v8, %v7190_v26 }
 0xc34   : > { %9261 = vmatpush3.bf16.msra.mxu1 %v9260_v0 }
 0xc35   : > { %9169 = vmatprep.subr.bf16.mxu1 %v13261_v44 }
 0xc37   : > { %9167 = vmatmul.mubr.msk.f32.vlgmr.msra.gmra.mrb[52].mxu1 %vm7193_vm3, %v7192_v3 }
 0xc38   : > { %9170 = vmatpush3.bf16.msra.mxu1 %v9974_v2  ;;  %9185 = vmatprep.mubr.msk.bf16.mxu1 %vm10048_vm12, %v13261_v44 }
 0xc39   : > { %9171 = vmatprep.subr.bf16.mxu1 %v13261_v44 }
 0xc3c   : > { %9172 = vmatpush3.bf16.msra.mxu1 %v9975_v23 }
 0xc3d   : > { %9173 = vmatprep.subr.bf16.mxu1 %v13261_v44 }
 0xc40   : > { %9174 = vmatpush3.bf16.msra.mxu1 %v9976_v34 }
 0xc41   : > { %9175 = vmatprep.subr.bf16.mxu1 %v13261_v44 }
 0xc44   : > { %9176 = vmatpush3.bf16.msra.mxu1 %v9977_v32 }
 0xc45   : > { %9177 = vmatprep.subr.bf16.mxu1 %v13261_v44 }
 0xc48   : > { %9178 = vmatpush3.bf16.msra.mxu1 %v9978_v29 }
 0xc49   : > { %9179 = vmatprep.subr.bf16.mxu1 %v13261_v44 }
 0xc4c   : > { %9180 = vmatpush3.bf16.msra.mxu1 %v9979_v40 }
 0xc4d   : > { %9181 = vmatprep.subr.bf16.mxu1 %v13261_v44 }
 0xc50   : > { %9182 = vmatpush3.bf16.msra.mxu1 %v9980_v10 }
 0xc51   : > { %9183 = vmatprep.subr.bf16.mxu1 %v13261_v44 }
 0xc54   : > { %9184 = vmatpush3.bf16.msra.mxu1 %v9981_v21 }
 0xd0a   : > { %v7263_v45 = vpop.f32.mrb[52].mxu1 }
 0xd0b   : > { %v7267_v35 = vpack.c.bf16 %v7263_v45, %v7263_v45  ;;  %v9168_v42 = vpop.f32.mrb[53].mxu1 }
 0xd0d   : > { %9186 = vmatmul.mubr.bf16.vlgmr.msra.gmra.mrb[56].mxu1 %v7267_v35 }
 0xde0   : > { %v7367_v14 = vpop.f32.mrb[56].mxu1 }
 0xde1   : > { %v7368_v44 = vadd.f32 %v7367_v14, %v7284_v25  ;;  %v9187_v4 = vpop.f32.mrb[57].mxu1 }
 0xde2   : > { %v7370_v56 = vpop.f32.mrb[58].mxu1 }
 0xde3   : > { %7373 = vst [vmem:[%s324_s23] sm:$0x1] %v7368_v44  ;;  %v9188_v20 = vpop.f32.mrb[59].mxu1 }
 0xde4   : > { %9995 = shalt.err (!%p9992_p3)
}
 0xde5   : > { %s9996_s16 = scalar_lea.hbm %s13085_s27, 16  ;;  %s10000_s23 = scalar_lea.hbm %s13136_s9, 32 }
 0xde6   : > { %p9997_p4 = scmp.ne.s32.totalorder %s13085_s27, %s9996_s16  ;;  %p10001_p9 = scmp.lt.u32.totalorder %s13085_s27, %s13136_s9 }
 0xde7   : > { %p10002_p10 = scmp.lt.u32.totalorder %s10000_s23, %s9996_s16  ;;  %p10004_p12 = scmp.lt.u32.totalorder %s9996_s16, %s13085_s27 }
 0xde8   : > { %p9998_p7 = pnand %p9997_p4, %p10139_p5 }
 0xde9   : > { %p10003_p11 = por %p10002_p10, %p10001_p9 }
 0xdea   : > { %p9999_p8 = pneg %p9998_p7 }
 0xdeb   : > { %p10005_p13 = por %p10004_p12, %p10003_p11 }
 0xded   : > { %p10006_p0 = pnand %p10005_p13, %p9999_p8 }
 0xdef   : > { %10009 = shalt.err (!%p10006_p0)
}
 0xdf0   : > { %9643 = dma.vmem_to_hbm [thread:$0]  (%p10139_p5), %s13087_s24, 16, %s13085_s27, %s7375_s28  }
 0xdf1 PF: > { %p9649_p1 = scmp.ge.s32.totalorder %s10044_s12, 2  ;;  %s7399_s13 = sand.u32 1, %s10032_s30  }
 0xdf2   : > { %s7400_s29 = scalar_lea.sflag [#allocation3], %s7399_s13 }
 0xdf3   : > { %p9646_p2 = pnand %p9649_p1, %p10143_p6 }
 0xdf5   : > { %10027 = dma.done.wait (!%p9646_p2), %s7400_s29, 16  }
 0xdf6   : > { %10029 = vsyncadd (!%p9646_p2), %s7400_s29, 4294967280  ;;  %p19_p3 = scmp.ge.s32.totalorder %s10126_s15, 4   ;;  %s13320_s30 = smov %s10036_s10 }
 0xdf7   : > { %s13321_s10 = smov %s10040_s11  ;;  %s13322_s11 = smov %s10137_s18 }
 0xdf8   : > { %s13323_s12 = smov %s10126_s15  ;;  %21 = sbr.rel (!%p19_p3) target bundleno = 3 (0x3), region = 97 }
 0xdff   :  { %7404 = vsyncpa [#allocation3], 1 }
 0xe00   :  { %7406 = vsyncpa [#allocation3 + $0x1], 1 }

</bundles_post_ra>
